<compile_context>
chip_gen: v7x
topology: tpu7x:2x2x1
jax: 0.10.0
libtpu: 0.0.40
codegen_flags: <defaults>
</compile_context>

<pallas_src>
import functools

import jax
import jax.numpy as jnp
from jax import lax
from jax.experimental import pallas as pl
from jax.experimental.pallas import tpu as pltpu


def _round_up(x, m):
    return (x + m - 1) // m * m


def _vmem_limit(block_bytes):
    # Footprint-derived cap (v7x has 64 MiB per TensorCore -- leave headroom).
    return int(min(max(2 * block_bytes + (4 << 20), 16 << 20), 56 << 20))


# ----------------------------------------------------------------------------
# Shared epilogue: exact (erf) GELU + masked one-pass LayerNorm over channels
# ----------------------------------------------------------------------------
def _gelu_ln(y, g, bt, c_true):
    # exact (erf-based) GELU, matching torch.nn.GELU default; f32 math.
    y = 0.5 * y * (1.0 + lax.erf(y * 0.7071067811865476))
    c_pad = y.shape[-1]
    inv_c = 1.0 / float(c_true)
    if c_pad > c_true:
        lane = lax.broadcasted_iota(jnp.int32, (1, c_pad), 1)
        ym = jnp.where(lane < c_true, y, 0.0)
    else:
        ym = y
    # one-pass statistics: sum and sum-of-squares over the true channels.
    s1 = jnp.sum(ym, axis=-1, keepdims=True)
    s2 = jnp.sum(ym * ym, axis=-1, keepdims=True)
    mean = s1 * inv_c
    var = jnp.maximum(s2 * inv_c - mean * mean, 0.0)
    y = (y - mean) * lax.rsqrt(var + 1e-5)
    return y * g + bt


# ----------------------------------------------------------------------------
# Kernel A (im2col path, used for the strided conv1):
#   single full-K matmul per token tile, resident weight, chunked epilogue.
# ----------------------------------------------------------------------------
def _matmul_post_kernel(x_ref, w_ref, b_ref, g_ref, bt_ref, o_ref, *,
                        apply_post, c_true, sub):
    w = w_ref[...]
    b = b_ref[...]
    g = g_ref[...]
    bt = bt_ref[...]
    tm = x_ref.shape[0]
    for r0 in range(0, tm, sub):
        rc = min(sub, tm - r0)
        y = jnp.dot(x_ref[r0:r0 + rc, :], w,
                    preferred_element_type=jnp.float32) + b
        if apply_post:
            y = _gelu_ln(y, g, bt, c_true)
        o_ref[r0:r0 + rc, :] = y.astype(o_ref.dtype)


def fused_matmul_post(patches, w_mat, bias, gamma, beta, *, c_true,
                      apply_post=True, out_dtype=jnp.float32, sub=256):
    """patches: [N, K]; w_mat: [K, C]; returns [N, c_pad] (channels kept padded)."""
    N, K = patches.shape
    C = w_mat.shape[1]
    c_pad = _round_up(max(C, 128), 128)
    k_pad = _round_up(K, 128)
    tm = min(512, _round_up(N, sub))
    n_pad = _round_up(N, tm)

    patches = jnp.pad(patches.astype(jnp.bfloat16),
                      ((0, n_pad - N), (0, k_pad - K)))
    w_mat = jnp.pad(w_mat.astype(jnp.bfloat16),
                    ((0, k_pad - K), (0, c_pad - C)))
    bias = jnp.pad(bias.astype(jnp.float32), ((0, 0), (0, c_pad - C)))
    gamma = jnp.pad(gamma.astype(jnp.float32), ((0, 0), (0, c_pad - C)))
    beta = jnp.pad(beta.astype(jnp.float32), ((0, 0), (0, c_pad - C)))

    kernel = functools.partial(_matmul_post_kernel, apply_post=apply_post,
                               c_true=c_true, sub=sub)
    ob = jnp.dtype(out_dtype).itemsize
    block_bytes = (2 * tm * k_pad * 2 + k_pad * c_pad * 2 + 3 * c_pad * 4
                   + 2 * tm * c_pad * ob)
    cost = pl.CostEstimate(
        flops=2 * n_pad * k_pad * c_pad,
        transcendentals=(n_pad * c_pad) if apply_post else 0,
        bytes_accessed=(n_pad * k_pad * 2 + k_pad * c_pad * 2 + 3 * c_pad * 4
                        + n_pad * c_pad * ob),
    )

    out = pl.pallas_call(
        kernel,
        out_shape=jax.ShapeDtypeStruct((n_pad, c_pad), out_dtype),
        grid_spec=pltpu.PrefetchScalarGridSpec(
            num_scalar_prefetch=0,
            grid=(n_pad // tm,),
            in_specs=[
                pl.BlockSpec((tm, k_pad), lambda i: (i, 0)),
                pl.BlockSpec((k_pad, c_pad), lambda i: (0, 0)),  # resident weight
                pl.BlockSpec((1, c_pad), lambda i: (0, 0)),
                pl.BlockSpec((1, c_pad), lambda i: (0, 0)),
                pl.BlockSpec((1, c_pad), lambda i: (0, 0)),
            ],
            out_specs=pl.BlockSpec((tm, c_pad), lambda i: (i, 0)),
        ),
        compiler_params=pltpu.CompilerParams(
            dimension_semantics=("parallel",),
            vmem_limit_bytes=_vmem_limit(block_bytes),
        ),
        cost_estimate=cost,
    )(patches, w_mat, bias, gamma, beta)
    return out[:N]  # slice rows only; channels stay padded for the next conv


# ----------------------------------------------------------------------------
# Kernel B (direct conv path, stride 1 / pad 1 / k 3 -- always used for conv2):
#   per output depth-plane, 27 shifted 2-D MXU matmuls into an f32 VMEM acc,
#   then bias + GELU + LayerNorm in row chunks.  No im2col in HBM.
# ----------------------------------------------------------------------------
def _direct_conv_kernel(x0_ref, x1_ref, x2_ref, w_ref, b_ref, g_ref, bt_ref,
                        o_ref, acc_ref, *, apply_post, c_true, Wp, sub):
    M = acc_ref.shape[0]          # Ho * Wp rows (2 junk cols per image row)
    acc_ref[...] = jnp.zeros_like(acc_ref)
    planes = (x0_ref, x1_ref, x2_ref)
    for kd in range(3):
        xk = planes[kd]
        for kh in range(3):
            for kw in range(3):
                start = kh * Wp + kw            # static shift within the plane
                acc_ref[...] += jnp.dot(
                    xk[start:start + M, :],
                    w_ref[kd * 9 + kh * 3 + kw],
                    preferred_element_type=jnp.float32)

    b = b_ref[...]
    g = g_ref[...]
    bt = bt_ref[...]
    r0 = 0
    while r0 < M:                 # chunked epilogue (bounds vreg pressure)
        rc = min(sub, M - r0)
        y = acc_ref[r0:r0 + rc, :] + b
        if apply_post:
            y = _gelu_ln(y, g, bt, c_true)
        o_ref[r0:r0 + rc, :] = y.astype(o_ref.dtype)
        r0 += rc


def direct_conv3_gelu_ln(x_ndhwc, w_oidhw, bias, gamma, beta, *, c_true,
                         apply_post=True, out_dtype=jnp.float32, sub=256):
    """3x3x3 conv (stride 1, padding 1) + optional GELU + LayerNorm.

    x_ndhwc: [B, D, H, W, Ci]; returns [B, D, H, W, co_pad] in out_dtype.
    """
    B, D, H, W, Ci = x_ndhwc.shape
    Cout, Ci_w = w_oidhw.shape[0], w_oidhw.shape[1]
    co_pad = _round_up(max(Cout, 128), 128)
    Do, Ho, Wo = D, H, W
    Dp, Hp, Wp = D + 2, H + 2, W + 2
    M = Ho * Wp                              # output rows per depth plane
    R = _round_up(Hp * Wp + 2, 8)            # input rows per (padded) plane

    xp = jnp.pad(x_ndhwc.astype(jnp.bfloat16),
                 ((0, 0), (1, 1), (1, 1), (1, 1), (0, 0)))
    x2d = jnp.pad(xp.reshape(B, Dp, Hp * Wp, Ci),
                  ((0, 0), (0, 0), (0, R - Hp * Wp), (0, 0)))

    # [Cout, Ci_w, 3,3,3] -> [27, Ci, co_pad], tap order (kd, kh, kw).
    w = jnp.transpose(w_oidhw, (2, 3, 4, 1, 0)).reshape(27, Ci_w, Cout)
    w = jnp.pad(w.astype(jnp.bfloat16),
                ((0, 0), (0, Ci - Ci_w), (0, co_pad - Cout)))
    bias = jnp.pad(bias.astype(jnp.float32), ((0, 0), (0, co_pad - Cout)))
    gamma = jnp.pad(gamma.astype(jnp.float32), ((0, 0), (0, co_pad - Cout)))
    beta = jnp.pad(beta.astype(jnp.float32), ((0, 0), (0, co_pad - Cout)))

    kernel = functools.partial(_direct_conv_kernel, apply_post=apply_post,
                               c_true=c_true, Wp=Wp, sub=sub)
    ob = jnp.dtype(out_dtype).itemsize
    block_bytes = (3 * 2 * R * Ci * 2 + 27 * Ci * co_pad * 2 + 3 * co_pad * 4
                   + M * co_pad * 4 + 2 * M * co_pad * ob)
    cost = pl.CostEstimate(
        flops=2 * B * Do * 27 * M * Ci * co_pad,
        transcendentals=(B * Do * M * co_pad) if apply_post else 0,
        bytes_accessed=(3 * B * Dp * R * Ci * 2 + 27 * Ci * co_pad * 2
                        + 3 * co_pad * 4 + B * Do * M * co_pad * ob),
    )

    out = pl.pallas_call(
        kernel,
        out_shape=jax.ShapeDtypeStruct((B, Do, M, co_pad), out_dtype),
        grid_spec=pltpu.PrefetchScalarGridSpec(
            num_scalar_prefetch=0,
            grid=(B, Do),
            in_specs=[
                # three overlapping depth planes of the same padded volume
                pl.BlockSpec((None, None, R, Ci), lambda b, d: (b, d, 0, 0)),
                pl.BlockSpec((None, None, R, Ci), lambda b, d: (b, d + 1, 0, 0)),
                pl.BlockSpec((None, None, R, Ci), lambda b, d: (b, d + 2, 0, 0)),
                pl.BlockSpec((27, Ci, co_pad), lambda b, d: (0, 0, 0)),  # resident
                pl.BlockSpec((1, co_pad), lambda b, d: (0, 0)),
                pl.BlockSpec((1, co_pad), lambda b, d: (0, 0)),
                pl.BlockSpec((1, co_pad), lambda b, d: (0, 0)),
            ],
            out_specs=pl.BlockSpec((None, None, M, co_pad),
                                   lambda b, d: (b, d, 0, 0)),
            scratch_shapes=[pltpu.VMEM((M, co_pad), jnp.float32)],
        ),
        compiler_params=pltpu.CompilerParams(
            dimension_semantics=("parallel", "parallel"),
            vmem_limit_bytes=_vmem_limit(block_bytes),
        ),
        cost_estimate=cost,
    )(x2d, x2d, x2d, w, bias, gamma, beta)

    # [B, Do, Ho*Wp, co_pad] -> [B, Do, Ho, Wo, co_pad] (drop 2 junk cols/row)
    return out.reshape(B, Do, Ho, Wp, co_pad)[:, :, :, :Wo, :]


# ----------------------------------------------------------------------------
# Plain-JAX glue: im2col (strided conv1 only) and weight reshaping
# ----------------------------------------------------------------------------
def im2col_3d(x_ndhwc, ksize, stride, padding):
    """x: [B,D,H,W,C] -> ([B*Do*Ho*Wo, k^3*C], (Do,Ho,Wo)); order (kd,kh,kw,c)."""
    B, D, H, W, C = x_ndhwc.shape
    xp = jnp.pad(x_ndhwc, ((0, 0), (padding, padding), (padding, padding),
                           (padding, padding), (0, 0)))
    Do = (D + 2 * padding - ksize) // stride + 1
    Ho = (H + 2 * padding - ksize) // stride + 1
    Wo = (W + 2 * padding - ksize) // stride + 1
    cols = []
    for kd in range(ksize):
        for kh in range(ksize):
            for kw in range(ksize):
                cols.append(xp[:, kd:kd + Do * stride:stride,
                               kh:kh + Ho * stride:stride,
                               kw:kw + Wo * stride:stride, :])
    patches = jnp.concatenate(cols, axis=-1)
    return patches.reshape(B * Do * Ho * Wo, ksize ** 3 * C), (Do, Ho, Wo)


def conv_weight_to_mat(w_oidhw):
    """[Cout, Cin, kd, kh, kw] -> [kd*kh*kw*Cin, Cout] matching im2col order."""
    Cout, Cin, kd, kh, kw = w_oidhw.shape
    return jnp.transpose(w_oidhw, (2, 3, 4, 1, 0)).reshape(kd * kh * kw * Cin, Cout)


# ----------------------------------------------------------------------------
# `project` forward:  conv1 -> GELU -> LN -> conv2 (-> GELU -> LN unless last)
# ----------------------------------------------------------------------------
def project_forward(x_ncdhw, params, *, stride, padding, last=False):
    B = x_ncdhw.shape[0]
    C = params["w1"].shape[0]                               # out_dim
    x = jnp.transpose(x_ncdhw, (0, 2, 3, 4, 1)).astype(jnp.bfloat16)  # NDHWC

    # ---- conv1 + GELU + norm1 -------------------------------------------
    if stride == 1 and padding == 1:
        y = direct_conv3_gelu_ln(x, params["w1"], params["b1"], params["g1"],
                                 params["beta1"], c_true=C, apply_post=True,
                                 out_dtype=jnp.bfloat16)
    else:
        patches, (Do, Ho, Wo) = im2col_3d(x, 3, stride, padding)
        w1 = conv_weight_to_mat(params["w1"])
        y = fused_matmul_post(patches, w1, params["b1"], params["g1"],
                              params["beta1"], c_true=C, apply_post=True,
                              out_dtype=jnp.bfloat16)
        y = y.reshape(B, Do, Ho, Wo, -1)      # channels stay 128-padded

    # ---- conv2 (+ GELU + norm2 unless last): direct in-kernel conv -------
    out = direct_conv3_gelu_ln(y, params["w2"], params["b2"], params["g2"],
                               params["beta2"], c_true=C, apply_post=not last,
                               out_dtype=jnp.float32)
    out = out[..., :C]                                     # crop at module edge
    return jnp.transpose(out, (0, 4, 1, 2, 3))             # NDHWC -> NCDHW


# ----------------------------------------------------------------------------
# Precision-matched pure-JAX reference (bf16 matmul operands, f32 epilogue)
# ----------------------------------------------------------------------------
def _conv3d_bf16_ref(x, w, b, stride, padding):
    out = lax.conv_general_dilated(
        x.astype(jnp.bfloat16), w.astype(jnp.bfloat16),
        window_strides=(stride,) * 3, padding=[(padding, padding)] * 3,
        dimension_numbers=("NCDHW", "OIDHW", "NCDHW"),
        preferred_element_type=jnp.float32)
    return out + b[None, :, None, None, None]


def _ln_channels(x_ncdhw, gamma, beta):
    mean = jnp.mean(x_ncdhw, axis=1, keepdims=True)
    var = jnp.mean(jnp.square(x_ncdhw - mean), axis=1, keepdims=True)
    y = (x_ncdhw - mean) * lax.rsqrt(var + 1e-5)
    return y * gamma[None, :, None, None, None] + beta[None, :, None, None, None]


def project_ref(x, params, *, stride, padding, last=False):
    y = _conv3d_bf16_ref(x, params["w1"], params["b1"][0], stride, padding)
    y = jax.nn.gelu(y, approximate=False)
    y = _ln_channels(y, params["g1"][0], params["beta1"][0])
    y = y.astype(jnp.bfloat16).astype(jnp.float32)   # bf16 inter-conv activation
    y = _conv3d_bf16_ref(y, params["w2"], params["b2"][0], 1, 1)
    if not last:
        y = jax.nn.gelu(y, approximate=False)
        y = _ln_channels(y, params["g2"][0], params["beta2"][0])
    return y


# ----------------------------------------------------------------------------
if __name__ == "__main__":
    key = jax.random.PRNGKey(0)
    B, Cin, Cout = 2, 4, 8
    D = H = W = 8
    stride, padding = 2, 1

    ks = jax.random.split(key, 7)
    x = jax.random.normal(ks[0], (B, Cin, D, H, W), jnp.float32)

    params = {
        # Conv3d(in_dim, out_dim, 3, stride, padding)
        "w1": jax.random.normal(ks[1], (Cout, Cin, 3, 3, 3), jnp.float32) * 0.1,
        "b1": jax.random.normal(ks[2], (1, Cout), jnp.float32) * 0.1,
        # LayerNorm(out_dim)
        "g1": jnp.ones((1, Cout), jnp.float32) * 1.1,
        "beta1": jnp.full((1, Cout), 0.05, jnp.float32),
        # Conv3d(out_dim, out_dim, 3, 1, 1)
        "w2": jax.random.normal(ks[3], (Cout, Cout, 3, 3, 3), jnp.float32) * 0.1,
        "b2": jax.random.normal(ks[4], (1, Cout), jnp.float32) * 0.1,
        # LayerNorm(out_dim)
        "g2": jnp.ones((1, Cout), jnp.float32) * 0.9,
        "beta2": jnp.full((1, Cout), -0.03, jnp.float32),
    }

    project_fn = jax.jit(functools.partial(
        project_forward, stride=stride, padding=padding, last=False))
    out = jax.block_until_ready(project_fn(x, params))

    ref = jax.block_until_ready(
        project_ref(x, params, stride=stride, padding=padding, last=False))

    assert out.shape == (B, Cout, 4, 4, 4), out.shape
    assert jnp.allclose(out, ref, atol=1e-2, rtol=1e-2), float(
        jnp.max(jnp.abs(out - ref)))
    print("KERNEL_OK")
</pallas_src>

<mosaic_0001>
module attributes {stable_mosaic.version = 11 : i64} {
  func.func @_matmul_post_kernel(%arg0: i32, %arg1: memref<256x128xbf16, #tpu.memory_space<vmem>>, %arg2: memref<128x128xbf16, #tpu.memory_space<vmem>>, %arg3: memref<1x128xf32, #tpu.memory_space<vmem>>, %arg4: memref<1x128xf32, #tpu.memory_space<vmem>>, %arg5: memref<1x128xf32, #tpu.memory_space<vmem>>, %arg6: memref<256x128xbf16, #tpu.memory_space<vmem>>) attributes {dimension_semantics = [#tpu.dimension_semantics<parallel>], iteration_bounds = array<i64: 1>, scalar_prefetch = 0 : i64, scratch_operands = 0 : i64, tpu.core_type = #tpu.core_type<tc>, window_params = [{transform_indices = @transform_0, window_bounds = array<i64: 256, 128>}, {pipeline_mode = #tpu.pipeline_mode<synchronous>, transform_indices = @transform_1, window_bounds = array<i64: 128, 128>}, {pipeline_mode = #tpu.pipeline_mode<synchronous>, transform_indices = @transform_2, window_bounds = array<i64: 1, 128>}, {pipeline_mode = #tpu.pipeline_mode<synchronous>, transform_indices = @transform_3, window_bounds = array<i64: 1, 128>}, {pipeline_mode = #tpu.pipeline_mode<synchronous>, transform_indices = @transform_4, window_bounds = array<i64: 1, 128>}, {transform_indices = @transform_5, window_bounds = array<i64: 256, 128>}]} {
    %c0 = arith.constant 0 : index
    %c0_0 = arith.constant 0 : index
    %0 = vector.load %arg2[%c0, %c0_0] : memref<128x128xbf16, #tpu.memory_space<vmem>>, vector<128x128xbf16>
    %c0_1 = arith.constant 0 : index
    %c0_2 = arith.constant 0 : index
    %1 = vector.load %arg3[%c0_1, %c0_2] : memref<1x128xf32, #tpu.memory_space<vmem>>, vector<1x128xf32>
    %c0_3 = arith.constant 0 : index
    %c0_4 = arith.constant 0 : index
    %2 = vector.load %arg4[%c0_3, %c0_4] : memref<1x128xf32, #tpu.memory_space<vmem>>, vector<1x128xf32>
    %c0_5 = arith.constant 0 : index
    %c0_6 = arith.constant 0 : index
    %3 = vector.load %arg5[%c0_5, %c0_6] : memref<1x128xf32, #tpu.memory_space<vmem>>, vector<1x128xf32>
    %c0_7 = arith.constant 0 : index
    %c0_8 = arith.constant 0 : index
    %4 = vector.load %arg1[%c0_7, %c0_8] : memref<256x128xbf16, #tpu.memory_space<vmem>>, vector<256x128xbf16>
    %cst = arith.constant dense<0.000000e+00> : vector<256x128xf32>
    %5 = tpu.matmul %4, %0, %cst {dimension_numbers = #tpu.dot_dimension_numbers<[1], [0], [0], [1], [0, 0, 1, 1], [], []>} : vector<256x128xbf16>, vector<128x128xbf16>, vector<256x128xf32> -> vector<256x128xf32>
    %6 = vector.broadcast %1 : vector<1x128xf32> to vector<256x128xf32>
    %7 = arith.addf %5, %6 : vector<256x128xf32>
    %cst_9 = arith.constant 5.000000e-01 : f32
    %8 = vector.broadcast %cst_9 : f32 to vector<256x128xf32>
    %9 = arith.mulf %8, %7 : vector<256x128xf32>
    %cst_10 = arith.constant 0.707106769 : f32
    %10 = vector.broadcast %cst_10 : f32 to vector<256x128xf32>
    %11 = arith.mulf %7, %10 : vector<256x128xf32>
    %12 = math.erf %11 : vector<256x128xf32>
    %cst_11 = arith.constant 1.000000e+00 : f32
    %13 = vector.broadcast %cst_11 : f32 to vector<256x128xf32>
    %14 = arith.addf %13, %12 : vector<256x128xf32>
    %15 = arith.mulf %9, %14 : vector<256x128xf32>
    %16 = tpu.iota {dimensions = array<i32: 1>} : vector<1x128xi32>
    %c8_i32 = arith.constant 8 : i32
    %17 = vector.broadcast %c8_i32 : i32 to vector<1x128xi32>
    %18 = arith.cmpi slt, %16, %17 : vector<1x128xi32>
    %cst_12 = arith.constant 0.000000e+00 : f32
    %19 = vector.shape_cast %18 : vector<1x128xi1> to vector<1x128xi1>
    %20 = vector.broadcast %19 : vector<1x128xi1> to vector<256x128xi1>
    %21 = vector.broadcast %cst_12 : f32 to vector<256x128xf32>
    %22 = arith.select %20, %15, %21 : vector<256x128xi1>, vector<256x128xf32>
    %cst_13 = arith.constant dense<0.000000e+00> : vector<256xf32>
    %23 = vector.multi_reduction <add>, %22, %cst_13 [1] : vector<256x128xf32> to vector<256xf32>
    %24 = vector.shape_cast %23 : vector<256xf32> to vector<256x1xf32>
    %25 = arith.mulf %22, %22 : vector<256x128xf32>
    %cst_14 = arith.constant dense<0.000000e+00> : vector<256xf32>
    %26 = vector.multi_reduction <add>, %25, %cst_14 [1] : vector<256x128xf32> to vector<256xf32>
    %27 = vector.shape_cast %26 : vector<256xf32> to vector<256x1xf32>
    %cst_15 = arith.constant 1.250000e-01 : f32
    %28 = vector.broadcast %cst_15 : f32 to vector<256x1xf32>
    %29 = arith.mulf %24, %28 : vector<256x1xf32>
    %cst_16 = arith.constant 1.250000e-01 : f32
    %30 = vector.broadcast %cst_16 : f32 to vector<256x1xf32>
    %31 = arith.mulf %27, %30 : vector<256x1xf32>
    %32 = arith.mulf %29, %29 : vector<256x1xf32>
    %33 = arith.subf %31, %32 : vector<256x1xf32>
    %cst_17 = arith.constant 0.000000e+00 : f32
    %34 = vector.broadcast %cst_17 : f32 to vector<256x1xf32>
    %35 = arith.maximumf %33, %34 : vector<256x1xf32>
    %36 = vector.broadcast %29 : vector<256x1xf32> to vector<256x128xf32>
    %37 = arith.subf %15, %36 : vector<256x128xf32>
    %cst_18 = arith.constant 9.99999974E-6 : f32
    %38 = vector.broadcast %cst_18 : f32 to vector<256x1xf32>
    %39 = arith.addf %35, %38 : vector<256x1xf32>
    %40 = math.rsqrt %39 : vector<256x1xf32>
    %41 = vector.broadcast %40 : vector<256x1xf32> to vector<256x128xf32>
    %42 = arith.mulf %37, %41 : vector<256x128xf32>
    %43 = vector.broadcast %2 : vector<1x128xf32> to vector<256x128xf32>
    %44 = arith.mulf %42, %43 : vector<256x128xf32>
    %45 = vector.broadcast %3 : vector<1x128xf32> to vector<256x128xf32>
    %46 = arith.addf %44, %45 : vector<256x128xf32>
    %47 = arith.truncf %46 : vector<256x128xf32> to vector<256x128xbf16>
    %c0_19 = arith.constant 0 : index
    %c0_20 = arith.constant 0 : index
    %48 = vector.load %arg6[%c0_19, %c0_20] : memref<256x128xbf16, #tpu.memory_space<vmem>>, vector<256x128xbf16>
    tpu.vector_store %arg6[%c0_19, %c0_20], %47 {strides = array<i32>} : memref<256x128xbf16, #tpu.memory_space<vmem>>, vector<256x128xbf16>,
    return
  }
  func.func @transform_0(%arg0: i32) -> (i32, i32) {
    %c0_i32 = arith.constant 0 : i32
    %c0_i32_0 = arith.constant 0 : i32
    return %arg0, %c0_i32 : i32, i32
  }
  func.func @transform_1(%arg0: i32) -> (i32, i32) {
    %c0_i32 = arith.constant 0 : i32
    %c0_i32_0 = arith.constant 0 : i32
    %c0_i32_1 = arith.constant 0 : i32
    return %c0_i32, %c0_i32_0 : i32, i32
  }
  func.func @transform_2(%arg0: i32) -> (i32, i32) {
    %c0_i32 = arith.constant 0 : i32
    %c0_i32_0 = arith.constant 0 : i32
    %c0_i32_1 = arith.constant 0 : i32
    return %c0_i32, %c0_i32_0 : i32, i32
  }
  func.func @transform_3(%arg0: i32) -> (i32, i32) {
    %c0_i32 = arith.constant 0 : i32
    %c0_i32_0 = arith.constant 0 : i32
    %c0_i32_1 = arith.constant 0 : i32
    return %c0_i32, %c0_i32_0 : i32, i32
  }
  func.func @transform_4(%arg0: i32) -> (i32, i32) {
    %c0_i32 = arith.constant 0 : i32
    %c0_i32_0 = arith.constant 0 : i32
    %c0_i32_1 = arith.constant 0 : i32
    return %c0_i32, %c0_i32_0 : i32, i32
  }
  func.func @transform_5(%arg0: i32) -> (i32, i32) {
    %c0_i32 = arith.constant 0 : i32
    %c0_i32_0 = arith.constant 0 : i32
    return %arg0, %c0_i32 : i32, i32
  }
}

module attributes {stable_mosaic.version = 11 : i64} {
  func.func @_direct_conv_kernel(%arg0: i32, %arg1: i32, %arg2: memref<1x1x40x128xbf16, #tpu.memory_space<vmem>>, %arg3: memref<1x1x40x128xbf16, #tpu.memory_space<vmem>>, %arg4: memref<1x1x40x128xbf16, #tpu.memory_space<vmem>>, %arg5: memref<27x128x128xbf16, #tpu.memory_space<vmem>>, %arg6: memref<1x128xf32, #tpu.memory_space<vmem>>, %arg7: memref<1x128xf32, #tpu.memory_space<vmem>>, %arg8: memref<1x128xf32, #tpu.memory_space<vmem>>, %arg9: memref<1x1x24x128xf32, #tpu.memory_space<vmem>>, %arg10: memref<24x128xf32, #tpu.memory_space<vmem>>) attributes {dimension_semantics = [#tpu.dimension_semantics<parallel>, #tpu.dimension_semantics<parallel>], iteration_bounds = array<i64: 2, 4>, scalar_prefetch = 0 : i64, scratch_operands = 1 : i64, tpu.core_type = #tpu.core_type<tc>, window_params = [{transform_indices = @transform_0, window_bounds = array<i64: 1, 1, 40, 128>}, {transform_indices = @transform_1, window_bounds = array<i64: 1, 1, 40, 128>}, {transform_indices = @transform_2, window_bounds = array<i64: 1, 1, 40, 128>}, {pipeline_mode = #tpu.pipeline_mode<synchronous>, transform_indices = @transform_3, window_bounds = array<i64: 27, 128, 128>}, {pipeline_mode = #tpu.pipeline_mode<synchronous>, transform_indices = @transform_4, window_bounds = array<i64: 1, 128>}, {pipeline_mode = #tpu.pipeline_mode<synchronous>, transform_indices = @transform_5, window_bounds = array<i64: 1, 128>}, {pipeline_mode = #tpu.pipeline_mode<synchronous>, transform_indices = @transform_6, window_bounds = array<i64: 1, 128>}, {transform_indices = @transform_7, window_bounds = array<i64: 1, 1, 24, 128>}]} {
    %cst = arith.constant 0.000000e+00 : f32
    %0 = vector.broadcast %cst : f32 to vector<24x128xf32>
    %c0 = arith.constant 0 : index
    %c0_0 = arith.constant 0 : index
    %1 = vector.load %arg10[%c0, %c0_0] : memref<24x128xf32, #tpu.memory_space<vmem>>, vector<24x128xf32>
    tpu.vector_store %arg10[%c0, %c0_0], %0 {strides = array<i32>} : memref<24x128xf32, #tpu.memory_space<vmem>>, vector<24x128xf32>,
    %c0_1 = arith.constant 0 : index
    %c0_2 = arith.constant 0 : index
    %2 = vector.load %arg10[%c0_1, %c0_2] : memref<24x128xf32, #tpu.memory_space<vmem>>, vector<24x128xf32>
    %c0_3 = arith.constant 0 : index
    %c0_4 = arith.constant 0 : index
    %c0_5 = arith.constant 0 : index
    %c0_6 = arith.constant 0 : index
    %3 = vector.load %arg2[%c0_3, %c0_4, %c0_5, %c0_6] : memref<1x1x40x128xbf16, #tpu.memory_space<vmem>>, vector<1x1x24x128xbf16>
    %4 = vector.shape_cast %3 : vector<1x1x24x128xbf16> to vector<24x128xbf16>
    %c0_7 = arith.constant 0 : index
    %c0_8 = arith.constant 0 : index
    %c0_9 = arith.constant 0 : index
    %5 = vector.load %arg5[%c0_7, %c0_8, %c0_9] : memref<27x128x128xbf16, #tpu.memory_space<vmem>>, vector<1x128x128xbf16>
    %6 = vector.shape_cast %5 : vector<1x128x128xbf16> to vector<128x128xbf16>
    %cst_10 = arith.constant dense<0.000000e+00> : vector<24x128xf32>
    %7 = tpu.matmul %4, %6, %cst_10 {dimension_numbers = #tpu.dot_dimension_numbers<[1], [0], [0], [1], [0, 0, 1, 1], [], []>} : vector<24x128xbf16>, vector<128x128xbf16>, vector<24x128xf32> -> vector<24x128xf32>
    %8 = arith.addf %2, %7 : vector<24x128xf32>
    %c0_11 = arith.constant 0 : index
    %c0_12 = arith.constant 0 : index
    %9 = vector.load %arg10[%c0_11, %c0_12] : memref<24x128xf32, #tpu.memory_space<vmem>>, vector<24x128xf32>
    tpu.vector_store %arg10[%c0_11, %c0_12], %8 {strides = array<i32>} : memref<24x128xf32, #tpu.memory_space<vmem>>, vector<24x128xf32>,
    %c0_13 = arith.constant 0 : index
    %c0_14 = arith.constant 0 : index
    %10 = vector.load %arg10[%c0_13, %c0_14] : memref<24x128xf32, #tpu.memory_space<vmem>>, vector<24x128xf32>
    %c0_15 = arith.constant 0 : index
    %c0_16 = arith.constant 0 : index
    %c1 = arith.constant 1 : index
    %c0_17 = arith.constant 0 : index
    %11 = vector.load %arg2[%c0_15, %c0_16, %c1, %c0_17] : memref<1x1x40x128xbf16, #tpu.memory_space<vmem>>, vector<1x1x24x128xbf16>
    %12 = vector.shape_cast %11 : vector<1x1x24x128xbf16> to vector<24x128xbf16>
    %c1_18 = arith.constant 1 : index
    %c0_19 = arith.constant 0 : index
    %c0_20 = arith.constant 0 : index
    %13 = vector.load %arg5[%c1_18, %c0_19, %c0_20] : memref<27x128x128xbf16, #tpu.memory_space<vmem>>, vector<1x128x128xbf16>
    %14 = vector.shape_cast %13 : vector<1x128x128xbf16> to vector<128x128xbf16>
    %cst_21 = arith.constant dense<0.000000e+00> : vector<24x128xf32>
    %15 = tpu.matmul %12, %14, %cst_21 {dimension_numbers = #tpu.dot_dimension_numbers<[1], [0], [0], [1], [0, 0, 1, 1], [], []>} : vector<24x128xbf16>, vector<128x128xbf16>, vector<24x128xf32> -> vector<24x128xf32>
    %16 = arith.addf %10, %15 : vector<24x128xf32>
    %c0_22 = arith.constant 0 : index
    %c0_23 = arith.constant 0 : index
    %17 = vector.load %arg10[%c0_22, %c0_23] : memref<24x128xf32, #tpu.memory_space<vmem>>, vector<24x128xf32>
    tpu.vector_store %arg10[%c0_22, %c0_23], %16 {strides = array<i32>} : memref<24x128xf32, #tpu.memory_space<vmem>>, vector<24x128xf32>,
    %c0_24 = arith.constant 0 : index
    %c0_25 = arith.constant 0 : index
    %18 = vector.load %arg10[%c0_24, %c0_25] : memref<24x128xf32, #tpu.memory_space<vmem>>, vector<24x128xf32>
    %c0_26 = arith.constant 0 : index
    %c0_27 = arith.constant 0 : index
    %c2 = arith.constant 2 : index
    %c0_28 = arith.constant 0 : index
    %19 = vector.load %arg2[%c0_26, %c0_27, %c2, %c0_28] : memref<1x1x40x128xbf16, #tpu.memory_space<vmem>>, vector<1x1x24x128xbf16>
    %20 = vector.shape_cast %19 : vector<1x1x24x128xbf16> to vector<24x128xbf16>
    %c2_29 = arith.constant 2 : index
    %c0_30 = arith.constant 0 : index
    %c0_31 = arith.constant 0 : index
    %21 = vector.load %arg5[%c2_29, %c0_30, %c0_31] : memref<27x128x128xbf16, #tpu.memory_space<vmem>>, vector<1x128x128xbf16>
    %22 = vector.shape_cast %21 : vector<1x128x128xbf16> to vector<128x128xbf16>
    %cst_32 = arith.constant dense<0.000000e+00> : vector<24x128xf32>
    %23 = tpu.matmul %20, %22, %cst_32 {dimension_numbers = #tpu.dot_dimension_numbers<[1], [0], [0], [1], [0, 0, 1, 1], [], []>} : vector<24x128xbf16>, vector<128x128xbf16>, vector<24x128xf32> -> vector<24x128xf32>
    %24 = arith.addf %18, %23 : vector<24x128xf32>
    %c0_33 = arith.constant 0 : index
    %c0_34 = arith.constant 0 : index
    %25 = vector.load %arg10[%c0_33, %c0_34] : memref<24x128xf32, #tpu.memory_space<vmem>>, vector<24x128xf32>
    tpu.vector_store %arg10[%c0_33, %c0_34], %24 {strides = array<i32>} : memref<24x128xf32, #tpu.memory_space<vmem>>, vector<24x128xf32>,
    %c0_35 = arith.constant 0 : index
    %c0_36 = arith.constant 0 : index
    %26 = vector.load %arg10[%c0_35, %c0_36] : memref<24x128xf32, #tpu.memory_space<vmem>>, vector<24x128xf32>
    %c0_37 = arith.constant 0 : index
    %c0_38 = arith.constant 0 : index
    %c6 = arith.constant 6 : index
    %c0_39 = arith.constant 0 : index
    %27 = vector.load %arg2[%c0_37, %c0_38, %c6, %c0_39] : memref<1x1x40x128xbf16, #tpu.memory_space<vmem>>, vector<1x1x24x128xbf16>
    %28 = vector.shape_cast %27 : vector<1x1x24x128xbf16> to vector<24x128xbf16>
    %c3 = arith.constant 3 : index
    %c0_40 = arith.constant 0 : index
    %c0_41 = arith.constant 0 : index
    %29 = vector.load %arg5[%c3, %c0_40, %c0_41] : memref<27x128x128xbf16, #tpu.memory_space<vmem>>, vector<1x128x128xbf16>
    %30 = vector.shape_cast %29 : vector<1x128x128xbf16> to vector<128x128xbf16>
    %cst_42 = arith.constant dense<0.000000e+00> : vector<24x128xf32>
    %31 = tpu.matmul %28, %30, %cst_42 {dimension_numbers = #tpu.dot_dimension_numbers<[1], [0], [0], [1], [0, 0, 1, 1], [], []>} : vector<24x128xbf16>, vector<128x128xbf16>, vector<24x128xf32> -> vector<24x128xf32>
    %32 = arith.addf %26, %31 : vector<24x128xf32>
    %c0_43 = arith.constant 0 : index
    %c0_44 = arith.constant 0 : index
    %33 = vector.load %arg10[%c0_43, %c0_44] : memref<24x128xf32, #tpu.memory_space<vmem>>, vector<24x128xf32>
    tpu.vector_store %arg10[%c0_43, %c0_44], %32 {strides = array<i32>} : memref<24x128xf32, #tpu.memory_space<vmem>>, vector<24x128xf32>,
    %c0_45 = arith.constant 0 : index
    %c0_46 = arith.constant 0 : index
    %34 = vector.load %arg10[%c0_45, %c0_46] : memref<24x128xf32, #tpu.memory_space<vmem>>, vector<24x128xf32>
    %c0_47 = arith.constant 0 : index
    %c0_48 = arith.constant 0 : index
    %c7 = arith.constant 7 : index
    %c0_49 = arith.constant 0 : index
    %35 = vector.load %arg2[%c0_47, %c0_48, %c7, %c0_49] : memref<1x1x40x128xbf16, #tpu.memory_space<vmem>>, vector<1x1x24x128xbf16>
    %36 = vector.shape_cast %35 : vector<1x1x24x128xbf16> to vector<24x128xbf16>
    %c4 = arith.constant 4 : index
    %c0_50 = arith.constant 0 : index
    %c0_51 = arith.constant 0 : index
    %37 = vector.load %arg5[%c4, %c0_50, %c0_51] : memref<27x128x128xbf16, #tpu.memory_space<vmem>>, vector<1x128x128xbf16>
    %38 = vector.shape_cast %37 : vector<1x128x128xbf16> to vector<128x128xbf16>
    %cst_52 = arith.constant dense<0.000000e+00> : vector<24x128xf32>
    %39 = tpu.matmul %36, %38, %cst_52 {dimension_numbers = #tpu.dot_dimension_numbers<[1], [0], [0], [1], [0, 0, 1, 1], [], []>} : vector<24x128xbf16>, vector<128x128xbf16>, vector<24x128xf32> -> vector<24x128xf32>
    %40 = arith.addf %34, %39 : vector<24x128xf32>
    %c0_53 = arith.constant 0 : index
    %c0_54 = arith.constant 0 : index
    %41 = vector.load %arg10[%c0_53, %c0_54] : memref<24x128xf32, #tpu.memory_space<vmem>>, vector<24x128xf32>
    tpu.vector_store %arg10[%c0_53, %c0_54], %40 {strides = array<i32>} : memref<24x128xf32, #tpu.memory_space<vmem>>, vector<24x128xf32>,
    %c0_55 = arith.constant 0 : index
    %c0_56 = arith.constant 0 : index
    %42 = vector.load %arg10[%c0_55, %c0_56] : memref<24x128xf32, #tpu.memory_space<vmem>>, vector<24x128xf32>
    %c0_57 = arith.constant 0 : index
    %c0_58 = arith.constant 0 : index
    %c8 = arith.constant 8 : index
    %c0_59 = arith.constant 0 : index
    %43 = vector.load %arg2[%c0_57, %c0_58, %c8, %c0_59] : memref<1x1x40x128xbf16, #tpu.memory_space<vmem>>, vector<1x1x24x128xbf16>
    %44 = vector.shape_cast %43 : vector<1x1x24x128xbf16> to vector<24x128xbf16>
    %c5 = arith.constant 5 : index
    %c0_60 = arith.constant 0 : index
    %c0_61 = arith.constant 0 : index
    %45 = vector.load %arg5[%c5, %c0_60, %c0_61] : memref<27x128x128xbf16, #tpu.memory_space<vmem>>, vector<1x128x128xbf16>
    %46 = vector.shape_cast %45 : vector<1x128x128xbf16> to vector<128x128xbf16>
    %cst_62 = arith.constant dense<0.000000e+00> : vector<24x128xf32>
    %47 = tpu.matmul %44, %46, %cst_62 {dimension_numbers = #tpu.dot_dimension_numbers<[1], [0], [0], [1], [0, 0, 1, 1], [], []>} : vector<24x128xbf16>, vector<128x128xbf16>, vector<24x128xf32> -> vector<24x128xf32>
    %48 = arith.addf %42, %47 : vector<24x128xf32>
    %c0_63 = arith.constant 0 : index
    %c0_64 = arith.constant 0 : index
    %49 = vector.load %arg10[%c0_63, %c0_64] : memref<24x128xf32, #tpu.memory_space<vmem>>, vector<24x128xf32>
    tpu.vector_store %arg10[%c0_63, %c0_64], %48 {strides = array<i32>} : memref<24x128xf32, #tpu.memory_space<vmem>>, vector<24x128xf32>,
    %c0_65 = arith.constant 0 : index
    %c0_66 = arith.constant 0 : index
    %50 = vector.load %arg10[%c0_65, %c0_66] : memref<24x128xf32, #tpu.memory_space<vmem>>, vector<24x128xf32>
    %c0_67 = arith.constant 0 : index
    %c0_68 = arith.constant 0 : index
    %c12 = arith.constant 12 : index
    %c0_69 = arith.constant 0 : index
    %51 = vector.load %arg2[%c0_67, %c0_68, %c12, %c0_69] : memref<1x1x40x128xbf16, #tpu.memory_space<vmem>>, vector<1x1x24x128xbf16>
    %52 = vector.shape_cast %51 : vector<1x1x24x128xbf16> to vector<24x128xbf16>
    %c6_70 = arith.constant 6 : index
    %c0_71 = arith.constant 0 : index
    %c0_72 = arith.constant 0 : index
    %53 = vector.load %arg5[%c6_70, %c0_71, %c0_72] : memref<27x128x128xbf16, #tpu.memory_space<vmem>>, vector<1x128x128xbf16>
    %54 = vector.shape_cast %53 : vector<1x128x128xbf16> to vector<128x128xbf16>
    %cst_73 = arith.constant dense<0.000000e+00> : vector<24x128xf32>
    %55 = tpu.matmul %52, %54, %cst_73 {dimension_numbers = #tpu.dot_dimension_numbers<[1], [0], [0], [1], [0, 0, 1, 1], [], []>} : vector<24x128xbf16>, vector<128x128xbf16>, vector<24x128xf32> -> vector<24x128xf32>
    %56 = arith.addf %50, %55 : vector<24x128xf32>
    %c0_74 = arith.constant 0 : index
    %c0_75 = arith.constant 0 : index
    %57 = vector.load %arg10[%c0_74, %c0_75] : memref<24x128xf32, #tpu.memory_space<vmem>>, vector<24x128xf32>
    tpu.vector_store %arg10[%c0_74, %c0_75], %56 {strides = array<i32>} : memref<24x128xf32, #tpu.memory_space<vmem>>, vector<24x128xf32>,
    %c0_76 = arith.constant 0 : index
    %c0_77 = arith.constant 0 : index
    %58 = vector.load %arg10[%c0_76, %c0_77] : memref<24x128xf32, #tpu.memory_space<vmem>>, vector<24x128xf32>
    %c0_78 = arith.constant 0 : index
    %c0_79 = arith.constant 0 : index
    %c13 = arith.constant 13 : index
    %c0_80 = arith.constant 0 : index
    %59 = vector.load %arg2[%c0_78, %c0_79, %c13, %c0_80] : memref<1x1x40x128xbf16, #tpu.memory_space<vmem>>, vector<1x1x24x128xbf16>
    %60 = vector.shape_cast %59 : vector<1x1x24x128xbf16> to vector<24x128xbf16>
    %c7_81 = arith.constant 7 : index
    %c0_82 = arith.constant 0 : index
    %c0_83 = arith.constant 0 : index
    %61 = vector.load %arg5[%c7_81, %c0_82, %c0_83] : memref<27x128x128xbf16, #tpu.memory_space<vmem>>, vector<1x128x128xbf16>
    %62 = vector.shape_cast %61 : vector<1x128x128xbf16> to vector<128x128xbf16>
    %cst_84 = arith.constant dense<0.000000e+00> : vector<24x128xf32>
    %63 = tpu.matmul %60, %62, %cst_84 {dimension_numbers = #tpu.dot_dimension_numbers<[1], [0], [0], [1], [0, 0, 1, 1], [], []>} : vector<24x128xbf16>, vector<128x128xbf16>, vector<24x128xf32> -> vector<24x128xf32>
    %64 = arith.addf %58, %63 : vector<24x128xf32>
    %c0_85 = arith.constant 0 : index
    %c0_86 = arith.constant 0 : index
    %65 = vector.load %arg10[%c0_85, %c0_86] : memref<24x128xf32, #tpu.memory_space<vmem>>, vector<24x128xf32>
    tpu.vector_store %arg10[%c0_85, %c0_86], %64 {strides = array<i32>} : memref<24x128xf32, #tpu.memory_space<vmem>>, vector<24x128xf32>,
    %c0_87 = arith.constant 0 : index
    %c0_88 = arith.constant 0 : index
    %66 = vector.load %arg10[%c0_87, %c0_88] : memref<24x128xf32, #tpu.memory_space<vmem>>, vector<24x128xf32>
    %c0_89 = arith.constant 0 : index
    %c0_90 = arith.constant 0 : index
    %c14 = arith.constant 14 : index
    %c0_91 = arith.constant 0 : index
    %67 = vector.load %arg2[%c0_89, %c0_90, %c14, %c0_91] : memref<1x1x40x128xbf16, #tpu.memory_space<vmem>>, vector<1x1x24x128xbf16>
    %68 = vector.shape_cast %67 : vector<1x1x24x128xbf16> to vector<24x128xbf16>
    %c8_92 = arith.constant 8 : index
    %c0_93 = arith.constant 0 : index
    %c0_94 = arith.constant 0 : index
    %69 = vector.load %arg5[%c8_92, %c0_93, %c0_94] : memref<27x128x128xbf16, #tpu.memory_space<vmem>>, vector<1x128x128xbf16>
    %70 = vector.shape_cast %69 : vector<1x128x128xbf16> to vector<128x128xbf16>
    %cst_95 = arith.constant dense<0.000000e+00> : vector<24x128xf32>
    %71 = tpu.matmul %68, %70, %cst_95 {dimension_numbers = #tpu.dot_dimension_numbers<[1], [0], [0], [1], [0, 0, 1, 1], [], []>} : vector<24x128xbf16>, vector<128x128xbf16>, vector<24x128xf32> -> vector<24x128xf32>
    %72 = arith.addf %66, %71 : vector<24x128xf32>
    %c0_96 = arith.constant 0 : index
    %c0_97 = arith.constant 0 : index
    %73 = vector.load %arg10[%c0_96, %c0_97] : memref<24x128xf32, #tpu.memory_space<vmem>>, vector<24x128xf32>
    tpu.vector_store %arg10[%c0_96, %c0_97], %72 {strides = array<i32>} : memref<24x128xf32, #tpu.memory_space<vmem>>, vector<24x128xf32>,
    %c0_98 = arith.constant 0 : index
    %c0_99 = arith.constant 0 : index
    %74 = vector.load %arg10[%c0_98, %c0_99] : memref<24x128xf32, #tpu.memory_space<vmem>>, vector<24x128xf32>
    %c0_100 = arith.constant 0 : index
    %c0_101 = arith.constant 0 : index
    %c0_102 = arith.constant 0 : index
    %c0_103 = arith.constant 0 : index
    %75 = vector.load %arg3[%c0_100, %c0_101, %c0_102, %c0_103] : memref<1x1x40x128xbf16, #tpu.memory_space<vmem>>, vector<1x1x24x128xbf16>
    %76 = vector.shape_cast %75 : vector<1x1x24x128xbf16> to vector<24x128xbf16>
    %c9 = arith.constant 9 : index
    %c0_104 = arith.constant 0 : index
    %c0_105 = arith.constant 0 : index
    %77 = vector.load %arg5[%c9, %c0_104, %c0_105] : memref<27x128x128xbf16, #tpu.memory_space<vmem>>, vector<1x128x128xbf16>
    %78 = vector.shape_cast %77 : vector<1x128x128xbf16> to vector<128x128xbf16>
    %cst_106 = arith.constant dense<0.000000e+00> : vector<24x128xf32>
    %79 = tpu.matmul %76, %78, %cst_106 {dimension_numbers = #tpu.dot_dimension_numbers<[1], [0], [0], [1], [0, 0, 1, 1], [], []>} : vector<24x128xbf16>, vector<128x128xbf16>, vector<24x128xf32> -> vector<24x128xf32>
    %80 = arith.addf %74, %79 : vector<24x128xf32>
    %c0_107 = arith.constant 0 : index
    %c0_108 = arith.constant 0 : index
    %81 = vector.load %arg10[%c0_107, %c0_108] : memref<24x128xf32, #tpu.memory_space<vmem>>, vector<24x128xf32>
    tpu.vector_store %arg10[%c0_107, %c0_108], %80 {strides = array<i32>} : memref<24x128xf32, #tpu.memory_space<vmem>>, vector<24x128xf32>,
    %c0_109 = arith.constant 0 : index
    %c0_110 = arith.constant 0 : index
    %82 = vector.load %arg10[%c0_109, %c0_110] : memref<24x128xf32, #tpu.memory_space<vmem>>, vector<24x128xf32>
    %c0_111 = arith.constant 0 : index
    %c0_112 = arith.constant 0 : index
    %c1_113 = arith.constant 1 : index
    %c0_114 = arith.constant 0 : index
    %83 = vector.load %arg3[%c0_111, %c0_112, %c1_113, %c0_114] : memref<1x1x40x128xbf16, #tpu.memory_space<vmem>>, vector<1x1x24x128xbf16>
    %84 = vector.shape_cast %83 : vector<1x1x24x128xbf16> to vector<24x128xbf16>
    %c10 = arith.constant 10 : index
    %c0_115 = arith.constant 0 : index
    %c0_116 = arith.constant 0 : index
    %85 = vector.load %arg5[%c10, %c0_115, %c0_116] : memref<27x128x128xbf16, #tpu.memory_space<vmem>>, vector<1x128x128xbf16>
    %86 = vector.shape_cast %85 : vector<1x128x128xbf16> to vector<128x128xbf16>
    %cst_117 = arith.constant dense<0.000000e+00> : vector<24x128xf32>
    %87 = tpu.matmul %84, %86, %cst_117 {dimension_numbers = #tpu.dot_dimension_numbers<[1], [0], [0], [1], [0, 0, 1, 1], [], []>} : vector<24x128xbf16>, vector<128x128xbf16>, vector<24x128xf32> -> vector<24x128xf32>
    %88 = arith.addf %82, %87 : vector<24x128xf32>
    %c0_118 = arith.constant 0 : index
    %c0_119 = arith.constant 0 : index
    %89 = vector.load %arg10[%c0_118, %c0_119] : memref<24x128xf32, #tpu.memory_space<vmem>>, vector<24x128xf32>
    tpu.vector_store %arg10[%c0_118, %c0_119], %88 {strides = array<i32>} : memref<24x128xf32, #tpu.memory_space<vmem>>, vector<24x128xf32>,
    %c0_120 = arith.constant 0 : index
    %c0_121 = arith.constant 0 : index
    %90 = vector.load %arg10[%c0_120, %c0_121] : memref<24x128xf32, #tpu.memory_space<vmem>>, vector<24x128xf32>
    %c0_122 = arith.constant 0 : index
    %c0_123 = arith.constant 0 : index
    %c2_124 = arith.constant 2 : index
    %c0_125 = arith.constant 0 : index
    %91 = vector.load %arg3[%c0_122, %c0_123, %c2_124, %c0_125] : memref<1x1x40x128xbf16, #tpu.memory_space<vmem>>, vector<1x1x24x128xbf16>
    %92 = vector.shape_cast %91 : vector<1x1x24x128xbf16> to vector<24x128xbf16>
    %c11 = arith.constant 11 : index
    %c0_126 = arith.constant 0 : index
    %c0_127 = arith.constant 0 : index
    %93 = vector.load %arg5[%c11, %c0_126, %c0_127] : memref<27x128x128xbf16, #tpu.memory_space<vmem>>, vector<1x128x128xbf16>
    %94 = vector.shape_cast %93 : vector<1x128x128xbf16> to vector<128x128xbf16>
    %cst_128 = arith.constant dense<0.000000e+00> : vector<24x128xf32>
    %95 = tpu.matmul %92, %94, %cst_128 {dimension_numbers = #tpu.dot_dimension_numbers<[1], [0], [0], [1], [0, 0, 1, 1], [], []>} : vector<24x128xbf16>, vector<128x128xbf16>, vector<24x128xf32> -> vector<24x128xf32>
    %96 = arith.addf %90, %95 : vector<24x128xf32>
    %c0_129 = arith.constant 0 : index
    %c0_130 = arith.constant 0 : index
    %97 = vector.load %arg10[%c0_129, %c0_130] : memref<24x128xf32, #tpu.memory_space<vmem>>, vector<24x128xf32>
    tpu.vector_store %arg10[%c0_129, %c0_130], %96 {strides = array<i32>} : memref<24x128xf32, #tpu.memory_space<vmem>>, vector<24x128xf32>,
    %c0_131 = arith.constant 0 : index
    %c0_132 = arith.constant 0 : index
    %98 = vector.load %arg10[%c0_131, %c0_132] : memref<24x128xf32, #tpu.memory_space<vmem>>, vector<24x128xf32>
    %c0_133 = arith.constant 0 : index
    %c0_134 = arith.constant 0 : index
    %c6_135 = arith.constant 6 : index
    %c0_136 = arith.constant 0 : index
    %99 = vector.load %arg3[%c0_133, %c0_134, %c6_135, %c0_136] : memref<1x1x40x128xbf16, #tpu.memory_space<vmem>>, vector<1x1x24x128xbf16>
    %100 = vector.shape_cast %99 : vector<1x1x24x128xbf16> to vector<24x128xbf16>
    %c12_137 = arith.constant 12 : index
    %c0_138 = arith.constant 0 : index
    %c0_139 = arith.constant 0 : index
    %101 = vector.load %arg5[%c12_137, %c0_138, %c0_139] : memref<27x128x128xbf16, #tpu.memory_space<vmem>>, vector<1x128x128xbf16>
    %102 = vector.shape_cast %101 : vector<1x128x128xbf16> to vector<128x128xbf16>
    %cst_140 = arith.constant dense<0.000000e+00> : vector<24x128xf32>
    %103 = tpu.matmul %100, %102, %cst_140 {dimension_numbers = #tpu.dot_dimension_numbers<[1], [0], [0], [1], [0, 0, 1, 1], [], []>} : vector<24x128xbf16>, vector<128x128xbf16>, vector<24x128xf32> -> vector<24x128xf32>
    %104 = arith.addf %98, %103 : vector<24x128xf32>
    %c0_141 = arith.constant 0 : index
    %c0_142 = arith.constant 0 : index
    %105 = vector.load %arg10[%c0_141, %c0_142] : memref<24x128xf32, #tpu.memory_space<vmem>>, vector<24x128xf32>
    tpu.vector_store %arg10[%c0_141, %c0_142], %104 {strides = array<i32>} : memref<24x128xf32, #tpu.memory_space<vmem>>, vector<24x128xf32>,
    %c0_143 = arith.constant 0 : index
    %c0_144 = arith.constant 0 : index
    %106 = vector.load %arg10[%c0_143, %c0_144] : memref<24x128xf32, #tpu.memory_space<vmem>>, vector<24x128xf32>
    %c0_145 = arith.constant 0 : index
    %c0_146 = arith.constant 0 : index
    %c7_147 = arith.constant 7 : index
    %c0_148 = arith.constant 0 : index
    %107 = vector.load %arg3[%c0_145, %c0_146, %c7_147, %c0_148] : memref<1x1x40x128xbf16, #tpu.memory_space<vmem>>, vector<1x1x24x128xbf16>
    %108 = vector.shape_cast %107 : vector<1x1x24x128xbf16> to vector<24x128xbf16>
    %c13_149 = arith.constant 13 : index
    %c0_150 = arith.constant 0 : index
    %c0_151 = arith.constant 0 : index
    %109 = vector.load %arg5[%c13_149, %c0_150, %c0_151] : memref<27x128x128xbf16, #tpu.memory_space<vmem>>, vector<1x128x128xbf16>
    %110 = vector.shape_cast %109 : vector<1x128x128xbf16> to vector<128x128xbf16>
    %cst_152 = arith.constant dense<0.000000e+00> : vector<24x128xf32>
    %111 = tpu.matmul %108, %110, %cst_152 {dimension_numbers = #tpu.dot_dimension_numbers<[1], [0], [0], [1], [0, 0, 1, 1], [], []>} : vector<24x128xbf16>, vector<128x128xbf16>, vector<24x128xf32> -> vector<24x128xf32>
    %112 = arith.addf %106, %111 : vector<24x128xf32>
    %c0_153 = arith.constant 0 : index
    %c0_154 = arith.constant 0 : index
    %113 = vector.load %arg10[%c0_153, %c0_154] : memref<24x128xf32, #tpu.memory_space<vmem>>, vector<24x128xf32>
    tpu.vector_store %arg10[%c0_153, %c0_154], %112 {strides = array<i32>} : memref<24x128xf32, #tpu.memory_space<vmem>>, vector<24x128xf32>,
    %c0_155 = arith.constant 0 : index
    %c0_156 = arith.constant 0 : index
    %114 = vector.load %arg10[%c0_155, %c0_156] : memref<24x128xf32, #tpu.memory_space<vmem>>, vector<24x128xf32>
    %c0_157 = arith.constant 0 : index
    %c0_158 = arith.constant 0 : index
    %c8_159 = arith.constant 8 : index
    %c0_160 = arith.constant 0 : index
    %115 = vector.load %arg3[%c0_157, %c0_158, %c8_159, %c0_160] : memref<1x1x40x128xbf16, #tpu.memory_space<vmem>>, vector<1x1x24x128xbf16>
    %116 = vector.shape_cast %115 : vector<1x1x24x128xbf16> to vector<24x128xbf16>
    %c14_161 = arith.constant 14 : index
    %c0_162 = arith.constant 0 : index
    %c0_163 = arith.constant 0 : index
    %117 = vector.load %arg5[%c14_161, %c0_162, %c0_163] : memref<27x128x128xbf16, #tpu.memory_space<vmem>>, vector<1x128x128xbf16>
    %118 = vector.shape_cast %117 : vector<1x128x128xbf16> to vector<128x128xbf16>
    %cst_164 = arith.constant dense<0.000000e+00> : vector<24x128xf32>
    %119 = tpu.matmul %116, %118, %cst_164 {dimension_numbers = #tpu.dot_dimension_numbers<[1], [0], [0], [1], [0, 0, 1, 1], [], []>} : vector<24x128xbf16>, vector<128x128xbf16>, vector<24x128xf32> -> vector<24x128xf32>
    %120 = arith.addf %114, %119 : vector<24x128xf32>
    %c0_165 = arith.constant 0 : index
    %c0_166 = arith.constant 0 : index
    %121 = vector.load %arg10[%c0_165, %c0_166] : memref<24x128xf32, #tpu.memory_space<vmem>>, vector<24x128xf32>
    tpu.vector_store %arg10[%c0_165, %c0_166], %120 {strides = array<i32>} : memref<24x128xf32, #tpu.memory_space<vmem>>, vector<24x128xf32>,
    %c0_167 = arith.constant 0 : index
    %c0_168 = arith.constant 0 : index
    %122 = vector.load %arg10[%c0_167, %c0_168] : memref<24x128xf32, #tpu.memory_space<vmem>>, vector<24x128xf32>
    %c0_169 = arith.constant 0 : index
    %c0_170 = arith.constant 0 : index
    %c12_171 = arith.constant 12 : index
    %c0_172 = arith.constant 0 : index
    %123 = vector.load %arg3[%c0_169, %c0_170, %c12_171, %c0_172] : memref<1x1x40x128xbf16, #tpu.memory_space<vmem>>, vector<1x1x24x128xbf16>
    %124 = vector.shape_cast %123 : vector<1x1x24x128xbf16> to vector<24x128xbf16>
    %c15 = arith.constant 15 : index
    %c0_173 = arith.constant 0 : index
    %c0_174 = arith.constant 0 : index
    %125 = vector.load %arg5[%c15, %c0_173, %c0_174] : memref<27x128x128xbf16, #tpu.memory_space<vmem>>, vector<1x128x128xbf16>
    %126 = vector.shape_cast %125 : vector<1x128x128xbf16> to vector<128x128xbf16>
    %cst_175 = arith.constant dense<0.000000e+00> : vector<24x128xf32>
    %127 = tpu.matmul %124, %126, %cst_175 {dimension_numbers = #tpu.dot_dimension_numbers<[1], [0], [0], [1], [0, 0, 1, 1], [], []>} : vector<24x128xbf16>, vector<128x128xbf16>, vector<24x128xf32> -> vector<24x128xf32>
    %128 = arith.addf %122, %127 : vector<24x128xf32>
    %c0_176 = arith.constant 0 : index
    %c0_177 = arith.constant 0 : index
    %129 = vector.load %arg10[%c0_176, %c0_177] : memref<24x128xf32, #tpu.memory_space<vmem>>, vector<24x128xf32>
    tpu.vector_store %arg10[%c0_176, %c0_177], %128 {strides = array<i32>} : memref<24x128xf32, #tpu.memory_space<vmem>>, vector<24x128xf32>,
    %c0_178 = arith.constant 0 : index
    %c0_179 = arith.constant 0 : index
    %130 = vector.load %arg10[%c0_178, %c0_179] : memref<24x128xf32, #tpu.memory_space<vmem>>, vector<24x128xf32>
    %c0_180 = arith.constant 0 : index
    %c0_181 = arith.constant 0 : index
    %c13_182 = arith.constant 13 : index
    %c0_183 = arith.constant 0 : index
    %131 = vector.load %arg3[%c0_180, %c0_181, %c13_182, %c0_183] : memref<1x1x40x128xbf16, #tpu.memory_space<vmem>>, vector<1x1x24x128xbf16>
    %132 = vector.shape_cast %131 : vector<1x1x24x128xbf16> to vector<24x128xbf16>
    %c16 = arith.constant 16 : index
    %c0_184 = arith.constant 0 : index
    %c0_185 = arith.constant 0 : index
    %133 = vector.load %arg5[%c16, %c0_184, %c0_185] : memref<27x128x128xbf16, #tpu.memory_space<vmem>>, vector<1x128x128xbf16>
    %134 = vector.shape_cast %133 : vector<1x128x128xbf16> to vector<128x128xbf16>
    %cst_186 = arith.constant dense<0.000000e+00> : vector<24x128xf32>
    %135 = tpu.matmul %132, %134, %cst_186 {dimension_numbers = #tpu.dot_dimension_numbers<[1], [0], [0], [1], [0, 0, 1, 1], [], []>} : vector<24x128xbf16>, vector<128x128xbf16>, vector<24x128xf32> -> vector<24x128xf32>
    %136 = arith.addf %130, %135 : vector<24x128xf32>
    %c0_187 = arith.constant 0 : index
    %c0_188 = arith.constant 0 : index
    %137 = vector.load %arg10[%c0_187, %c0_188] : memref<24x128xf32, #tpu.memory_space<vmem>>, vector<24x128xf32>
    tpu.vector_store %arg10[%c0_187, %c0_188], %136 {strides = array<i32>} : memref<24x128xf32, #tpu.memory_space<vmem>>, vector<24x128xf32>,
    %c0_189 = arith.constant 0 : index
    %c0_190 = arith.constant 0 : index
    %138 = vector.load %arg10[%c0_189, %c0_190] : memref<24x128xf32, #tpu.memory_space<vmem>>, vector<24x128xf32>
    %c0_191 = arith.constant 0 : index
    %c0_192 = arith.constant 0 : index
    %c14_193 = arith.constant 14 : index
    %c0_194 = arith.constant 0 : index
    %139 = vector.load %arg3[%c0_191, %c0_192, %c14_193, %c0_194] : memref<1x1x40x128xbf16, #tpu.memory_space<vmem>>, vector<1x1x24x128xbf16>
    %140 = vector.shape_cast %139 : vector<1x1x24x128xbf16> to vector<24x128xbf16>
    %c17 = arith.constant 17 : index
    %c0_195 = arith.constant 0 : index
    %c0_196 = arith.constant 0 : index
    %141 = vector.load %arg5[%c17, %c0_195, %c0_196] : memref<27x128x128xbf16, #tpu.memory_space<vmem>>, vector<1x128x128xbf16>
    %142 = vector.shape_cast %141 : vector<1x128x128xbf16> to vector<128x128xbf16>
    %cst_197 = arith.constant dense<0.000000e+00> : vector<24x128xf32>
    %143 = tpu.matmul %140, %142, %cst_197 {dimension_numbers = #tpu.dot_dimension_numbers<[1], [0], [0], [1], [0, 0, 1, 1], [], []>} : vector<24x128xbf16>, vector<128x128xbf16>, vector<24x128xf32> -> vector<24x128xf32>
    %144 = arith.addf %138, %143 : vector<24x128xf32>
    %c0_198 = arith.constant 0 : index
    %c0_199 = arith.constant 0 : index
    %145 = vector.load %arg10[%c0_198, %c0_199] : memref<24x128xf32, #tpu.memory_space<vmem>>, vector<24x128xf32>
    tpu.vector_store %arg10[%c0_198, %c0_199], %144 {strides = array<i32>} : memref<24x128xf32, #tpu.memory_space<vmem>>, vector<24x128xf32>,
    %c0_200 = arith.constant 0 : index
    %c0_201 = arith.constant 0 : index
    %146 = vector.load %arg10[%c0_200, %c0_201] : memref<24x128xf32, #tpu.memory_space<vmem>>, vector<24x128xf32>
    %c0_202 = arith.constant 0 : index
    %c0_203 = arith.constant 0 : index
    %c0_204 = arith.constant 0 : index
    %c0_205 = arith.constant 0 : index
    %147 = vector.load %arg4[%c0_202, %c0_203, %c0_204, %c0_205] : memref<1x1x40x128xbf16, #tpu.memory_space<vmem>>, vector<1x1x24x128xbf16>
    %148 = vector.shape_cast %147 : vector<1x1x24x128xbf16> to vector<24x128xbf16>
    %c18 = arith.constant 18 : index
    %c0_206 = arith.constant 0 : index
    %c0_207 = arith.constant 0 : index
    %149 = vector.load %arg5[%c18, %c0_206, %c0_207] : memref<27x128x128xbf16, #tpu.memory_space<vmem>>, vector<1x128x128xbf16>
    %150 = vector.shape_cast %149 : vector<1x128x128xbf16> to vector<128x128xbf16>
    %cst_208 = arith.constant dense<0.000000e+00> : vector<24x128xf32>
    %151 = tpu.matmul %148, %150, %cst_208 {dimension_numbers = #tpu.dot_dimension_numbers<[1], [0], [0], [1], [0, 0, 1, 1], [], []>} : vector<24x128xbf16>, vector<128x128xbf16>, vector<24x128xf32> -> vector<24x128xf32>
    %152 = arith.addf %146, %151 : vector<24x128xf32>
    %c0_209 = arith.constant 0 : index
    %c0_210 = arith.constant 0 : index
    %153 = vector.load %arg10[%c0_209, %c0_210] : memref<24x128xf32, #tpu.memory_space<vmem>>, vector<24x128xf32>
    tpu.vector_store %arg10[%c0_209, %c0_210], %152 {strides = array<i32>} : memref<24x128xf32, #tpu.memory_space<vmem>>, vector<24x128xf32>,
    %c0_211 = arith.constant 0 : index
    %c0_212 = arith.constant 0 : index
    %154 = vector.load %arg10[%c0_211, %c0_212] : memref<24x128xf32, #tpu.memory_space<vmem>>, vector<24x128xf32>
    %c0_213 = arith.constant 0 : index
    %c0_214 = arith.constant 0 : index
    %c1_215 = arith.constant 1 : index
    %c0_216 = arith.constant 0 : index
    %155 = vector.load %arg4[%c0_213, %c0_214, %c1_215, %c0_216] : memref<1x1x40x128xbf16, #tpu.memory_space<vmem>>, vector<1x1x24x128xbf16>
    %156 = vector.shape_cast %155 : vector<1x1x24x128xbf16> to vector<24x128xbf16>
    %c19 = arith.constant 19 : index
    %c0_217 = arith.constant 0 : index
    %c0_218 = arith.constant 0 : index
    %157 = vector.load %arg5[%c19, %c0_217, %c0_218] : memref<27x128x128xbf16, #tpu.memory_space<vmem>>, vector<1x128x128xbf16>
    %158 = vector.shape_cast %157 : vector<1x128x128xbf16> to vector<128x128xbf16>
    %cst_219 = arith.constant dense<0.000000e+00> : vector<24x128xf32>
    %159 = tpu.matmul %156, %158, %cst_219 {dimension_numbers = #tpu.dot_dimension_numbers<[1], [0], [0], [1], [0, 0, 1, 1], [], []>} : vector<24x128xbf16>, vector<128x128xbf16>, vector<24x128xf32> -> vector<24x128xf32>
    %160 = arith.addf %154, %159 : vector<24x128xf32>
    %c0_220 = arith.constant 0 : index
    %c0_221 = arith.constant 0 : index
    %161 = vector.load %arg10[%c0_220, %c0_221] : memref<24x128xf32, #tpu.memory_space<vmem>>, vector<24x128xf32>
    tpu.vector_store %arg10[%c0_220, %c0_221], %160 {strides = array<i32>} : memref<24x128xf32, #tpu.memory_space<vmem>>, vector<24x128xf32>,
    %c0_222 = arith.constant 0 : index
    %c0_223 = arith.constant 0 : index
    %162 = vector.load %arg10[%c0_222, %c0_223] : memref<24x128xf32, #tpu.memory_space<vmem>>, vector<24x128xf32>
    %c0_224 = arith.constant 0 : index
    %c0_225 = arith.constant 0 : index
    %c2_226 = arith.constant 2 : index
    %c0_227 = arith.constant 0 : index
    %163 = vector.load %arg4[%c0_224, %c0_225, %c2_226, %c0_227] : memref<1x1x40x128xbf16, #tpu.memory_space<vmem>>, vector<1x1x24x128xbf16>
    %164 = vector.shape_cast %163 : vector<1x1x24x128xbf16> to vector<24x128xbf16>
    %c20 = arith.constant 20 : index
    %c0_228 = arith.constant 0 : index
    %c0_229 = arith.constant 0 : index
    %165 = vector.load %arg5[%c20, %c0_228, %c0_229] : memref<27x128x128xbf16, #tpu.memory_space<vmem>>, vector<1x128x128xbf16>
    %166 = vector.shape_cast %165 : vector<1x128x128xbf16> to vector<128x128xbf16>
    %cst_230 = arith.constant dense<0.000000e+00> : vector<24x128xf32>
    %167 = tpu.matmul %164, %166, %cst_230 {dimension_numbers = #tpu.dot_dimension_numbers<[1], [0], [0], [1], [0, 0, 1, 1], [], []>} : vector<24x128xbf16>, vector<128x128xbf16>, vector<24x128xf32> -> vector<24x128xf32>
    %168 = arith.addf %162, %167 : vector<24x128xf32>
    %c0_231 = arith.constant 0 : index
    %c0_232 = arith.constant 0 : index
    %169 = vector.load %arg10[%c0_231, %c0_232] : memref<24x128xf32, #tpu.memory_space<vmem>>, vector<24x128xf32>
    tpu.vector_store %arg10[%c0_231, %c0_232], %168 {strides = array<i32>} : memref<24x128xf32, #tpu.memory_space<vmem>>, vector<24x128xf32>,
    %c0_233 = arith.constant 0 : index
    %c0_234 = arith.constant 0 : index
    %170 = vector.load %arg10[%c0_233, %c0_234] : memref<24x128xf32, #tpu.memory_space<vmem>>, vector<24x128xf32>
    %c0_235 = arith.constant 0 : index
    %c0_236 = arith.constant 0 : index
    %c6_237 = arith.constant 6 : index
    %c0_238 = arith.constant 0 : index
    %171 = vector.load %arg4[%c0_235, %c0_236, %c6_237, %c0_238] : memref<1x1x40x128xbf16, #tpu.memory_space<vmem>>, vector<1x1x24x128xbf16>
    %172 = vector.shape_cast %171 : vector<1x1x24x128xbf16> to vector<24x128xbf16>
    %c21 = arith.constant 21 : index
    %c0_239 = arith.constant 0 : index
    %c0_240 = arith.constant 0 : index
    %173 = vector.load %arg5[%c21, %c0_239, %c0_240] : memref<27x128x128xbf16, #tpu.memory_space<vmem>>, vector<1x128x128xbf16>
    %174 = vector.shape_cast %173 : vector<1x128x128xbf16> to vector<128x128xbf16>
    %cst_241 = arith.constant dense<0.000000e+00> : vector<24x128xf32>
    %175 = tpu.matmul %172, %174, %cst_241 {dimension_numbers = #tpu.dot_dimension_numbers<[1], [0], [0], [1], [0, 0, 1, 1], [], []>} : vector<24x128xbf16>, vector<128x128xbf16>, vector<24x128xf32> -> vector<24x128xf32>
    %176 = arith.addf %170, %175 : vector<24x128xf32>
    %c0_242 = arith.constant 0 : index
    %c0_243 = arith.constant 0 : index
    %177 = vector.load %arg10[%c0_242, %c0_243] : memref<24x128xf32, #tpu.memory_space<vmem>>, vector<24x128xf32>
    tpu.vector_store %arg10[%c0_242, %c0_243], %176 {strides = array<i32>} : memref<24x128xf32, #tpu.memory_space<vmem>>, vector<24x128xf32>,
    %c0_244 = arith.constant 0 : index
    %c0_245 = arith.constant 0 : index
    %178 = vector.load %arg10[%c0_244, %c0_245] : memref<24x128xf32, #tpu.memory_space<vmem>>, vector<24x128xf32>
    %c0_246 = arith.constant 0 : index
    %c0_247 = arith.constant 0 : index
    %c7_248 = arith.constant 7 : index
    %c0_249 = arith.constant 0 : index
    %179 = vector.load %arg4[%c0_246, %c0_247, %c7_248, %c0_249] : memref<1x1x40x128xbf16, #tpu.memory_space<vmem>>, vector<1x1x24x128xbf16>
    %180 = vector.shape_cast %179 : vector<1x1x24x128xbf16> to vector<24x128xbf16>
    %c22 = arith.constant 22 : index
    %c0_250 = arith.constant 0 : index
    %c0_251 = arith.constant 0 : index
    %181 = vector.load %arg5[%c22, %c0_250, %c0_251] : memref<27x128x128xbf16, #tpu.memory_space<vmem>>, vector<1x128x128xbf16>
    %182 = vector.shape_cast %181 : vector<1x128x128xbf16> to vector<128x128xbf16>
    %cst_252 = arith.constant dense<0.000000e+00> : vector<24x128xf32>
    %183 = tpu.matmul %180, %182, %cst_252 {dimension_numbers = #tpu.dot_dimension_numbers<[1], [0], [0], [1], [0, 0, 1, 1], [], []>} : vector<24x128xbf16>, vector<128x128xbf16>, vector<24x128xf32> -> vector<24x128xf32>
    %184 = arith.addf %178, %183 : vector<24x128xf32>
    %c0_253 = arith.constant 0 : index
    %c0_254 = arith.constant 0 : index
    %185 = vector.load %arg10[%c0_253, %c0_254] : memref<24x128xf32, #tpu.memory_space<vmem>>, vector<24x128xf32>
    tpu.vector_store %arg10[%c0_253, %c0_254], %184 {strides = array<i32>} : memref<24x128xf32, #tpu.memory_space<vmem>>, vector<24x128xf32>,
    %c0_255 = arith.constant 0 : index
    %c0_256 = arith.constant 0 : index
    %186 = vector.load %arg10[%c0_255, %c0_256] : memref<24x128xf32, #tpu.memory_space<vmem>>, vector<24x128xf32>
    %c0_257 = arith.constant 0 : index
    %c0_258 = arith.constant 0 : index
    %c8_259 = arith.constant 8 : index
    %c0_260 = arith.constant 0 : index
    %187 = vector.load %arg4[%c0_257, %c0_258, %c8_259, %c0_260] : memref<1x1x40x128xbf16, #tpu.memory_space<vmem>>, vector<1x1x24x128xbf16>
    %188 = vector.shape_cast %187 : vector<1x1x24x128xbf16> to vector<24x128xbf16>
    %c23 = arith.constant 23 : index
    %c0_261 = arith.constant 0 : index
    %c0_262 = arith.constant 0 : index
    %189 = vector.load %arg5[%c23, %c0_261, %c0_262] : memref<27x128x128xbf16, #tpu.memory_space<vmem>>, vector<1x128x128xbf16>
    %190 = vector.shape_cast %189 : vector<1x128x128xbf16> to vector<128x128xbf16>
    %cst_263 = arith.constant dense<0.000000e+00> : vector<24x128xf32>
    %191 = tpu.matmul %188, %190, %cst_263 {dimension_numbers = #tpu.dot_dimension_numbers<[1], [0], [0], [1], [0, 0, 1, 1], [], []>} : vector<24x128xbf16>, vector<128x128xbf16>, vector<24x128xf32> -> vector<24x128xf32>
    %192 = arith.addf %186, %191 : vector<24x128xf32>
    %c0_264 = arith.constant 0 : index
    %c0_265 = arith.constant 0 : index
    %193 = vector.load %arg10[%c0_264, %c0_265] : memref<24x128xf32, #tpu.memory_space<vmem>>, vector<24x128xf32>
    tpu.vector_store %arg10[%c0_264, %c0_265], %192 {strides = array<i32>} : memref<24x128xf32, #tpu.memory_space<vmem>>, vector<24x128xf32>,
    %c0_266 = arith.constant 0 : index
    %c0_267 = arith.constant 0 : index
    %194 = vector.load %arg10[%c0_266, %c0_267] : memref<24x128xf32, #tpu.memory_space<vmem>>, vector<24x128xf32>
    %c0_268 = arith.constant 0 : index
    %c0_269 = arith.constant 0 : index
    %c12_270 = arith.constant 12 : index
    %c0_271 = arith.constant 0 : index
    %195 = vector.load %arg4[%c0_268, %c0_269, %c12_270, %c0_271] : memref<1x1x40x128xbf16, #tpu.memory_space<vmem>>, vector<1x1x24x128xbf16>
    %196 = vector.shape_cast %195 : vector<1x1x24x128xbf16> to vector<24x128xbf16>
    %c24 = arith.constant 24 : index
    %c0_272 = arith.constant 0 : index
    %c0_273 = arith.constant 0 : index
    %197 = vector.load %arg5[%c24, %c0_272, %c0_273] : memref<27x128x128xbf16, #tpu.memory_space<vmem>>, vector<1x128x128xbf16>
    %198 = vector.shape_cast %197 : vector<1x128x128xbf16> to vector<128x128xbf16>
    %cst_274 = arith.constant dense<0.000000e+00> : vector<24x128xf32>
    %199 = tpu.matmul %196, %198, %cst_274 {dimension_numbers = #tpu.dot_dimension_numbers<[1], [0], [0], [1], [0, 0, 1, 1], [], []>} : vector<24x128xbf16>, vector<128x128xbf16>, vector<24x128xf32> -> vector<24x128xf32>
    %200 = arith.addf %194, %199 : vector<24x128xf32>
    %c0_275 = arith.constant 0 : index
    %c0_276 = arith.constant 0 : index
    %201 = vector.load %arg10[%c0_275, %c0_276] : memref<24x128xf32, #tpu.memory_space<vmem>>, vector<24x128xf32>
    tpu.vector_store %arg10[%c0_275, %c0_276], %200 {strides = array<i32>} : memref<24x128xf32, #tpu.memory_space<vmem>>, vector<24x128xf32>,
    %c0_277 = arith.constant 0 : index
    %c0_278 = arith.constant 0 : index
    %202 = vector.load %arg10[%c0_277, %c0_278] : memref<24x128xf32, #tpu.memory_space<vmem>>, vector<24x128xf32>
    %c0_279 = arith.constant 0 : index
    %c0_280 = arith.constant 0 : index
    %c13_281 = arith.constant 13 : index
    %c0_282 = arith.constant 0 : index
    %203 = vector.load %arg4[%c0_279, %c0_280, %c13_281, %c0_282] : memref<1x1x40x128xbf16, #tpu.memory_space<vmem>>, vector<1x1x24x128xbf16>
    %204 = vector.shape_cast %203 : vector<1x1x24x128xbf16> to vector<24x128xbf16>
    %c25 = arith.constant 25 : index
    %c0_283 = arith.constant 0 : index
    %c0_284 = arith.constant 0 : index
    %205 = vector.load %arg5[%c25, %c0_283, %c0_284] : memref<27x128x128xbf16, #tpu.memory_space<vmem>>, vector<1x128x128xbf16>
    %206 = vector.shape_cast %205 : vector<1x128x128xbf16> to vector<128x128xbf16>
    %cst_285 = arith.constant dense<0.000000e+00> : vector<24x128xf32>
    %207 = tpu.matmul %204, %206, %cst_285 {dimension_numbers = #tpu.dot_dimension_numbers<[1], [0], [0], [1], [0, 0, 1, 1], [], []>} : vector<24x128xbf16>, vector<128x128xbf16>, vector<24x128xf32> -> vector<24x128xf32>
    %208 = arith.addf %202, %207 : vector<24x128xf32>
    %c0_286 = arith.constant 0 : index
    %c0_287 = arith.constant 0 : index
    %209 = vector.load %arg10[%c0_286, %c0_287] : memref<24x128xf32, #tpu.memory_space<vmem>>, vector<24x128xf32>
    tpu.vector_store %arg10[%c0_286, %c0_287], %208 {strides = array<i32>} : memref<24x128xf32, #tpu.memory_space<vmem>>, vector<24x128xf32>,
    %c0_288 = arith.constant 0 : index
    %c0_289 = arith.constant 0 : index
    %210 = vector.load %arg10[%c0_288, %c0_289] : memref<24x128xf32, #tpu.memory_space<vmem>>, vector<24x128xf32>
    %c0_290 = arith.constant 0 : index
    %c0_291 = arith.constant 0 : index
    %c14_292 = arith.constant 14 : index
    %c0_293 = arith.constant 0 : index
    %211 = vector.load %arg4[%c0_290, %c0_291, %c14_292, %c0_293] : memref<1x1x40x128xbf16, #tpu.memory_space<vmem>>, vector<1x1x24x128xbf16>
    %212 = vector.shape_cast %211 : vector<1x1x24x128xbf16> to vector<24x128xbf16>
    %c26 = arith.constant 26 : index
    %c0_294 = arith.constant 0 : index
    %c0_295 = arith.constant 0 : index
    %213 = vector.load %arg5[%c26, %c0_294, %c0_295] : memref<27x128x128xbf16, #tpu.memory_space<vmem>>, vector<1x128x128xbf16>
    %214 = vector.shape_cast %213 : vector<1x128x128xbf16> to vector<128x128xbf16>
    %cst_296 = arith.constant dense<0.000000e+00> : vector<24x128xf32>
    %215 = tpu.matmul %212, %214, %cst_296 {dimension_numbers = #tpu.dot_dimension_numbers<[1], [0], [0], [1], [0, 0, 1, 1], [], []>} : vector<24x128xbf16>, vector<128x128xbf16>, vector<24x128xf32> -> vector<24x128xf32>
    %216 = arith.addf %210, %215 : vector<24x128xf32>
    %c0_297 = arith.constant 0 : index
    %c0_298 = arith.constant 0 : index
    %217 = vector.load %arg10[%c0_297, %c0_298] : memref<24x128xf32, #tpu.memory_space<vmem>>, vector<24x128xf32>
    tpu.vector_store %arg10[%c0_297, %c0_298], %216 {strides = array<i32>} : memref<24x128xf32, #tpu.memory_space<vmem>>, vector<24x128xf32>,
    %c0_299 = arith.constant 0 : index
    %c0_300 = arith.constant 0 : index
    %218 = vector.load %arg6[%c0_299, %c0_300] : memref<1x128xf32, #tpu.memory_space<vmem>>, vector<1x128xf32>
    %c0_301 = arith.constant 0 : index
    %c0_302 = arith.constant 0 : index
    %219 = vector.load %arg7[%c0_301, %c0_302] : memref<1x128xf32, #tpu.memory_space<vmem>>, vector<1x128xf32>
    %c0_303 = arith.constant 0 : index
    %c0_304 = arith.constant 0 : index
    %220 = vector.load %arg8[%c0_303, %c0_304] : memref<1x128xf32, #tpu.memory_space<vmem>>, vector<1x128xf32>
    %c0_305 = arith.constant 0 : index
    %c0_306 = arith.constant 0 : index
    %221 = vector.load %arg10[%c0_305, %c0_306] : memref<24x128xf32, #tpu.memory_space<vmem>>, vector<24x128xf32>
    %222 = vector.broadcast %218 : vector<1x128xf32> to vector<24x128xf32>
    %223 = arith.addf %221, %222 : vector<24x128xf32>
    %cst_307 = arith.constant 5.000000e-01 : f32
    %224 = vector.broadcast %cst_307 : f32 to vector<24x128xf32>
    %225 = arith.mulf %224, %223 : vector<24x128xf32>
    %cst_308 = arith.constant 0.707106769 : f32
    %226 = vector.broadcast %cst_308 : f32 to vector<24x128xf32>
    %227 = arith.mulf %223, %226 : vector<24x128xf32>
    %228 = math.erf %227 : vector<24x128xf32>
    %cst_309 = arith.constant 1.000000e+00 : f32
    %229 = vector.broadcast %cst_309 : f32 to vector<24x128xf32>
    %230 = arith.addf %229, %228 : vector<24x128xf32>
    %231 = arith.mulf %225, %230 : vector<24x128xf32>
    %232 = tpu.iota {dimensions = array<i32: 1>} : vector<1x128xi32>
    %c8_i32 = arith.constant 8 : i32
    %233 = vector.broadcast %c8_i32 : i32 to vector<1x128xi32>
    %234 = arith.cmpi slt, %232, %233 : vector<1x128xi32>
    %cst_310 = arith.constant 0.000000e+00 : f32
    %235 = vector.shape_cast %234 : vector<1x128xi1> to vector<1x128xi1>
    %236 = vector.broadcast %235 : vector<1x128xi1> to vector<24x128xi1>
    %237 = vector.broadcast %cst_310 : f32 to vector<24x128xf32>
    %238 = arith.select %236, %231, %237 : vector<24x128xi1>, vector<24x128xf32>
    %cst_311 = arith.constant dense<0.000000e+00> : vector<24xf32>
    %239 = vector.multi_reduction <add>, %238, %cst_311 [1] : vector<24x128xf32> to vector<24xf32>
    %240 = vector.shape_cast %239 : vector<24xf32> to vector<24x1xf32>
    %241 = arith.mulf %238, %238 : vector<24x128xf32>
    %cst_312 = arith.constant dense<0.000000e+00> : vector<24xf32>
    %242 = vector.multi_reduction <add>, %241, %cst_312 [1] : vector<24x128xf32> to vector<24xf32>
    %243 = vector.shape_cast %242 : vector<24xf32> to vector<24x1xf32>
    %cst_313 = arith.constant 1.250000e-01 : f32
    %244 = vector.broadcast %cst_313 : f32 to vector<24x1xf32>
    %245 = arith.mulf %240, %244 : vector<24x1xf32>
    %cst_314 = arith.constant 1.250000e-01 : f32
    %246 = vector.broadcast %cst_314 : f32 to vector<24x1xf32>
    %247 = arith.mulf %243, %246 : vector<24x1xf32>
    %248 = arith.mulf %245, %245 : vector<24x1xf32>
    %249 = arith.subf %247, %248 : vector<24x1xf32>
    %cst_315 = arith.constant 0.000000e+00 : f32
    %250 = vector.broadcast %cst_315 : f32 to vector<24x1xf32>
    %251 = arith.maximumf %249, %250 : vector<24x1xf32>
    %252 = vector.broadcast %245 : vector<24x1xf32> to vector<24x128xf32>
    %253 = arith.subf %231, %252 : vector<24x128xf32>
    %cst_316 = arith.constant 9.99999974E-6 : f32
    %254 = vector.broadcast %cst_316 : f32 to vector<24x1xf32>
    %255 = arith.addf %251, %254 : vector<24x1xf32>
    %256 = math.rsqrt %255 : vector<24x1xf32>
    %257 = vector.broadcast %256 : vector<24x1xf32> to vector<24x128xf32>
    %258 = arith.mulf %253, %257 : vector<24x128xf32>
    %259 = vector.broadcast %219 : vector<1x128xf32> to vector<24x128xf32>
    %260 = arith.mulf %258, %259 : vector<24x128xf32>
    %261 = vector.broadcast %220 : vector<1x128xf32> to vector<24x128xf32>
    %262 = arith.addf %260, %261 : vector<24x128xf32>
    %c0_317 = arith.constant 0 : index
    %c0_318 = arith.constant 0 : index
    %c0_319 = arith.constant 0 : index
    %c0_320 = arith.constant 0 : index
    %263 = vector.load %arg9[%c0_317, %c0_318, %c0_319, %c0_320] : memref<1x1x24x128xf32, #tpu.memory_space<vmem>>, vector<1x1x24x128xf32>
    %264 = vector.shape_cast %263 : vector<1x1x24x128xf32> to vector<24x128xf32>
    %265 = vector.shape_cast %262 : vector<24x128xf32> to vector<1x1x24x128xf32>
    tpu.vector_store %arg9[%c0_317, %c0_318, %c0_319, %c0_320], %265 {strides = array<i32>} : memref<1x1x24x128xf32, #tpu.memory_space<vmem>>, vector<1x1x24x128xf32>,
    return
  }
  func.func @transform_0(%arg0: i32, %arg1: i32) -> (i32, i32, i32, i32) {
    %c0_i32 = arith.constant 0 : i32
    %c0_i32_0 = arith.constant 0 : i32
    %c0_i32_1 = arith.constant 0 : i32
    return %arg0, %arg1, %c0_i32, %c0_i32_0 : i32, i32, i32, i32
  }
  func.func @transform_1(%arg0: i32, %arg1: i32) -> (i32, i32, i32, i32) {
    %c1_i32 = arith.constant 1 : i32
    %0 = arith.addi %arg1, %c1_i32 : i32
    %c0_i32 = arith.constant 0 : i32
    %c0_i32_0 = arith.constant 0 : i32
    %c0_i32_1 = arith.constant 0 : i32
    return %arg0, %0, %c0_i32, %c0_i32_0 : i32, i32, i32, i32
  }
  func.func @transform_2(%arg0: i32, %arg1: i32) -> (i32, i32, i32, i32) {
    %c2_i32 = arith.constant 2 : i32
    %0 = arith.addi %arg1, %c2_i32 : i32
    %c0_i32 = arith.constant 0 : i32
    %c0_i32_0 = arith.constant 0 : i32
    %c0_i32_1 = arith.constant 0 : i32
    return %arg0, %0, %c0_i32, %c0_i32_0 : i32, i32, i32, i32
  }
  func.func @transform_3(%arg0: i32, %arg1: i32) -> (i32, i32, i32) {
    %c0_i32 = arith.constant 0 : i32
    %c0_i32_0 = arith.constant 0 : i32
    %c0_i32_1 = arith.constant 0 : i32
    %c0_i32_2 = arith.constant 0 : i32
    return %c0_i32, %c0_i32_0, %c0_i32_1 : i32, i32, i32
  }
  func.func @transform_4(%arg0: i32, %arg1: i32) -> (i32, i32) {
    %c0_i32 = arith.constant 0 : i32
    %c0_i32_0 = arith.constant 0 : i32
    %c0_i32_1 = arith.constant 0 : i32
    return %c0_i32, %c0_i32_0 : i32, i32
  }
  func.func @transform_5(%arg0: i32, %arg1: i32) -> (i32, i32) {
    %c0_i32 = arith.constant 0 : i32
    %c0_i32_0 = arith.constant 0 : i32
    %c0_i32_1 = arith.constant 0 : i32
    return %c0_i32, %c0_i32_0 : i32, i32
  }
  func.func @transform_6(%arg0: i32, %arg1: i32) -> (i32, i32) {
    %c0_i32 = arith.constant 0 : i32
    %c0_i32_0 = arith.constant 0 : i32
    %c0_i32_1 = arith.constant 0 : i32
    return %c0_i32, %c0_i32_0 : i32, i32
  }
  func.func @transform_7(%arg0: i32, %arg1: i32) -> (i32, i32, i32, i32) {
    %c0_i32 = arith.constant 0 : i32
    %c0_i32_0 = arith.constant 0 : i32
    %c0_i32_1 = arith.constant 0 : i32
    return %arg0, %arg1, %c0_i32, %c0_i32_0 : i32, i32, i32, i32
  }
}

</mosaic_0001>

<bundles_post_ra>
// kernel: project_forward.2
= control target key start
LH: loop header
LB: loop body
LE: loop exit
PB: predicated region body
PF: predicated region fallthrough
CT: control target
= control target key end

     0   :  { %v543_v52 = vlaneseq  ;;  %s2456_s1 = inlined_call_operand.vmem [shape: bf16[128,128], index: 1, kind: input, shape index: {}]   ;;  %s2457_s0 = inlined_call_operand.vmem [shape: bf16[256,128], index: 0, kind: input, shape index: {}]   ;;  %s2458_s2 = inlined_call_operand.vmem [shape: f32[1,128], index: 2, kind: input, shape index: {}]   ;;  %s2459_s3 = inlined_call_operand.vmem [shape: f32[1,128], index: 3, kind: input, shape index: {}]   ;;  %s2460_s4 = inlined_call_operand.vmem [shape: f32[1,128], index: 4, kind: input, shape index: {}]   ;;  %s2461_s5 = inlined_call_operand.vmem [shape: bf16[256,128], index: 5, kind: output, shape index: {}]  }
   0x1   :  { %v1542_v0 = vld [vmem:[%s2456_s1] sm:$0xff]   ;;  %v1543_v1 = vld [vmem:[%s2456_s1 + $0x8] sm:$0xff]   ;;  %v1544_v2 = vld [vmem:[%s2456_s1 + $0x10] sm:$0xff]  }
   0x2   :  { %1478 = vmatprep.subr.bf16.mxu0 %v1542_v0  ;;  %1526 = vmatprep.subr.bf16.mxu1 %v1542_v0  ;;  %v1545_v3 = vld [vmem:[%s2456_s1 + $0x18] sm:$0xff]   ;;  %v1550_v4 = vld [vmem:[%s2457_s0] sm:$0xff]   ;;  %v1547_v7 = vld [vmem:[%s2456_s1 + $0x28] sm:$0xff]   ;;  %v1829_v57 = vand.u32 127, %v543_v52 }
   0x3   :  { %1479 = vmatpush3.bf16.msra.mxu0 %v1542_v0  ;;  %1534 = vmatpush3.bf16.msra.mxu1 %v1542_v0  ;;  %v1551_v5 = vld [vmem:[%s2457_s0 + $0x40] sm:$0xff]   ;;  %v1548_v8 = vld [vmem:[%s2456_s1 + $0x30] sm:$0xff]   ;;  %v1549_v9 = vld [vmem:[%s2456_s1 + $0x38] sm:$0xff]  }
   0x4   :  { %1480 = vmatprep.subr.bf16.mxu0 %v1543_v1  ;;  %1527 = vmatprep.subr.bf16.mxu1 %v1543_v1  ;;  %v1546_v6 = vld [vmem:[%s2456_s1 + $0x20] sm:$0xff]   ;;  %v1552_v10 = vld [vmem:[%s2457_s0 + $0x8] sm:$0xff]   ;;  %v1554_v12 = vld [vmem:[%s2457_s0 + $0x10] sm:$0xff]   ;;  %vm545_vm0 = vcmp.lt.s32.totalorder %v1829_v57, 8 }
   0x5   :  { %1494 = vmatprep.mubr.bf16.mxu0 %v1550_v4  ;;  %1510 = vmatprep.mubr.bf16.mxu1 %v1551_v5  ;;  %v1553_v11 = vld [vmem:[%s2457_s0 + $0x48] sm:$0xff]   ;;  %v1556_v13 = vld [vmem:[%s2457_s0 + $0x50] sm:$0xff]   ;;  %v1555_v14 = vld [vmem:[%s2457_s0 + $0x18] sm:$0xff]  }
   0x6   :  { %v1557_v15 = vld [vmem:[%s2457_s0 + $0x58] sm:$0xff]   ;;  %v1558_v16 = vld [vmem:[%s2457_s0 + $0x20] sm:$0xff]   ;;  %v1559_v18 = vld [vmem:[%s2457_s0 + $0x28] sm:$0xff]  }
   0x7   :  { %1481 = vmatpush3.bf16.msra.mxu0 %v1543_v1  ;;  %1535 = vmatpush3.bf16.msra.mxu1 %v1543_v1  ;;  %v1560_v17 = vld [vmem:[%s2457_s0 + $0x60] sm:$0xff]   ;;  %v1561_v19 = vld [vmem:[%s2457_s0 + $0x68] sm:$0xff]   ;;  %v1562_v20 = vld [vmem:[%s2457_s0 + $0x30] sm:$0xff]  }
   0x8   :  { %1482 = vmatprep.subr.bf16.mxu0 %v1544_v2  ;;  %1528 = vmatprep.subr.bf16.mxu1 %v1544_v2  ;;  %v1564_v21 = vld [vmem:[%s2457_s0 + $0x70] sm:$0xff]   ;;  %v1563_v22 = vld [vmem:[%s2457_s0 + $0x38] sm:$0xff]   ;;  %v1799_v24 = vld [vmem:[%s2458_s2] ss:$0 sm:$0xff] }
   0x9   :  { %v1565_v23 = vld [vmem:[%s2457_s0 + $0x78] sm:$0xff]  }
   0xb   :  { %1483 = vmatpush3.bf16.msra.mxu0 %v1544_v2  ;;  %1536 = vmatpush3.bf16.msra.mxu1 %v1544_v2 }
   0xc   :  { %1484 = vmatprep.subr.bf16.mxu0 %v1545_v3  ;;  %1529 = vmatprep.subr.bf16.mxu1 %v1545_v3 }
   0xf   :  { %1485 = vmatpush3.bf16.msra.mxu0 %v1545_v3  ;;  %1537 = vmatpush3.bf16.msra.mxu1 %v1545_v3 }
  0x10   :  { %1486 = vmatprep.subr.bf16.mxu0 %v1546_v6  ;;  %1530 = vmatprep.subr.bf16.mxu1 %v1546_v6 }
  0x13   :  { %1487 = vmatpush3.bf16.msra.mxu0 %v1546_v6  ;;  %1538 = vmatpush3.bf16.msra.mxu1 %v1546_v6 }
  0x14   :  { %1488 = vmatprep.subr.bf16.mxu0 %v1547_v7  ;;  %1531 = vmatprep.subr.bf16.mxu1 %v1547_v7 }
  0x17   :  { %1489 = vmatpush3.bf16.msra.mxu0 %v1547_v7  ;;  %1539 = vmatpush3.bf16.msra.mxu1 %v1547_v7 }
  0x18   :  { %1490 = vmatprep.subr.bf16.mxu0 %v1548_v8  ;;  %1532 = vmatprep.subr.bf16.mxu1 %v1548_v8 }
  0x1b   :  { %1491 = vmatpush3.bf16.msra.mxu0 %v1548_v8  ;;  %1540 = vmatpush3.bf16.msra.mxu1 %v1548_v8 }
  0x1c   :  { %1492 = vmatprep.subr.bf16.mxu0 %v1549_v9  ;;  %1533 = vmatprep.subr.bf16.mxu1 %v1549_v9 }
  0x1f   :  { %1493 = vmatpush3.bf16.msra.mxu0 %v1549_v9  ;;  %1541 = vmatpush3.bf16.msra.mxu1 %v1549_v9 }
  0x22   :  { %1495 = vmatmul.mubr.bf16.vlgmr.msra.gmra.mrb[0].mxu0 %v1552_v10  ;;  %1511 = vmatmul.mubr.bf16.vlgmr.msra.gmra.mrb[0].mxu1 %v1553_v11 }
  0x23   :  { %1498 = vmatprep.mubr.bf16.mxu0 %v1554_v12  ;;  %1514 = vmatprep.mubr.bf16.mxu1 %v1556_v13 }
  0x2a   :  { %1499 = vmatmul.mubr.bf16.gmra.mrb[4].mxu0 %v1555_v14  ;;  %1515 = vmatmul.mubr.bf16.gmra.mrb[4].mxu1 %v1557_v15 }
  0x2b   :  { %1502 = vmatprep.mubr.bf16.mxu0 %v1558_v16  ;;  %1518 = vmatprep.mubr.bf16.mxu1 %v1560_v17 }
  0x32   :  { %1503 = vmatmul.mubr.bf16.gmra.mrb[8].mxu0 %v1559_v18  ;;  %1519 = vmatmul.mubr.bf16.gmra.mrb[8].mxu1 %v1561_v19 }
  0x33   :  { %1506 = vmatprep.mubr.bf16.mxu0 %v1562_v20  ;;  %1522 = vmatprep.mubr.bf16.mxu1 %v1564_v21 }
  0x3a   :  { %1507 = vmatmul.mubr.bf16.gmra.mrb[12].mxu0 %v1563_v22  ;;  %1523 = vmatmul.mubr.bf16.gmra.mrb[12].mxu1 %v1565_v23 }
  0xf5   :  { %v1496_v25 = vpop.f32.mrb[0].mxu0  ;;  %v1512_v26 = vpop.f32.mrb[0].mxu1 }
  0xf6   :  { %v265_v27 = vadd.f32 %v1496_v25, %v1799_v24  ;;  %v329_v28 = vadd.f32 %v1512_v26, %v1799_v24  ;;  %v256_v29 = vpop.f32.mrb[1].mxu0  ;;  %v320_v30 = vpop.f32.mrb[1].mxu1 }
  0xf7   :  { %v257_v31 = vadd.f32 %v1799_v24, %v256_v29  ;;  %v1805_v32 = vadd.f32 %v1799_v24, %v320_v30  ;;  %v1497_v33 = vpop.f32.mrb[2].mxu0  ;;  %v1513_v34 = vpop.f32.mrb[2].mxu1 }
  0xf8   :  { %v417_v35 = vmul.f32 0.70710677, %v265_v27  ;;  %v433_v36 = vmul.f32 0.70710677, %v329_v28  ;;  %v268_v39 = vadd.f32 %v1497_v33, %v1799_v24  ;;  %v332_v40 = vadd.f32 %v1513_v34, %v1799_v24  ;;  %v259_v41 = vpop.f32.mrb[3].mxu0  ;;  %v323_v42 = vpop.f32.mrb[3].mxu1 }
  0xf9   :  { %v415_v37 = vmul.f32 0.70710677, %v257_v31  ;;  %v431_v38 = vmul.f32 0.70710677, %v1805_v32  ;;  %v1811_v43 = vadd.f32 %v1799_v24, %v323_v42  ;;  %v1825_v55 = vadd.f32 %v1799_v24, %v259_v41 }
  0xfa   :  { %1566 = verf.f32 %v417_v35  ;;  %v418_v44 = vmul.f32 0.70710677, %v268_v39  ;;  %v434_v45 = vmul.f32 0.70710677, %v332_v40  ;;  %v385_v1 = vmul.f32 0.5, %v265_v27 }
  0xfb   :  { %1568 = verf.f32 %v433_v36  ;;  %v432_v47 = vmul.f32 0.70710677, %v1811_v43  ;;  %v416_v60 = vmul.f32 0.70710677, %v1825_v55  ;;  %v401_v5 = vmul.f32 0.5, %v329_v28 }
  0xfc   :  { %1570 = verf.f32 %v415_v37  ;;  %v383_v8 = vmul.f32 0.5, %v257_v31  ;;  %v386_v9 = vmul.f32 0.5, %v268_v39  ;;  %v402_v28 = vmul.f32 0.5, %v332_v40 }
  0xfd   :  { %1572 = verf.f32 %v431_v38  ;;  %v1500_v46 = vpop.f32.mrb[4].mxu0  ;;  %v1816_v49 = vpop.f32.mrb[4].mxu1  ;;  %v399_v30 = vmul.f32 0.5, %v1805_v32 }
  0xfe   :  { %1574 = verf.f32 %v418_v44  ;;  %v1814_v48 = vpop.f32.mrb[5].mxu0  ;;  %v1818_v51 = vpop.f32.mrb[5].mxu1  ;;  %v1855_v29 = vadd.f32 %v1500_v46, %v1799_v24 }
  0xff   :  { %1576 = verf.f32 %v434_v45  ;;  %v1501_v50 = vpop.f32.mrb[6].mxu0  ;;  %v1822_v54 = vpop.f32.mrb[6].mxu1  ;;  %v400_v45 = vmul.f32 0.5, %v1811_v43  ;;  %v1902_v43 = vadd.f32 %v1816_v49, %v1799_v24 }
 0x100   :  { %v1820_v53 = vpop.f32.mrb[7].mxu0  ;;  %1578 = verf.f32 %v432_v47  ;;  %v1827_v56 = vpop.f32.mrb[7].mxu1  ;;  %v1859_v31 = vadd.f32 %v1501_v50, %v1799_v24  ;;  %v421_v46 = vmul.f32 0.70710677, %v1855_v29 }
 0x101   :  { %1580 = verf.f32 %v416_v60  ;;  %v1898_v60 = vadd.f32 %v1822_v54, %v1799_v24 }
 0x102   :  { %1582 = verf.f32 %v421_v46 }
 0x104   :  { %v1567_v58 = vpop.eup %1566 }
 0x105   :  { %v1569_v59 = vpop.eup %1568  ;;  %v481_v61 = vadd.f32 1.0, %v1567_v58  ;;  %v1504_v62 = vpop.f32.mrb[8].mxu0 }
 0x106   :  { %v1832_v63 = vpop.f32.mrb[8].mxu1  ;;  %v1571_v0 = vpop.eup %1570  ;;  %v497_v6 = vadd.f32 1.0, %v1569_v59  ;;  %v1842_v17 = vadd.f32 %v1504_v62, %v1799_v24  ;;  %v422_v59 = vmul.f32 0.70710677, %v1859_v31 }
 0x107   :  { %v288_v2 = vpop.f32.mrb[9].mxu0  ;;  %v1834_v3 = vpop.f32.mrb[9].mxu1  ;;  %v1837_v10 = vmul.f32 %v481_v61, %v385_v1  ;;  %v479_v11 = vadd.f32 1.0, %v1571_v0  ;;  %v1911_v1 = vadd.f32 %v1799_v24, %v1814_v48  ;;  %v1918_v49 = vadd.f32 %v1832_v63, %v1799_v24 }
 0x108   :  { %v1573_v4 = vpop.eup %1572  ;;  %v1505_v12 = vpop.f32.mrb[10].mxu0  ;;  %v1839_v15 = vmul.f32 %v497_v6, %v401_v5  ;;  %v1880_v41 = vadd.f32 %v1799_v24, %v288_v2  ;;  %v1922_v2 = vadd.f32 %v1799_v24, %v1834_v3  ;;  %1584 = verf.f32 %v422_v59 }
 0x109   :  { %v1575_v7 = vpop.eup %1574  ;;  %v1521_v13 = vpop.f32.mrb[10].mxu1  ;;  %v550_v20 = vsel %vm545_vm0, %v1837_v10, 0.0  ;;  %v1852_v26 = vmul.f32 %v479_v11, %v383_v8  ;;  %v495_v27 = vadd.f32 1.0, %v1573_v4  ;;  %v1888_v47 = vadd.f32 %v1505_v12, %v1799_v24 }
 0x10a   :  { %v1577_v14 = vpop.eup %1576  ;;  %v482_v16 = vadd.f32 1.0, %v1575_v7  ;;  %v291_v18 = vpop.f32.mrb[11].mxu0  ;;  %v566_v23 = vsel %vm545_vm0, %v1839_v15, 0.0  ;;  %584 = vadd.xlane.f32.xlu1 %v550_v20  ;;  %v1925_v4 = vadd.f32 %v1521_v13, %v1799_v24  ;;  %v276_v5 = vadd.f32 %v1799_v24, %v1820_v53 }
 0x10b   :  { %v355_v19 = vpop.f32.mrb[11].mxu1  ;;  %v498_v21 = vadd.f32 1.0, %v1577_v14  ;;  %v1579_v22 = vpop.eup %1578  ;;  %616 = vadd.xlane.f32.xlu0 %v566_v23  ;;  %v1875_v32 = vsel %vm545_vm0, %v1852_v26, 0.0  ;;  %v1877_v40 = vmul.f32 %v495_v27, %v399_v30  ;;  %v1891_v50 = vadd.f32 %v1799_v24, %v291_v18 }
 0x10c   :  { %v1850_v25 = vmul.f32 %v482_v16, %v386_v9  ;;  %v496_v37 = vadd.f32 1.0, %v1579_v22  ;;  %v1581_v0 = vpop.eup %1580  ;;  %v1928_v48 = vadd.f32 %v1799_v24, %v355_v19  ;;  %v438_v6 = vmul.f32 0.70710677, %v1898_v60 }
 0x10d   :  { %v1861_v33 = vpop.f32.mrb[12].mxu0  ;;  %v1863_v34 = vpop.f32.mrb[12].mxu1  ;;  %v1868_v36 = vmul.f32 %v498_v21, %v402_v28  ;;  %v564_v54 = vsel %vm545_vm0, %v1877_v40, 0.0  ;;  %v437_v63 = vmul.f32 0.70710677, %v1902_v43  ;;  %v646_v3 = vmul.f32 %v550_v20, %v550_v20 }
 0x10e   :  { %v551_v35 = vsel %vm545_vm0, %v1850_v25, 0.0  ;;  %v304_v38 = vpop.f32.mrb[13].mxu0  ;;  %v1870_v39 = vpop.f32.mrb[13].mxu1  ;;  %v1907_v62 = vmul.f32 %v496_v37, %v400_v45  ;;  %v480_v8 = vadd.f32 1.0, %v1581_v0  ;;  %v384_v9 = vmul.f32 0.5, %v1825_v55 }
 0x10f   :  { %586 = vadd.xlane.f32.xlu1 %v551_v35  ;;  %v1509_v42 = vpop.f32.mrb[14].mxu0  ;;  %v1882_v44 = vpop.f32.mrb[14].mxu1  ;;  %580 = vadd.xlane.f32.xlu0 %v1875_v32  ;;  %v567_v61 = vsel %vm545_vm0, %v1868_v36, 0.0  ;;  %v419_v11 = vmul.f32 0.70710677, %v1911_v1  ;;  %1586 = verf.f32 %v438_v6  ;;  %v340_v53 = vadd.f32 %v1799_v24, %v1827_v56 }
 0x110   :  { %v307_v52 = vpop.f32.mrb[15].mxu0  ;;  %v1893_v58 = vpop.f32.mrb[15].mxu1  ;;  %v565_v7 = vsel %vm545_vm0, %v1907_v62, 0.0  ;;  %v420_v12 = vmul.f32 0.70710677, %v276_v5  ;;  %v647_v13 = vmul.f32 %v551_v35, %v551_v35  ;;  %1588 = verf.f32 %v437_v63 }
 0x111   :  { %v337_v14 = vadd.f32 %v1799_v24, %v1818_v51  ;;  %v662_v16 = vmul.f32 %v566_v23, %v566_v23  ;;  %v1943_v18 = vmul.f32 %v480_v8, %v384_v9  ;;  %v436_v55 = vmul.f32 0.70710677, %v340_v53  ;;  %v1583_v20 = vpop.eup %1582 }
 0x112   :  { %1590 = verf.f32 %v420_v12  ;;  %v663_v19 = vmul.f32 %v567_v61, %v567_v61  ;;  %v1585_v22 = vpop.eup %1584  ;;  %v1950_v51 = vadd.f32 %v1861_v33, %v1799_v24  ;;  %v1953_v23 = vadd.f32 %v1799_v24, %v304_v38 }
 0x113   :  { %618 = vadd.xlane.f32.xlu1 %v567_v61  ;;  %612 = vadd.xlane.f32.xlu0 %v564_v54  ;;  %1592 = verf.f32 %v419_v11  ;;  %v435_v21 = vmul.f32 0.70710677, %v337_v14  ;;  %v549_v56 = vsel %vm545_vm0, %v1943_v18, 0.0  ;;  %v1956_v27 = vadd.f32 %v1509_v42, %v1799_v24 }
 0x114   :  { %v1959_v28 = vadd.f32 %v1799_v24, %v307_v52  ;;  %1594 = verf.f32 %v436_v55  ;;  %v645_v30 = vmul.f32 %v549_v56, %v549_v56  ;;  %v1963_v35 = vadd.f32 %v1863_v34, %v1799_v24 }
 0x115   :  { %v390_v37 = vmul.f32 0.5, %v1859_v31  ;;  %1596 = verf.f32 %v435_v21  ;;  %v644_v33 = vmul.f32 %v1875_v32, %v1875_v32  ;;  %v486_v38 = vadd.f32 1.0, %v1585_v22 }
 0x116   :  { %v389_v42 = vmul.f32 0.5, %v1855_v29  ;;  %v485_v46 = vadd.f32 1.0, %v1583_v20  ;;  %v1971_v59 = vadd.f32 %v1799_v24, %v1870_v39  ;;  %v1975_v34 = vadd.f32 %v1882_v44, %v1799_v24 }
 0x117   :  { %614 = vadd.xlane.f32.xlu1 %v565_v7  ;;  %680 = vadd.xlane.f32.xlu0 %v646_v3  ;;  %v661_v31 = vmul.f32 %v565_v7, %v565_v7  ;;  %v1979_v32 = vadd.f32 %v1799_v24, %v1893_v58  ;;  %v406_v61 = vmul.f32 0.5, %v1898_v60  ;;  %v660_v29 = vmul.f32 %v564_v54, %v564_v54 }
 0x118   :  { %v1982_v0 = vmul.f32 %v486_v38, %v390_v37  ;;  %v405_v3 = vmul.f32 0.5, %v1902_v43  ;;  %v1985_v39 = vmul.f32 %v485_v46, %v389_v42  ;;  %v388_v7 = vmul.f32 0.5, %v276_v5 }
 0x119   :  { %v1587_v45 = vpop.eup %1586  ;;  %v387_v9 = vmul.f32 0.5, %v1911_v1  ;;  %v404_v5 = vmul.f32 0.5, %v340_v53  ;;  %v403_v20 = vmul.f32 0.5, %v337_v14  ;;  %v426_v22 = vmul.f32 0.70710677, %v1888_v47 }
 0x11a   :  { %v1589_v52 = vpop.eup %1588  ;;  %v502_v6 = vadd.f32 1.0, %v1587_v45  ;;  %v555_v24 = vsel %vm545_vm0, %v1982_v0, 0.0  ;;  %v554_v43 = vsel %vm545_vm0, %v1985_v39, 0.0  ;;  %v425_v53 = vmul.f32 0.70710677, %v1842_v17 }
 0x11b   :  { %682 = vadd.xlane.f32.xlu1 %v647_v13  ;;  %712 = vadd.xlane.f32.xlu0 %v662_v16  ;;  %v501_v8 = vadd.f32 1.0, %v1589_v52  ;;  %1598 = verf.f32 %v426_v22  ;;  %v442_v38 = vmul.f32 0.70710677, %v1925_v4  ;;  %v441_v45 = vmul.f32 0.70710677, %v1918_v49 }
 0x11c   :  { %v1591_v63 = vpop.eup %1590  ;;  %v1990_v58 = vmul.f32 %v502_v6, %v406_v61  ;;  %1600 = verf.f32 %v425_v53  ;;  %v424_v52 = vmul.f32 0.70710677, %v1891_v50  ;;  %v423_v61 = vmul.f32 0.70710677, %v1880_v41 }
 0x11d   :  { %v1593_v44 = vpop.eup %1592  ;;  %v484_v60 = vadd.f32 1.0, %v1591_v63  ;;  %v1996_v11 = vmul.f32 %v501_v8, %v405_v3  ;;  %1602 = verf.f32 %v442_v38  ;;  %v440_v6 = vmul.f32 0.70710677, %v1928_v48 }
 0x11e   :  { %v1595_v54 = vpop.eup %1594  ;;  %v483_v12 = vadd.f32 1.0, %v1593_v44  ;;  %v571_v16 = vsel %vm545_vm0, %v1990_v58, 0.0  ;;  %1604 = verf.f32 %v441_v45  ;;  %v439_v3 = vmul.f32 0.70710677, %v1922_v2 }
 0x11f   :  { %714 = vadd.xlane.f32.xlu1 %v663_v19  ;;  %582 = vadd.xlane.f32.xlu0 %v549_v56  ;;  %v1597_v13 = vpop.eup %1596  ;;  %v2001_v55 = vmul.f32 %v484_v60, %v388_v7  ;;  %v500_v19 = vadd.f32 1.0, %v1595_v54  ;;  %v570_v1 = vsel %vm545_vm0, %v1996_v11, 0.0  ;;  %1606 = verf.f32 %v424_v52 }
 0x120   :  { %v2006_v21 = vmul.f32 %v483_v12, %v387_v9  ;;  %v499_v56 = vadd.f32 1.0, %v1597_v13  ;;  %v667_v63 = vmul.f32 %v571_v16, %v571_v16  ;;  %1608 = verf.f32 %v423_v61 }
 0x121   :  { %v2013_v37 = vmul.f32 %v500_v19, %v404_v5  ;;  %v666_v8 = vmul.f32 %v570_v1, %v570_v1  ;;  %1610 = verf.f32 %v440_v6  ;;  %v394_v60 = vmul.f32 0.5, %v1888_v47 }
 0x122   :  { %v552_v14 = vsel %vm545_vm0, %v2006_v21, 0.0  ;;  %1612 = verf.f32 %v439_v3  ;;  %v393_v12 = vmul.f32 0.5, %v1842_v17  ;;  %v410_v19 = vmul.f32 0.5, %v1925_v4 }
 0x123   :  { %678 = vadd.xlane.f32.xlu1 %v645_v30  ;;  %676 = vadd.xlane.f32.xlu0 %v644_v33  ;;  %v553_v30 = vsel %vm545_vm0, %v2001_v55, 0.0  ;;  %v2018_v33 = vmul.f32 %v499_v56, %v403_v20  ;;  %v569_v42 = vsel %vm545_vm0, %v2013_v37, 0.0  ;;  %v648_v54 = vmul.f32 %v552_v14, %v552_v14 }
 0x124   :  { %v409_v47 = vmul.f32 0.5, %v1918_v49  ;;  %v392_v17 = vmul.f32 0.5, %v1891_v50  ;;  %v408_v50 = vmul.f32 0.5, %v1928_v48  ;;  %v430_v48 = vmul.f32 0.70710677, %v1956_v27 }
 0x125   :  { %v568_v46 = vsel %vm545_vm0, %v2018_v33, 0.0  ;;  %v1599_v44 = vpop.eup %1598 }
 0x126   :  { %v1601_v7 = vpop.eup %1600  ;;  %v490_v9 = vadd.f32 1.0, %v1599_v44  ;;  %v664_v20 = vmul.f32 %v568_v46, %v568_v46  ;;  %1614 = verf.f32 %v430_v48 }
 0x127   :  { %710 = vadd.xlane.f32.xlu1 %v661_v31  ;;  %708 = vadd.xlane.f32.xlu0 %v660_v29  ;;  %v651_v31 = vmul.f32 %v555_v24, %v555_v24  ;;  %v650_v29 = vmul.f32 %v554_v43, %v554_v43  ;;  %v489_v13 = vadd.f32 1.0, %v1601_v7  ;;  %v429_v7 = vmul.f32 0.70710677, %v1950_v51 }
 0x129   :  { %v2038_v53 = vmul.f32 %v489_v13, %v393_v12  ;;  %1616 = verf.f32 %v429_v7 }
 0x12b   :  { %594 = vadd.xlane.f32.xlu1 %v555_v24  ;;  %592 = vadd.xlane.f32.xlu0 %v554_v43  ;;  %v649_v24 = vmul.f32 %v553_v30, %v553_v30  ;;  %v1603_v43 = vpop.eup %1602  ;;  %v558_v49 = vsel %vm545_vm0, %v2038_v53, 0.0 }
 0x12c   :  { %v1605_v5 = vpop.eup %1604  ;;  %v506_v56 = vadd.f32 1.0, %v1603_v43  ;;  %v445_v43 = vmul.f32 0.70710677, %v1963_v35 }
 0x12d   :  { %v1607_v22 = vpop.eup %1606 }
 0x12e   :  { %v2044_v4 = vmul.f32 %v506_v56, %v410_v19  ;;  %v488_v45 = vadd.f32 1.0, %v1607_v22  ;;  %v427_v19 = vmul.f32 0.70710677, %v1953_v23  ;;  %v444_v56 = vmul.f32 0.70710677, %v1979_v32 }
 0x12f   :  { %626 = vadd.xlane.f32.xlu1 %v571_v16  ;;  %624 = vadd.xlane.f32.xlu0 %v570_v1  ;;  %v665_v16 = vmul.f32 %v569_v42, %v569_v42  ;;  %v2035_v1 = vmul.f32 %v490_v9, %v394_v60  ;;  %v446_v9 = vmul.f32 0.70710677, %v1975_v34 }
 0x130   :  { %v2056_v6 = vmul.f32 %v488_v45, %v392_v17  ;;  %v398_v45 = vmul.f32 0.5, %v1956_v27  ;;  %v413_v27 = vmul.f32 0.5, %v1963_v35 }
 0x131   :  { %v559_v38 = vsel %vm545_vm0, %v2035_v1, 0.0  ;;  %1618 = verf.f32 %v446_v9 }
 0x132   :  { %1620 = verf.f32 %v445_v43 }
 0x133   :  { %590 = vadd.xlane.f32.xlu1 %v553_v30  ;;  %588 = vadd.xlane.f32.xlu0 %v552_v14  ;;  %v505_v30 = vadd.f32 1.0, %v1605_v5  ;;  %v1609_v14 = vpop.eup %1608  ;;  %v428_v5 = vmul.f32 0.70710677, %v1959_v28 }
 0x135   :  { %v2050_v52 = vmul.f32 %v505_v30, %v409_v47  ;;  %1622 = verf.f32 %v428_v5  ;;  %v443_v47 = vmul.f32 0.70710677, %v1971_v59 }
 0x136   :  { %1624 = verf.f32 %v427_v19 }
 0x137   :  { %622 = vadd.xlane.f32.xlu1 %v569_v42  ;;  %620 = vadd.xlane.f32.xlu0 %v568_v46  ;;  %v1611_v42 = vpop.eup %1610  ;;  %v391_v46 = vmul.f32 0.5, %v1880_v41  ;;  %v407_v41 = vmul.f32 0.5, %v1922_v2  ;;  %v574_v3 = vsel %vm545_vm0, %v2050_v52, 0.0  ;;  %1626 = verf.f32 %v444_v56 }
 0x138   :  { %v1613_v61 = vpop.eup %1612  ;;  %v670_v30 = vmul.f32 %v574_v3, %v574_v3  ;;  %1628 = verf.f32 %v443_v47 }
 0x139   :  { %v503_v44 = vadd.f32 1.0, %v1613_v61 }
 0x13b   :  { %690 = vadd.xlane.f32.xlu1 %v651_v31  ;;  %688 = vadd.xlane.f32.xlu0 %v650_v29  ;;  %v487_v31 = vadd.f32 1.0, %v1609_v14  ;;  %v575_v29 = vsel %vm545_vm0, %v2044_v4, 0.0  ;;  %v1615_v14 = vpop.eup %1614 }
 0x13c   :  { %v671_v22 = vmul.f32 %v575_v29, %v575_v29  ;;  %v1617_v17 = vpop.eup %1616 }
 0x13d   :  { %v493_v61 = vadd.f32 1.0, %v1617_v17 }
 0x13f   :  { %722 = vadd.xlane.f32.xlu1 %v667_v63  ;;  %720 = vadd.xlane.f32.xlu0 %v666_v8  ;;  %v504_v63 = vadd.f32 1.0, %v1611_v42  ;;  %v2062_v8 = vmul.f32 %v487_v31, %v391_v46  ;;  %v494_v46 = vadd.f32 1.0, %v1615_v14  ;;  %v397_v31 = vmul.f32 0.5, %v1950_v51 }
 0x140   :  { %v396_v51 = vmul.f32 0.5, %v1959_v28  ;;  %v412_v28 = vmul.f32 0.5, %v1979_v32 }
 0x141   :  { %v2069_v60 = vmul.f32 %v504_v63, %v408_v50  ;;  %v556_v2 = vsel %vm545_vm0, %v2062_v8, 0.0  ;;  %v414_v63 = vmul.f32 0.5, %v1975_v34  ;;  %v2094_v7 = vmul.f32 %v493_v61, %v397_v31 }
 0x142   :  { %v652_v42 = vmul.f32 %v556_v2, %v556_v2 }
 0x143   :  { %686 = vadd.xlane.f32.xlu1 %v649_v24  ;;  %684 = vadd.xlane.f32.xlu0 %v648_v54  ;;  %v557_v24 = vsel %vm545_vm0, %v2056_v6, 0.0  ;;  %v2074_v54 = vmul.f32 %v503_v44, %v407_v41  ;;  %v573_v12 = vsel %vm545_vm0, %v2069_v60, 0.0  ;;  %v562_v35 = vsel %vm545_vm0, %v2094_v7, 0.0 }
 0x145   :  { %v572_v13 = vsel %vm545_vm0, %v2074_v54, 0.0 }
 0x146   :  { %v668_v41 = vmul.f32 %v572_v13, %v572_v13 }
 0x147   :  { %718 = vadd.xlane.f32.xlu1 %v665_v16  ;;  %716 = vadd.xlane.f32.xlu0 %v664_v20  ;;  %v655_v16 = vmul.f32 %v559_v38, %v559_v38  ;;  %v654_v20 = vmul.f32 %v558_v49, %v558_v49 }
 0x14b   :  { %602 = vadd.xlane.f32.xlu1 %v559_v38  ;;  %600 = vadd.xlane.f32.xlu0 %v558_v49  ;;  %v653_v38 = vmul.f32 %v557_v24, %v557_v24  ;;  %v1619_v49 = vpop.eup %1618 }
 0x14c   :  { %v1621_v50 = vpop.eup %1620  ;;  %v510_v44 = vadd.f32 1.0, %v1619_v49  ;;  %v658_v49 = vmul.f32 %v562_v35, %v562_v35 }
 0x14d   :  { %v1623_v48 = vpop.eup %1622 }
 0x14e   :  { %v2100_v34 = vmul.f32 %v510_v44, %v414_v63  ;;  %v492_v43 = vadd.f32 1.0, %v1623_v48 }
 0x14f   :  { %634 = vadd.xlane.f32.xlu1 %v575_v29  ;;  %632 = vadd.xlane.f32.xlu0 %v574_v3  ;;  %v669_v29 = vmul.f32 %v573_v12, %v573_v12  ;;  %v2091_v3 = vmul.f32 %v494_v46, %v398_v45 }
 0x150   :  { %v2112_v56 = vmul.f32 %v492_v43, %v396_v51 }
 0x151   :  { %v563_v9 = vsel %vm545_vm0, %v2091_v3, 0.0 }
 0x152   :  { %v561_v32 = vsel %vm545_vm0, %v2112_v56, 0.0  ;;  %v659_v46 = vmul.f32 %v563_v9, %v563_v9 }
 0x153   :  { %598 = vadd.xlane.f32.xlu1 %v557_v24  ;;  %596 = vadd.xlane.f32.xlu0 %v556_v2  ;;  %v509_v24 = vadd.f32 1.0, %v1621_v50  ;;  %v1625_v2 = vpop.eup %1624  ;;  %v657_v31 = vmul.f32 %v561_v32, %v561_v32 }
 0x155   :  { %v2106_v5 = vmul.f32 %v509_v24, %v413_v27 }
 0x157   :  { %630 = vadd.xlane.f32.xlu1 %v573_v12  ;;  %628 = vadd.xlane.f32.xlu0 %v572_v13  ;;  %v1627_v12 = vpop.eup %1626  ;;  %v395_v13 = vmul.f32 0.5, %v1953_v23  ;;  %v411_v23 = vmul.f32 0.5, %v1971_v59  ;;  %v578_v47 = vsel %vm545_vm0, %v2106_v5, 0.0 }
 0x158   :  { %v1629_v19 = vpop.eup %1628 }
 0x159   :  { %v507_v14 = vadd.f32 1.0, %v1629_v19 }
 0x15b   :  { %698 = vadd.xlane.f32.xlu1 %v655_v16  ;;  %696 = vadd.xlane.f32.xlu0 %v654_v20  ;;  %v491_v16 = vadd.f32 1.0, %v1625_v2  ;;  %v579_v20 = vsel %vm545_vm0, %v2100_v34, 0.0 }
 0x15c   :  { %v675_v63 = vmul.f32 %v579_v20, %v579_v20 }
 0x15f   :  { %730 = vadd.xlane.f32.xlu1 %v671_v22  ;;  %728 = vadd.xlane.f32.xlu0 %v670_v30  ;;  %v508_v22 = vadd.f32 1.0, %v1627_v12  ;;  %v2118_v30 = vmul.f32 %v491_v16, %v395_v13 }
 0x161   :  { %v2123_v17 = vmul.f32 %v508_v22, %v412_v28  ;;  %v560_v59 = vsel %vm545_vm0, %v2118_v30, 0.0 }
 0x162   :  { %v656_v61 = vmul.f32 %v560_v59, %v560_v59 }
 0x163   :  { %694 = vadd.xlane.f32.xlu1 %v653_v38  ;;  %692 = vadd.xlane.f32.xlu0 %v652_v42  ;;  %v2128_v38 = vmul.f32 %v507_v14, %v411_v23  ;;  %v577_v45 = vsel %vm545_vm0, %v2123_v17, 0.0 }
 0x164   :  { %v673_v50 = vmul.f32 %v577_v45, %v577_v45 }
 0x165   :  { %v576_v42 = vsel %vm545_vm0, %v2128_v38, 0.0 }
 0x167   :  { %726 = vadd.xlane.f32.xlu1 %v669_v29  ;;  %724 = vadd.xlane.f32.xlu0 %v668_v41  ;;  %v672_v29 = vmul.f32 %v576_v42, %v576_v42  ;;  %v674_v41 = vmul.f32 %v578_v47, %v578_v47 }
 0x16b   :  { %610 = vadd.xlane.f32.xlu1 %v563_v9  ;;  %608 = vadd.xlane.f32.xlu0 %v562_v35 }
 0x16f   :  { %642 = vadd.xlane.f32.xlu1 %v579_v20  ;;  %640 = vadd.xlane.f32.xlu0 %v578_v47 }
 0x173   :  { %606 = vadd.xlane.f32.xlu1 %v561_v32  ;;  %604 = vadd.xlane.f32.xlu0 %v560_v59 }
 0x177   :  { %638 = vadd.xlane.f32.xlu1 %v577_v45  ;;  %636 = vadd.xlane.f32.xlu0 %v576_v42 }
 0x17b   :  { %706 = vadd.xlane.f32.xlu1 %v659_v46  ;;  %704 = vadd.xlane.f32.xlu0 %v658_v49 }
 0x17f   :  { %702 = vadd.xlane.f32.xlu1 %v657_v31  ;;  %700 = vadd.xlane.f32.xlu0 %v656_v61 }
 0x183   :  { %734 = vadd.xlane.f32.xlu1 %v673_v50  ;;  %732 = vadd.xlane.f32.xlu0 %v672_v29 }
 0x187   :  { %738 = vadd.xlane.f32.xlu1 %v675_v63  ;;  %736 = vadd.xlane.f32.xlu0 %v674_v41 }
 0x197   :  { %v585_v44 = vpop.xlane.xlu1 %584 }
 0x198   :  { %v617_v57 = vpop.xlane.xlu0 %616  ;;  %v2136_v51 = vmul.f32 0.125, %v585_v44 }
 0x199   :  { %v2140_v13 = vmul.f32 0.125, %v617_v57 }
 0x19a   :  { %v806_v35 = vmul.f32 %v2136_v51, %v2136_v51 }
 0x19b   :  { %v822_v14 = vmul.f32 %v2140_v13, %v2140_v13 }
 0x19c   :  { %v587_v48 = vpop.xlane.xlu1 %586  ;;  %v581_v27 = vpop.xlane.xlu0 %580 }
 0x19d   :  { %v2138_v43 = vmul.f32 0.125, %v587_v48  ;;  %v2152_v63 = vmul.f32 0.125, %v581_v27 }
 0x19f   :  { %v807_v20 = vmul.f32 %v2138_v43, %v2138_v43  ;;  %v804_v27 = vmul.f32 %v2152_v63, %v2152_v63 }
 0x1a0   :  { %v619_v24 = vpop.xlane.xlu1 %618  ;;  %v613_v2 = vpop.xlane.xlu0 %612 }
 0x1a1   :  { %v2146_v22 = vmul.f32 0.125, %v619_v24 }
 0x1a3   :  { %v823_v31 = vmul.f32 %v2146_v22, %v2146_v22 }
 0x1a4   :  { %v615_v9 = vpop.xlane.xlu1 %614  ;;  %v681_v12 = vpop.xlane.xlu0 %680 }
 0x1a5   :  { %v774_v16 = vmul.f32 0.125, %v681_v12  ;;  %v2156_v24 = vmul.f32 0.125, %v615_v9 }
 0x1a7   :  { %v838_v19 = vsub.f32 %v774_v16, %v806_v35 }
 0x1a8   :  { %v683_v28 = vpop.xlane.xlu1 %682  ;;  %v713_v47 = vpop.xlane.xlu0 %712 }
 0x1a9   :  { %v775_v23 = vmul.f32 0.125, %v683_v28  ;;  %v870_v32 = vmax.f32 %v838_v19, 0.0  ;;  %v790_v59 = vmul.f32 0.125, %v713_v47 }
 0x1ab   :  { %v839_v45 = vsub.f32 %v775_v23, %v807_v20  ;;  %v934_v42 = vadd.f32 1e-05, %v870_v32  ;;  %v854_v46 = vsub.f32 %v790_v59, %v822_v14  ;;  %v2162_v23 = vmul.f32 0.125, %v613_v2 }
 0x1ac   :  { %v715_v49 = vpop.xlane.xlu1 %714  ;;  %v583_v29 = vpop.xlane.xlu0 %582  ;;  %v902_v2 = vsub.f32 %v1837_v10, %v2136_v51 }
 0x1ad   :  { %v871_v61 = vmax.f32 %v839_v45, 0.0  ;;  %v791_v50 = vmul.f32 0.125, %v715_v49  ;;  %1630 = vrsqrt.f32 %v934_v42  ;;  %v886_v41 = vmax.f32 %v854_v46, 0.0 }
 0x1ae   :  { %v2154_v44 = vmul.f32 0.125, %v583_v29  ;;  %v821_v45 = vmul.f32 %v2156_v24, %v2156_v24 }
 0x1af   :  { %v935_v57 = vadd.f32 1e-05, %v871_v61  ;;  %v855_v48 = vsub.f32 %v791_v50, %v823_v31  ;;  %v950_v12 = vadd.f32 1e-05, %v886_v41  ;;  %v820_v31 = vmul.f32 %v2162_v23, %v2162_v23 }
 0x1b0   :  { %v679_v35 = vpop.xlane.xlu1 %678  ;;  %v805_v19 = vmul.f32 %v2154_v44, %v2154_v44  ;;  %v677_v20 = vpop.xlane.xlu0 %676 }
 0x1b1   :  { %1632 = vrsqrt.f32 %v935_v57  ;;  %v887_v16 = vmax.f32 %v855_v48, 0.0  ;;  %v773_v28 = vmul.f32 0.125, %v679_v35  ;;  %v772_v47 = vmul.f32 0.125, %v677_v20 }
 0x1b2   :  { %1634 = vrsqrt.f32 %v950_v12 }
 0x1b3   :  { %v951_v14 = vadd.f32 1e-05, %v887_v16  ;;  %v837_v32 = vsub.f32 %v773_v28, %v805_v19  ;;  %v836_v9 = vsub.f32 %v772_v47, %v804_v27  ;;  %v2173_v16 = vld [vmem:[%s2459_s3] ss:$0 sm:$0xff]  ;;  %v903_v27 = vsub.f32 %v1850_v25, %v2138_v43 }
 0x1b4   :  { %v711_v59 = vpop.xlane.xlu1 %710  ;;  %v709_v49 = vpop.xlane.xlu0 %708  ;;  %v918_v47 = vsub.f32 %v1839_v15, %v2140_v13  ;;  %v919_v43 = vsub.f32 %v1868_v36, %v2146_v22  ;;  %v900_v22 = vsub.f32 %v1852_v26, %v2152_v63 }
 0x1b5   :  { %1636 = vrsqrt.f32 %v951_v14  ;;  %v869_v42 = vmax.f32 %v837_v32, 0.0  ;;  %v789_v46 = vmul.f32 0.125, %v711_v59  ;;  %v868_v61 = vmax.f32 %v836_v9, 0.0 }
 0x1b6   :  { %v788_v50 = vmul.f32 0.125, %v709_v49 }
 0x1b7   :  { %v933_v29 = vadd.f32 1e-05, %v869_v42  ;;  %v853_v41 = vsub.f32 %v789_v46, %v821_v45  ;;  %v1631_v57 = vpop.eup %1630  ;;  %v932_v48 = vadd.f32 1e-05, %v868_v61  ;;  %v2183_v46 = vld [vmem:[%s2460_s4] ss:$0 sm:$0xff] }
 0x1b8   :  { %v852_v12 = vsub.f32 %v788_v50, %v820_v31  ;;  %v595_v35 = vpop.xlane.xlu1 %594  ;;  %v998_v19 = vmul.f32 %v1631_v57, %v902_v2  ;;  %v593_v20 = vpop.xlane.xlu0 %592 }
 0x1b9   :  { %1638 = vrsqrt.f32 %v933_v29  ;;  %v885_v28 = vmax.f32 %v853_v41, 0.0  ;;  %v2206_v63 = vmul.f32 0.125, %v593_v20 }
 0x1ba   :  { %1640 = vrsqrt.f32 %v932_v48  ;;  %v884_v10 = vmax.f32 %v852_v12, 0.0  ;;  %v1036_v9 = vmul.f32 %v2173_v16, %v998_v19  ;;  %v901_v12 = vsub.f32 %v1943_v18, %v2154_v44 }
 0x1bb   :  { %v1633_v51 = vpop.eup %1632  ;;  %v949_v14 = vadd.f32 1e-05, %v885_v28  ;;  %v917_v18 = vsub.f32 %v1907_v62, %v2156_v24 }
 0x1bc   :  { %v1635_v32 = vpop.eup %1634  ;;  %v999_v59 = vmul.f32 %v1633_v51, %v903_v27  ;;  %v948_v45 = vadd.f32 1e-05, %v884_v10  ;;  %v627_v42 = vpop.xlane.xlu1 %626  ;;  %v1074_v31 = vadd.f32 %v2183_v46, %v1036_v9  ;;  %v2201_v51 = vmul.f32 0.125, %v595_v35 }
 0x1bd   :  { %v1014_v49 = vmul.f32 %v1635_v32, %v918_v47  ;;  %1642 = vrsqrt.f32 %v949_v14  ;;  %v625_v25 = vpop.xlane.xlu0 %624 }
 0x1be   :  { %v1037_v15 = vmul.f32 %v2173_v16, %v999_v59  ;;  %1644 = vrsqrt.f32 %v948_v45  ;;  %v916_v59 = vsub.f32 %v1877_v40, %v2162_v23  ;;  %v811_v62 = vmul.f32 %v2201_v51, %v2201_v51 }
 0x1bf   :  { %v1637_v13 = vpop.eup %1636  ;;  %v1052_v50 = vmul.f32 %v2173_v16, %v1014_v49 }
 0x1c0   :  { %v1075_v61 = vadd.f32 %v2183_v46, %v1037_v15  ;;  %v1015_v2 = vmul.f32 %v1637_v13, %v919_v43  ;;  %v591_v29 = vpop.xlane.xlu1 %590  ;;  %v2218_v13 = vmul.f32 0.125, %v627_v42 }
 0x1c1   :  { %v589_v41 = vpop.xlane.xlu0 %588  ;;  %v1090_v28 = vadd.f32 %v2183_v46, %v1052_v50  ;;  %v2223_v50 = vmul.f32 0.125, %v625_v25 }
 0x1c2   :  { %v1367_v57 = vpack.c.bf16 %v1075_v61, %v1074_v31  ;;  %v1053_v48 = vmul.f32 %v2173_v16, %v1015_v2  ;;  %v810_v61 = vmul.f32 %v2206_v63, %v2206_v63  ;;  %v2229_v42 = vmul.f32 0.125, %v589_v41 }
 0x1c3   :  { %v1639_v36 = vpop.eup %1638 }
 0x1c4   :  { %v1641_v19 = vpop.eup %1640  ;;  %1439 = vst [vmem:[%s2461_s5 + $0x8] sm:$0xff] %v1367_v57   ;;  %v1091_v27 = vadd.f32 %v2183_v46, %v1053_v48  ;;  %v997_v10 = vmul.f32 %v1639_v36, %v901_v12  ;;  %v623_v47 = vpop.xlane.xlu1 %622 }
 0x1c5   :  { %v996_v14 = vmul.f32 %v1641_v19, %v900_v22  ;;  %v621_v32 = vpop.xlane.xlu0 %620  ;;  %v2227_v22 = vmul.f32 0.125, %v591_v29  ;;  %v826_v29 = vmul.f32 %v2223_v50, %v2223_v50 }
 0x1c6   :  { %v1407_v44 = vpack.c.bf16 %v1091_v27, %v1090_v28  ;;  %v1035_v26 = vmul.f32 %v2173_v16, %v997_v10  ;;  %v827_v27 = vmul.f32 %v2218_v13, %v2218_v13 }
 0x1c7   :  { %v1643_v9 = vpop.eup %1642  ;;  %v1034_v45 = vmul.f32 %v2173_v16, %v996_v14 }
 0x1c8   :  { %v1645_v49 = vpop.eup %1644  ;;  %1447 = vst [vmem:[%s2461_s5 + $0x48] sm:$0xff] %v1407_v44   ;;  %v1073_v35 = vadd.f32 %v2183_v46, %v1035_v26  ;;  %v1013_v43 = vmul.f32 %v1643_v9, %v917_v18  ;;  %v691_v24 = vpop.xlane.xlu1 %690 }
 0x1c9   :  { %v1072_v20 = vadd.f32 %v2183_v46, %v1034_v45  ;;  %v1012_v15 = vmul.f32 %v1645_v49, %v916_v59  ;;  %v779_v40 = vmul.f32 0.125, %v691_v24  ;;  %v689_v23 = vpop.xlane.xlu0 %688  ;;  %v809_v45 = vmul.f32 %v2227_v22, %v2227_v22 }
 0x1ca   :  { %v1051_v31 = vmul.f32 %v2173_v16, %v1013_v43  ;;  %v778_v2 = vmul.f32 0.125, %v689_v23  ;;  %v808_v49 = vmul.f32 %v2229_v42, %v2229_v42  ;;  %v2246_v24 = vmul.f32 0.125, %v623_v47 }
 0x1cb   :  { %v1362_v57 = vpack.c.bf16 %v1073_v35, %v1072_v20  ;;  %v1050_v48 = vmul.f32 %v2173_v16, %v1012_v15  ;;  %v843_v12 = vsub.f32 %v779_v40, %v811_v62  ;;  %v2248_v23 = vmul.f32 0.125, %v621_v32 }
 0x1cc   :  { %v1089_v36 = vadd.f32 %v2183_v46, %v1051_v31  ;;  %v842_v19 = vsub.f32 %v778_v2, %v810_v61  ;;  %v723_v28 = vpop.xlane.xlu1 %722 }
 0x1cd   :  { %1363 = vst [vmem:[%s2461_s5] sm:$0xff] %v1362_v57   ;;  %v1088_v25 = vadd.f32 %v2183_v46, %v1050_v48  ;;  %v875_v10 = vmax.f32 %v843_v12, 0.0  ;;  %v795_v14 = vmul.f32 0.125, %v723_v28  ;;  %v721_v18 = vpop.xlane.xlu0 %720 }
 0x1ce   :  { %v874_v44 = vmax.f32 %v842_v19, 0.0  ;;  %v794_v41 = vmul.f32 0.125, %v721_v18  ;;  %v825_v19 = vmul.f32 %v2246_v24, %v2246_v24 }
 0x1cf   :  { %v1402_v26 = vpack.c.bf16 %v1089_v36, %v1088_v25  ;;  %v939_v9 = vadd.f32 1e-05, %v875_v10  ;;  %v859_v59 = vsub.f32 %v795_v14, %v827_v27  ;;  %v824_v27 = vmul.f32 %v2248_v23, %v2248_v23 }
 0x1d0   :  { %v938_v35 = vadd.f32 1e-05, %v874_v44  ;;  %v858_v43 = vsub.f32 %v794_v41, %v826_v29  ;;  %v687_v62 = vpop.xlane.xlu1 %686 }
 0x1d1   :  { %1446 = vst [vmem:[%s2461_s5 + $0x40] sm:$0xff] %v1402_v26   ;;  %1646 = vrsqrt.f32 %v939_v9  ;;  %v891_v20 = vmax.f32 %v859_v59, 0.0  ;;  %v777_v15 = vmul.f32 0.125, %v687_v62  ;;  %v685_v40 = vpop.xlane.xlu0 %684  ;;  %v907_v59 = vsub.f32 %v1982_v0, %v2201_v51 }
 0x1d2   :  { %1648 = vrsqrt.f32 %v938_v35  ;;  %v890_v31 = vmax.f32 %v858_v43, 0.0  ;;  %v776_v61 = vmul.f32 0.125, %v685_v40  ;;  %v906_v35 = vsub.f32 %v1985_v39, %v2206_v63 }
 0x1d3   :  { %v955_v2 = vadd.f32 1e-05, %v891_v20  ;;  %v841_v57 = vsub.f32 %v777_v15, %v809_v45  ;;  %v922_v51 = vsub.f32 %v1996_v11, %v2223_v50  ;;  %v904_v11 = vsub.f32 %v2006_v21, %v2229_v42 }
 0x1d4   :  { %v954_v48 = vadd.f32 1e-05, %v890_v31  ;;  %v840_v12 = vsub.f32 %v776_v61, %v808_v49  ;;  %v719_v36 = vpop.xlane.xlu1 %718  ;;  %v921_v21 = vsub.f32 %v2013_v37, %v2246_v24 }
 0x1d5   :  { %1650 = vrsqrt.f32 %v955_v2  ;;  %v873_v47 = vmax.f32 %v841_v57, 0.0  ;;  %v793_v28 = vmul.f32 0.125, %v719_v36  ;;  %v717_v25 = vpop.xlane.xlu0 %716  ;;  %v923_v2 = vsub.f32 %v1990_v58, %v2218_v13 }
 0x1d6   :  { %1652 = vrsqrt.f32 %v954_v48  ;;  %v872_v32 = vmax.f32 %v840_v12, 0.0  ;;  %v792_v10 = vmul.f32 0.125, %v717_v25  ;;  %v905_v58 = vsub.f32 %v2001_v55, %v2227_v22 }
 0x1d7   :  { %v937_v14 = vadd.f32 1e-05, %v873_v47  ;;  %v857_v18 = vsub.f32 %v793_v28, %v825_v19 }
 0x1d8   :  { %v936_v29 = vadd.f32 1e-05, %v872_v32  ;;  %v856_v44 = vsub.f32 %v792_v10, %v824_v27  ;;  %v603_v41 = vpop.xlane.xlu1 %602 }
 0x1d9   :  { %1654 = vrsqrt.f32 %v937_v14  ;;  %v889_v26 = vmax.f32 %v857_v18, 0.0  ;;  %v601_v9 = vpop.xlane.xlu0 %600  ;;  %v2273_v18 = vmul.f32 0.125, %v603_v41  ;;  %v920_v41 = vsub.f32 %v2018_v33, %v2248_v23 }
 0x1da   :  { %1656 = vrsqrt.f32 %v936_v29  ;;  %v888_v45 = vmax.f32 %v856_v44, 0.0 }
 0x1db   :  { %v1647_v49 = vpop.eup %1646  ;;  %v953_v43 = vadd.f32 1e-05, %v889_v26  ;;  %v2282_v26 = vmul.f32 0.125, %v601_v9 }
 0x1dc   :  { %v1649_v62 = vpop.eup %1648  ;;  %v1003_v20 = vmul.f32 %v1647_v49, %v907_v59  ;;  %v952_v15 = vadd.f32 1e-05, %v888_v45  ;;  %v635_v40 = vpop.xlane.xlu1 %634 }
 0x1dd   :  { %v1002_v31 = vmul.f32 %v1649_v62, %v906_v35  ;;  %1658 = vrsqrt.f32 %v953_v43  ;;  %v633_v61 = vpop.xlane.xlu0 %632  ;;  %v2294_v9 = vmul.f32 0.125, %v635_v40 }
 0x1de   :  { %v1041_v57 = vmul.f32 %v2173_v16, %v1003_v20  ;;  %1660 = vrsqrt.f32 %v952_v15  ;;  %v815_v20 = vmul.f32 %v2273_v18, %v2273_v18 }
 0x1df   :  { %v1651_v0 = vpop.eup %1650  ;;  %v1040_v39 = vmul.f32 %v2173_v16, %v1002_v31 }
 0x1e0   :  { %v1653_v63 = vpop.eup %1652  ;;  %v1079_v48 = vadd.f32 %v2183_v46, %v1041_v57  ;;  %v1019_v12 = vmul.f32 %v1651_v0, %v923_v2  ;;  %v599_v36 = vpop.xlane.xlu1 %598  ;;  %v814_v2 = vmul.f32 %v2282_v26, %v2282_v26  ;;  %v2299_v57 = vmul.f32 0.125, %v633_v61 }
 0x1e1   :  { %v1078_v19 = vadd.f32 %v2183_v46, %v1040_v39  ;;  %v1018_v47 = vmul.f32 %v1653_v63, %v922_v51  ;;  %v597_v28 = vpop.xlane.xlu0 %596 }
 0x1e2   :  { %v1057_v13 = vmul.f32 %v2173_v16, %v1019_v12  ;;  %v2303_v12 = vmul.f32 0.125, %v599_v36  ;;  %v2305_v40 = vmul.f32 0.125, %v597_v28  ;;  %v830_v36 = vmul.f32 %v2299_v57, %v2299_v57 }
 0x1e3   :  { %v1655_v25 = vpop.eup %1654  ;;  %v1377_v50 = vpack.c.bf16 %v1079_v48, %v1078_v19  ;;  %v1056_v27 = vmul.f32 %v2173_v16, %v1018_v47 }
 0x1e4   :  { %v1657_v32 = vpop.eup %1656  ;;  %v1095_v10 = vadd.f32 %v2183_v46, %v1057_v13  ;;  %v1001_v14 = vmul.f32 %v1655_v25, %v905_v58  ;;  %v631_v29 = vpop.xlane.xlu1 %630  ;;  %v831_v58 = vmul.f32 %v2294_v9, %v2294_v9 }
 0x1e5   :  { %1441 = vst [vmem:[%s2461_s5 + $0x18] sm:$0xff] %v1377_v50   ;;  %v1094_v55 = vadd.f32 %v2183_v46, %v1056_v27  ;;  %v1000_v22 = vmul.f32 %v1657_v32, %v904_v11  ;;  %v629_v44 = vpop.xlane.xlu0 %628 }
 0x1e6   :  { %v1039_v42 = vmul.f32 %v2173_v16, %v1001_v14  ;;  %v813_v14 = vmul.f32 %v2303_v12, %v2303_v12 }
 0x1e7   :  { %v1659_v59 = vpop.eup %1658  ;;  %v1417_v45 = vpack.c.bf16 %v1095_v10, %v1094_v55  ;;  %v1038_v49 = vmul.f32 %v2173_v16, %v1000_v22  ;;  %v812_v55 = vmul.f32 %v2305_v40, %v2305_v40 }
 0x1e8   :  { %v1661_v35 = vpop.eup %1660  ;;  %v1077_v43 = vadd.f32 %v2183_v46, %v1039_v42  ;;  %v1017_v62 = vmul.f32 %v1659_v59, %v921_v21  ;;  %v699_v15 = vpop.xlane.xlu1 %698  ;;  %v2322_v59 = vmul.f32 0.125, %v631_v29 }
 0x1e9   :  { %1449 = vst [vmem:[%s2461_s5 + $0x58] sm:$0xff] %v1417_v45   ;;  %v1076_v37 = vadd.f32 %v2183_v46, %v1038_v49  ;;  %v1016_v24 = vmul.f32 %v1661_v35, %v920_v41  ;;  %v783_v33 = vmul.f32 0.125, %v699_v15  ;;  %v697_v23 = vpop.xlane.xlu0 %696  ;;  %v2324_v35 = vmul.f32 0.125, %v629_v44 }
 0x1ea   :  { %v1055_v31 = vmul.f32 %v2173_v16, %v1017_v62  ;;  %v782_v0 = vmul.f32 0.125, %v697_v23  ;;  %v829_v23 = vmul.f32 %v2322_v59, %v2322_v59 }
 0x1eb   :  { %v1372_v51 = vpack.c.bf16 %v1077_v43, %v1076_v37  ;;  %v1054_v39 = vmul.f32 %v2173_v16, %v1016_v24  ;;  %v847_v63 = vsub.f32 %v783_v33, %v815_v20 }
 0x1ec   :  { %v1093_v48 = vadd.f32 %v2183_v46, %v1055_v31  ;;  %v846_v19 = vsub.f32 %v782_v0, %v814_v2  ;;  %v731_v47 = vpop.xlane.xlu1 %730  ;;  %v828_v0 = vmul.f32 %v2324_v35, %v2324_v35 }
 0x1ed   :  { %1440 = vst [vmem:[%s2461_s5 + $0x10] sm:$0xff] %v1372_v51   ;;  %v1092_v61 = vadd.f32 %v2183_v46, %v1054_v39  ;;  %v879_v13 = vmax.f32 %v847_v63, 0.0  ;;  %v799_v25 = vmul.f32 0.125, %v731_v47  ;;  %v729_v11 = vpop.xlane.xlu0 %728 }
 0x1ee   :  { %v878_v50 = vmax.f32 %v846_v19, 0.0  ;;  %v798_v28 = vmul.f32 0.125, %v729_v11 }
 0x1ef   :  { %v1412_v27 = vpack.c.bf16 %v1093_v48, %v1092_v61  ;;  %v943_v32 = vadd.f32 1e-05, %v879_v13  ;;  %v863_v10 = vsub.f32 %v799_v25, %v831_v58  ;;  %v911_v13 = vsub.f32 %v2035_v1, %v2273_v18 }
 0x1f0   :  { %v942_v22 = vadd.f32 1e-05, %v878_v50  ;;  %v862_v21 = vsub.f32 %v798_v28, %v830_v36  ;;  %v695_v42 = vpop.xlane.xlu1 %694  ;;  %v910_v36 = vsub.f32 %v2038_v53, %v2282_v26  ;;  %v926_v53 = vsub.f32 %v2050_v52, %v2299_v57 }
 0x1f1   :  { %1448 = vst [vmem:[%s2461_s5 + $0x50] sm:$0xff] %v1412_v27   ;;  %1662 = vrsqrt.f32 %v943_v32  ;;  %v895_v41 = vmax.f32 %v863_v10, 0.0  ;;  %v781_v45 = vmul.f32 0.125, %v695_v42  ;;  %v693_v49 = vpop.xlane.xlu0 %692  ;;  %v908_v52 = vsub.f32 %v2062_v8, %v2305_v40 }
 0x1f2   :  { %1664 = vrsqrt.f32 %v942_v22  ;;  %v894_v43 = vmax.f32 %v862_v21, 0.0  ;;  %v780_v62 = vmul.f32 0.125, %v693_v49  ;;  %v927_v22 = vsub.f32 %v2044_v4, %v2294_v9 }
 0x1f3   :  { %v959_v20 = vadd.f32 1e-05, %v895_v41  ;;  %v845_v15 = vsub.f32 %v781_v45, %v813_v14  ;;  %v909_v4 = vsub.f32 %v2056_v6, %v2303_v12  ;;  %v925_v8 = vsub.f32 %v2069_v60, %v2322_v59 }
 0x1f4   :  { %v958_v37 = vadd.f32 1e-05, %v894_v43  ;;  %v844_v24 = vsub.f32 %v780_v62, %v812_v55  ;;  %v727_v33 = vpop.xlane.xlu1 %726 }
 0x1f5   :  { %1666 = vrsqrt.f32 %v959_v20  ;;  %v877_v29 = vmax.f32 %v845_v15, 0.0  ;;  %v797_v31 = vmul.f32 0.125, %v727_v33  ;;  %v725_v2 = vpop.xlane.xlu0 %724 }
 0x1f6   :  { %1668 = vrsqrt.f32 %v958_v37  ;;  %v876_v44 = vmax.f32 %v844_v24, 0.0  ;;  %v796_v51 = vmul.f32 0.125, %v725_v2 }
 0x1f7   :  { %v941_v39 = vadd.f32 1e-05, %v877_v29  ;;  %v861_v63 = vsub.f32 %v797_v31, %v829_v23 }
 0x1f8   :  { %v940_v48 = vadd.f32 1e-05, %v876_v44  ;;  %v860_v19 = vsub.f32 %v796_v51, %v828_v0  ;;  %v611_v47 = vpop.xlane.xlu1 %610  ;;  %v924_v44 = vsub.f32 %v2074_v54, %v2324_v35 }
 0x1f9   :  { %1670 = vrsqrt.f32 %v941_v39  ;;  %v893_v61 = vmax.f32 %v861_v63, 0.0  ;;  %v609_v58 = vpop.xlane.xlu0 %608  ;;  %v2357_v29 = vmul.f32 0.125, %v611_v47 }
 0x1fa   :  { %1672 = vrsqrt.f32 %v940_v48  ;;  %v892_v25 = vmax.f32 %v860_v19, 0.0  ;;  %v2362_v2 = vmul.f32 0.125, %v609_v58 }
 0x1fb   :  { %v1663_v11 = vpop.eup %1662  ;;  %v957_v50 = vadd.f32 1e-05, %v893_v61  ;;  %v819_v54 = vmul.f32 %v2357_v29, %v2357_v29 }
 0x1fc   :  { %v1665_v28 = vpop.eup %1664  ;;  %v1007_v27 = vmul.f32 %v1663_v11, %v911_v13  ;;  %v956_v32 = vadd.f32 1e-05, %v892_v25  ;;  %v2334_v10 = vpop.xlane.xlu1 %642  ;;  %v818_v25 = vmul.f32 %v2362_v2, %v2362_v2 }
 0x1fd   :  { %v1006_v14 = vmul.f32 %v1665_v28, %v910_v36  ;;  %1674 = vrsqrt.f32 %v957_v50  ;;  %v2336_v55 = vpop.xlane.xlu0 %640 }
 0x1fe   :  { %v1045_v1 = vmul.f32 %v2173_v16, %v1007_v27  ;;  %1676 = vrsqrt.f32 %v956_v32 }
 0x1ff   :  { %v1667_v18 = vpop.eup %1666  ;;  %v1044_v26 = vmul.f32 %v2173_v16, %v1006_v14 }
 0x200   :  { %v1669_v21 = vpop.eup %1668  ;;  %v1083_v42 = vadd.f32 %v2183_v46, %v1045_v1  ;;  %v1023_v41 = vmul.f32 %v1667_v18, %v927_v22  ;;  %v607_v45 = vpop.xlane.xlu1 %606 }
 0x201   :  { %v1082_v49 = vadd.f32 %v2183_v46, %v1044_v26  ;;  %v1022_v43 = vmul.f32 %v1669_v21, %v926_v53  ;;  %v605_v62 = vpop.xlane.xlu0 %604  ;;  %v2368_v47 = vmul.f32 0.125, %v607_v45 }
 0x202   :  { %v1061_v9 = vmul.f32 %v2173_v16, %v1023_v41  ;;  %v2379_v11 = vmul.f32 0.125, %v605_v62 }
 0x203   :  { %v1671_v20 = vpop.eup %1670  ;;  %v1387_v57 = vpack.c.bf16 %v1083_v42, %v1082_v49  ;;  %v1060_v15 = vmul.f32 %v2173_v16, %v1022_v43  ;;  %v817_v14 = vmul.f32 %v2368_v47, %v2368_v47 }
 0x204   :  { %v1673_v37 = vpop.eup %1672  ;;  %v1099_v24 = vadd.f32 %v2183_v46, %v1061_v9  ;;  %v1005_v33 = vmul.f32 %v1671_v20, %v909_v4  ;;  %v639_v23 = vpop.xlane.xlu1 %638  ;;  %v816_v41 = vmul.f32 %v2379_v11, %v2379_v11  ;;  %v2396_v20 = vmul.f32 0.125, %v2334_v10 }
 0x205   :  { %1443 = vst [vmem:[%s2461_s5 + $0x28] sm:$0xff] %v1387_v57   ;;  %v1098_v6 = vadd.f32 %v2183_v46, %v1060_v15  ;;  %v1004_v12 = vmul.f32 %v1673_v37, %v908_v52  ;;  %v637_v31 = vpop.xlane.xlu0 %636  ;;  %v2389_v53 = vmul.f32 0.125, %v639_v23  ;;  %v2399_v52 = vmul.f32 0.125, %v2336_v55 }
 0x206   :  { %v1043_v40 = vmul.f32 %v2173_v16, %v1005_v33  ;;  %v2393_v45 = vmul.f32 0.125, %v637_v31 }
 0x207   :  { %v1675_v0 = vpop.eup %1674  ;;  %v1427_v51 = vpack.c.bf16 %v1099_v24, %v1098_v6  ;;  %v1042_v39 = vmul.f32 %v2173_v16, %v1004_v12  ;;  %v833_v24 = vmul.f32 %v2389_v53, %v2389_v53 }
 0x208   :  { %v1677_v63 = vpop.eup %1676  ;;  %v1081_v48 = vadd.f32 %v2183_v46, %v1043_v40  ;;  %v1021_v19 = vmul.f32 %v1675_v0, %v925_v8  ;;  %v707_v61 = vpop.xlane.xlu1 %706  ;;  %v832_v10 = vmul.f32 %v2393_v45, %v2393_v45 }
 0x209   :  { %1451 = vst [vmem:[%s2461_s5 + $0x68] sm:$0xff] %v1427_v51   ;;  %v1080_v60 = vadd.f32 %v2183_v46, %v1042_v39  ;;  %v1020_v59 = vmul.f32 %v1677_v63, %v924_v44  ;;  %v787_v35 = vmul.f32 0.125, %v707_v61  ;;  %v705_v58 = vpop.xlane.xlu0 %704  ;;  %v835_v51 = vmul.f32 %v2396_v20, %v2396_v20 }
 0x20a   :  { %v1059_v13 = vmul.f32 %v2173_v16, %v1021_v19  ;;  %v786_v36 = vmul.f32 0.125, %v705_v58  ;;  %v834_v19 = vmul.f32 %v2399_v52, %v2399_v52 }
 0x20b   :  { %v1382_v50 = vpack.c.bf16 %v1081_v48, %v1080_v60  ;;  %v1058_v28 = vmul.f32 %v2173_v16, %v1020_v59  ;;  %v851_v27 = vsub.f32 %v787_v35, %v819_v54 }
 0x20c   :  { %v1097_v32 = vadd.f32 %v2183_v46, %v1059_v13  ;;  %v850_v22 = vsub.f32 %v786_v36, %v818_v25  ;;  %v703_v1 = vpop.xlane.xlu1 %702  ;;  %v915_v25 = vsub.f32 %v2091_v3, %v2357_v29  ;;  %v912_v3 = vsub.f32 %v2118_v30, %v2379_v11 }
 0x20d   :  { %1442 = vst [vmem:[%s2461_s5 + $0x20] sm:$0xff] %v1382_v50   ;;  %v1096_v18 = vadd.f32 %v2183_v46, %v1058_v28  ;;  %v883_v26 = vmax.f32 %v851_v27, 0.0  ;;  %v785_v21 = vmul.f32 0.125, %v703_v1  ;;  %v701_v42 = vpop.xlane.xlu0 %700  ;;  %v914_v28 = vsub.f32 %v2094_v7, %v2362_v2 }
 0x20e   :  { %v882_v49 = vmax.f32 %v850_v22, 0.0  ;;  %v784_v43 = vmul.f32 0.125, %v701_v42 }
 0x20f   :  { %v1422_v62 = vpack.c.bf16 %v1097_v32, %v1096_v18  ;;  %v947_v4 = vadd.f32 1e-05, %v883_v26  ;;  %v849_v9 = vsub.f32 %v785_v21, %v817_v14  ;;  %v913_v18 = vsub.f32 %v2112_v56, %v2368_v47 }
 0x210   :  { %v946_v57 = vadd.f32 1e-05, %v882_v49  ;;  %v848_v15 = vsub.f32 %v784_v43, %v816_v41  ;;  %v735_v37 = vpop.xlane.xlu1 %734  ;;  %v929_v43 = vsub.f32 %v2123_v17, %v2389_v53  ;;  %v931_v53 = vsub.f32 %v2100_v34, %v2396_v20 }
 0x211   :  { %1450 = vst [vmem:[%s2461_s5 + $0x60] sm:$0xff] %v1422_v62   ;;  %1678 = vrsqrt.f32 %v947_v4  ;;  %v881_v33 = vmax.f32 %v849_v9, 0.0  ;;  %v801_v23 = vmul.f32 0.125, %v735_v37  ;;  %v733_v6 = vpop.xlane.xlu0 %732  ;;  %v928_v62 = vsub.f32 %v2128_v38, %v2393_v45 }
 0x212   :  { %1680 = vrsqrt.f32 %v946_v57  ;;  %v880_v55 = vmax.f32 %v848_v15, 0.0  ;;  %v800_v12 = vmul.f32 0.125, %v733_v6  ;;  %v930_v45 = vsub.f32 %v2106_v5, %v2399_v52 }
 0x213   :  { %v945_v31 = vadd.f32 1e-05, %v881_v33  ;;  %v865_v8 = vsub.f32 %v801_v23, %v833_v24 }
 0x214   :  { %v944_v40 = vadd.f32 1e-05, %v880_v55  ;;  %v864_v0 = vsub.f32 %v800_v12, %v832_v10  ;;  %v739_v44 = vpop.xlane.xlu1 %738 }
 0x215   :  { %1682 = vrsqrt.f32 %v945_v31  ;;  %v897_v39 = vmax.f32 %v865_v8, 0.0  ;;  %v803_v63 = vmul.f32 0.125, %v739_v44  ;;  %v737_v48 = vpop.xlane.xlu0 %736 }
 0x216   :  { %1684 = vrsqrt.f32 %v944_v40  ;;  %v896_v61 = vmax.f32 %v864_v0, 0.0  ;;  %v802_v60 = vmul.f32 0.125, %v737_v48 }
 0x217   :  { %v961_v59 = vadd.f32 1e-05, %v897_v39  ;;  %v867_v54 = vsub.f32 %v803_v63, %v835_v51 }
 0x218   :  { %v960_v35 = vadd.f32 1e-05, %v896_v61  ;;  %v866_v58 = vsub.f32 %v802_v60, %v834_v19 }
 0x219   :  { %1686 = vrsqrt.f32 %v961_v59  ;;  %v899_v13 = vmax.f32 %v867_v54, 0.0 }
 0x21a   :  { %1688 = vrsqrt.f32 %v960_v35  ;;  %v898_v36 = vmax.f32 %v866_v58, 0.0 }
 0x21b   :  { %v1679_v50 = vpop.eup %1678  ;;  %v963_v27 = vadd.f32 1e-05, %v899_v13 }
 0x21c   :  { %v1681_v32 = vpop.eup %1680  ;;  %v1011_v14 = vmul.f32 %v1679_v50, %v915_v25  ;;  %v962_v22 = vadd.f32 1e-05, %v898_v36 }
 0x21d   :  { %v1010_v1 = vmul.f32 %v1681_v32, %v914_v28  ;;  %1690 = vrsqrt.f32 %v963_v27 }
 0x21e   :  { %v1049_v26 = vmul.f32 %v2173_v16, %v1011_v14  ;;  %1692 = vrsqrt.f32 %v962_v22 }
 0x21f   :  { %v1683_v21 = vpop.eup %1682  ;;  %v1048_v29 = vmul.f32 %v2173_v16, %v1010_v1 }
 0x220   :  { %v1685_v42 = vpop.eup %1684  ;;  %v1087_v7 = vadd.f32 %v2183_v46, %v1049_v26  ;;  %v1009_v2 = vmul.f32 %v1683_v21, %v913_v18 }
 0x221   :  { %v1086_v41 = vadd.f32 %v2183_v46, %v1048_v29  ;;  %v1008_v49 = vmul.f32 %v1685_v42, %v912_v3 }
 0x222   :  { %v1047_v56 = vmul.f32 %v2173_v16, %v1009_v2 }
 0x223   :  { %v1687_v47 = vpop.eup %1686  ;;  %v1397_v4 = vpack.c.bf16 %v1087_v7, %v1086_v41  ;;  %v1046_v30 = vmul.f32 %v2173_v16, %v1008_v49 }
 0x224   :  { %v1689_v11 = vpop.eup %1688  ;;  %v1085_v9 = vadd.f32 %v2183_v46, %v1047_v56  ;;  %v1025_v57 = vmul.f32 %v1687_v47, %v929_v43 }
 0x225   :  { %1445 = vst [vmem:[%s2461_s5 + $0x38] sm:$0xff] %v1397_v4   ;;  %v1084_v15 = vadd.f32 %v2183_v46, %v1046_v30  ;;  %v1024_v17 = vmul.f32 %v1689_v11, %v928_v62 }
 0x226   :  { %v1063_v37 = vmul.f32 %v2173_v16, %v1025_v57 }
 0x227   :  { %v1691_v38 = vpop.eup %1690  ;;  %v1392_v24 = vpack.c.bf16 %v1085_v9, %v1084_v15  ;;  %v1062_v33 = vmul.f32 %v2173_v16, %v1024_v17 }
 0x228   :  { %v1693_v23 = vpop.eup %1692  ;;  %v1101_v6 = vadd.f32 %v2183_v46, %v1063_v37  ;;  %v1027_v10 = vmul.f32 %v1691_v38, %v931_v53 }
 0x229   :  { %1444 = vst [vmem:[%s2461_s5 + $0x30] sm:$0xff] %v1392_v24   ;;  %v1100_v55 = vadd.f32 %v2183_v46, %v1062_v33  ;;  %v1026_v34 = vmul.f32 %v1693_v23, %v930_v45 }
 0x22a   :  { %v1065_v20 = vmul.f32 %v2173_v16, %v1027_v10 }
 0x22b   :  { %v1432_v12 = vpack.c.bf16 %v1101_v6, %v1100_v55  ;;  %v1064_v31 = vmul.f32 %v2173_v16, %v1026_v34 }
 0x22c   :  { %v1103_v5 = vadd.f32 %v2183_v46, %v1065_v20 }
 0x22d   :  { %1452 = vst [vmem:[%s2461_s5 + $0x70] sm:$0xff] %v1432_v12   ;;  %v1102_v52 = vadd.f32 %v2183_v46, %v1064_v31 }
 0x22f   :  { %v1437_v8 = vpack.c.bf16 %v1103_v5, %v1102_v52 }
 0x231   :  { %1453 = vst [vmem:[%s2461_s5 + $0x78] sm:$0xff] %v1437_v8  }

// kernel: project_forward.3
= control target key start
LH: loop header
LB: loop body
LE: loop exit
PB: predicated region body
PF: predicated region fallthrough
CT: control target
= control target key end

     0   :  { %s6453_s24 = smov 0   ;;  %s6455_s25 = smov 0   ;;  %s7428_s0 = inlined_call_operand.vmem [shape: bf16[2,6,40,128], index: 0, kind: input, shape index: {}, may-alias: {0,1,2}]   ;;  %s7429_s1 = inlined_call_operand.vmem [shape: bf16[2,6,40,128], index: 1, kind: input, shape index: {}, may-alias: {0,1,2}]   ;;  %s7430_s2 = inlined_call_operand.vmem [shape: bf16[2,6,40,128], index: 2, kind: input, shape index: {}, may-alias: {0,1,2}]   ;;  %s7431_s3 = inlined_call_operand.vmem [shape: bf16[27,128,128], index: 3, kind: input, shape index: {}]   ;;  %s7432_s4 = inlined_call_operand.vmem [shape: f32[1,128], index: 4, kind: input, shape index: {}]   ;;  %s7433_s5 = inlined_call_operand.vmem [shape: f32[1,128], index: 5, kind: input, shape index: {}]   ;;  %s7434_s6 = inlined_call_operand.vmem [shape: f32[1,128], index: 6, kind: input, shape index: {}]   ;;  %s7435_s7 = inlined_call_operand.vmem [shape: f32[2,4,24,128], index: 7, kind: output, shape index: {}]  }
   0x1   :  { %s6457_s26 = smov 0   ;;  %s6459_s27 = smov 0  }
   0x2   :  { %s6461_s28 = smov 0  }
   0x3 LB: > { %s26_s29 = sadd.s32 1, %s6403_s26  ;;  %s29_s30 = sadd.s32 1, %s6407_s27  ;;  %s6411_s28 = sphi %s6461_s28, %s17_s28   ;;  %s6407_s27 = sphi %s6459_s27, %s7440_s27   ;;  %s6403_s26 = sphi %s6457_s26, %s7439_s26   ;;  %s6399_s25 = sphi %s6455_s25, %s7438_s25   ;;  %s6395_s24 = sphi %s6453_s24, %s7437_s24  }
   0x4   : > { %p27_p0 = scmp.ge.s32.totalorder %s26_s29, 4  ;;  %p4539_p1 = scmp.ge.s32.totalorder %s6411_s28, 1 }
   0x5   : > { %p297_p2 = scmp.lt.s32.totalorder %s6411_s28, 9 }
   0x6   : > { %s7442_s29 = smov (%p27_p0, %s26_s29), 0  ;;  %s7444_s30 = smov (!%p27_p0, %s29_s30), %s6407_s27 }
   0x7   : > { %p298_p3 = pnand %p4539_p1, %p297_p2  ;;  %p31_p4 = scmp.ge.s32.totalorder %s7444_s30, 2 }
   0x8   : > { %v6091_v0 = vld [vmem:[%s7431_s3] sm:$0xff] (!%p298_p3)   ;;  %p357_p5 = scmp.lt.s32.totalorder (!%p298_p3), %s6399_s25, 1  ;;  %p359_p6 = scmp.lt.s32.totalorder (!%p298_p3), %s6395_s24, 5  ;;  %v6093_v2 = vld [vmem:[%s7431_s3 + $0x8] sm:$0xff] (!%p298_p3)   ;;  %v6095_v4 = vld [vmem:[%s7431_s3 + $0x10] sm:$0xff] (!%p298_p3)   ;;  %vm723_vm1 = vcmask (!%p298_p3), 1046528  }
   0x9   : > { %s7446_s30 = smov (%p31_p4, %s7444_s30), 0  ;;  %301 = sbr.rel (%p298_p3) target bundleno = 869 (0x365), region = 48 }
   0xa   : > { %v6092_v1 = vld [vmem:[%s7431_s3 + $0x40] sm:$0xff] (!%p298_p3)   ;;  %5505 = vmatprep.subr.bf16.mxu0 (!%p298_p3), %v6091_v0  ;;  %v6094_v3 = vld [vmem:[%s7431_s3 + $0x48] sm:$0xff] (!%p298_p3)   ;;  %v6096_v5 = vld [vmem:[%s7431_s3 + $0x50] sm:$0xff] (!%p298_p3)   ;;  %vm569_vm0 = vsmask.f32 (!%p298_p3), 7424  ;;  %vm865_vm2 = vcmask (!%p298_p3), 1044480  }
   0xb   : > { %5525 = vmatprep.subr.bf16.mxu1 (!%p298_p3), %v6092_v1  ;;  %5506 = vmatpush3.bf16.msra.mxu0 (!%p298_p3), %v6091_v0  ;;  %v6097_v6 = vld [vmem:[%s7431_s3 + $0x18] sm:$0xff] (!%p298_p3)   ;;  %v6099_v8 = vld [vmem:[%s7431_s3 + $0x20] sm:$0xff] (!%p298_p3)   ;;  %v6101_v10 = vld [vmem:[%s7431_s3 + $0x28] sm:$0xff] (!%p298_p3)   ;;  %vm1007_vm3 = vsmask.f32 (!%p298_p3), 4352  ;;  %s366_s9 = sadd.s32 (!%p298_p3), 1, %s6395_s24 }
   0xc   : > { %5526 = vmatpush3.bf16.msra.mxu1 (!%p298_p3), %v6092_v1  ;;  %5507 = vmatprep.subr.bf16.mxu0 (!%p298_p3), %v6093_v2  ;;  %v6098_v7 = vld [vmem:[%s7431_s3 + $0x58] sm:$0xff] (!%p298_p3)   ;;  %v6100_v9 = vld [vmem:[%s7431_s3 + $0x60] sm:$0xff] (!%p298_p3)   ;;  %v6102_v11 = vld [vmem:[%s7431_s3 + $0x68] sm:$0xff] (!%p298_p3)   ;;  %p369_p7 = scmp.lt.s32.totalorder (!%p298_p3), %s366_s9, 5  ;;  %vm1298_vm4 = vcmask (!%p298_p3), 1045504   ;;  %p390_p9 = scmp.lt.s32.totalorder (!%p298_p3), %s6395_s24, 3 }
   0xd   : > { %5527 = vmatprep.subr.bf16.mxu1 (!%p298_p3), %v6094_v3  ;;  %v6103_v15 = vld [vmem:[%s7431_s3 + $0x30] sm:$0xff] (!%p298_p3)   ;;  %v6105_v22 = vld [vmem:[%s7431_s3 + $0x38] sm:$0xff] (!%p298_p3)   ;;  %v6111_v27 = vld [vmem:[%s7431_s3 + $0x80] sm:$0xff] (!%p298_p3)   ;;  %vm1440_vm5 = vsmask.f32 (!%p298_p3), 5376 }
   0xe   : > { %v6104_v19 = vld [vmem:[%s7431_s3 + $0x70] sm:$0xff] (!%p298_p3)   ;;  %v6106_v24 = vld [vmem:[%s7431_s3 + $0x78] sm:$0xff] (!%p298_p3)   ;;  %v6112_v28 = vld [vmem:[%s7431_s3 + $0xc0] sm:$0xff] (!%p298_p3)  }
   0xf   : > { %5508 = vmatpush3.bf16.msra.mxu0 (!%p298_p3), %v6093_v2  ;;  %v6113_v31 = vld [vmem:[%s7431_s3 + $0x88] sm:$0xff] (!%p298_p3)   ;;  %v6115_v33 = vld [vmem:[%s7431_s3 + $0x90] sm:$0xff] (!%p298_p3)   ;;  %v6117_v35 = vld [vmem:[%s7431_s3 + $0x98] sm:$0xff] (!%p298_p3)  }
  0x10   : > { %s7448_s25 = smov (!%p357_p5, %s6399_s25), 1  ;;  %5528 = vmatpush3.bf16.msra.mxu1 %v6094_v3  ;;  %5509 = vmatprep.subr.bf16.mxu0 %v6095_v4  ;;  %v6114_v32 = vld [vmem:[%s7431_s3 + $0xc8] sm:$0xff]   ;;  %v6116_v34 = vld [vmem:[%s7431_s3 + $0xd0] sm:$0xff]   ;;  %v6118_v38 = vld [vmem:[%s7431_s3 + $0xd8] sm:$0xff]   ;;  %s7450_s9 = smov (!%p369_p7, %s366_s9), 5 }
  0x11   : > { %s360_s16 = scalar_select %p359_p6, %s6395_s24, 5  ;;  %5529 = vmatprep.subr.bf16.mxu1 %v6096_v5  ;;  %v6119_v46 = vld [vmem:[%s7431_s3 + $0xa0] sm:$0xff]   ;;  %v6121_v49 = vld [vmem:[%s7431_s3 + $0xa8] sm:$0xff]   ;;  %v6123_v51 = vld [vmem:[%s7431_s3 + $0xb0] sm:$0xff]  }
  0x12   : > { %s6505_s19 = smul.u32 30, %s7448_s25  ;;  %v6120_v47 = vld [vmem:[%s7431_s3 + $0xe0] sm:$0xff]   ;;  %v6122_v50 = vld [vmem:[%s7431_s3 + $0xe8] sm:$0xff]   ;;  %v6124_v52 = vld [vmem:[%s7431_s3 + $0xf0] sm:$0xff]  }
  0x13   : > { %s6045_s22 = smul.u32 5, %s360_s16  ;;  %5510 = vmatpush3.bf16.msra.mxu0 %v6095_v4  ;;  %v6125_v53 = vld [vmem:[%s7431_s3 + $0xb8] sm:$0xff]   ;;  %v6129_v56 = vld [vmem:[%s7431_s3 + $0x100] sm:$0xff]   ;;  %v6133_v63 = vld [vmem:[%s7431_s3 + $0x108] sm:$0xff]  }
  0x14   : > { %5530 = vmatpush3.bf16.msra.mxu1 %v6096_v5  ;;  %5511 = vmatprep.subr.bf16.mxu0 %v6097_v6  ;;  %v6126_v54 = vld [vmem:[%s7431_s3 + $0xf8] sm:$0xff]   ;;  %v6132_v60 = vld [vmem:[%s7431_s3 + $0x140] sm:$0xff]   ;;  %v6134_v5 = vld [vmem:[%s7431_s3 + $0x148] sm:$0xff]   ;;  %s6047_s23 = smul.u32 5, %s7450_s9 }
  0x15   : > { %s363_s11 = sadd.s32 %s6505_s19, %s6045_s22  ;;  %5531 = vmatprep.subr.bf16.mxu1 %v6098_v7  ;;  %s6050_s15 = smul.u32 12, %s7448_s25 }
  0x16   : > { %s4540_s14 = sshll.u32 %s363_s11, 2  ;;  %s373_s21 = sadd.s32 %s6047_s23, %s6505_s19 }
  0x17   : > { %5512 = vmatpush3.bf16.msra.mxu0 %v6097_v6  ;;  %s6532_s8 = scalar_lea.vmem %s7428_s0, %s4540_s14  ;;  %s4541_s11 = sshll.u32 %s373_s21, 2 }
  0x18   : > { %5532 = vmatpush3.bf16.msra.mxu1 %v6098_v7  ;;  %5513 = vmatprep.subr.bf16.mxu0 %v6099_v8  ;;  %v6107_v12 = vld [vmem:[%s6532_s8] sm:$0xff]   ;;  %v6109_v14 = vld [vmem:[%s6532_s8 + $0x8] sm:$0x1f]   ;;  %s6707_s16 = scalar_lea.vmem %s7429_s1, %s4541_s11 }
  0x19   : > { %5533 = vmatprep.subr.bf16.mxu1 %v6100_v9  ;;  %5521 = vmatprep.mubr.bf16.mxu0 %v6107_v12  ;;  %v6108_v13 = vld [vmem:[%s6532_s8] sm:$0xff]   ;;  %v578_v18 = vshll.u32 %v6109_v14, 16  ;;  %v582_v26 = vshrl.u32 %v6109_v14, 16  ;;  %v6110_v29 = vld [vmem:[%s6532_s8 + $0x8] ss:$0 sps:$4 sm:$0xff]   ;;  %v6138_v12 = vld [vmem:[%s7431_s3 + $0x158] sm:$0xff]  }
  0x1a   : > { %v571_v16 = vshrl.u32 %v6108_v13, 16  ;;  %v573_v17 = vshll.u32 %v6108_v13, 16  ;;  %v6127_v36 = vld [vmem:[%s6532_s8] sm:$0xfe]   ;;  %v6574_v37 = vld [vmem:[%s6532_s8 + $0x8] sm:$0x1f]  }
  0x1b   : > { %5514 = vmatpush3.bf16.msra.mxu0 %v6099_v8  ;;  %v580_v21 = vrot.slane %v578_v18, 1  ;;  %v724_v39 = vrot.slane %v6127_v36, 1  ;;  %v725_v40 = vrot.slane %v6574_v37, 1  ;;  %v6130_v41 = vld [vmem:[%s6532_s8] sm:$0xf8]   ;;  %v6148_v57 = vld [vmem:[%s6532_s8 + $0x8] sm:$0xff]  }
  0x1c   : > { %5534 = vmatpush3.bf16.msra.mxu1 %v6100_v9  ;;  %5515 = vmatprep.subr.bf16.mxu0 %v6101_v10  ;;  %v575_v20 = vrot.slane %v573_v17, 1  ;;  %v6131_v42 = vld [vmem:[%s6532_s8 + $0x8] sm:$0x7f]   ;;  %v866_v44 = vrot.slane %v6130_v41, 3  ;;  %v6147_v55 = vld [vmem:[%s6532_s8] sm:$0xf8]  }
  0x1d   : > { %5535 = vmatprep.subr.bf16.mxu1 %v6102_v11  ;;  %v584_v30 = vor.u32 %v582_v26, %v580_v21  ;;  %v726_v43 = vsel %vm723_vm1, %v724_v39, %v725_v40  ;;  %v867_v45 = vrot.slane %v6131_v42, 3  ;;  %v1009_v58 = vshrl.u32 %v6147_v55, 16  ;;  %v6150_v7 = vld [vmem:[%s6532_s8 + $0x4] sm:$0xff]   ;;  %v6135_v9 = vld [vmem:[%s7431_s3 + $0x110] sm:$0xff]  }
  0x1e   : > { %v576_v23 = vor.u32 %v575_v20, %v571_v16  ;;  %v1012_v59 = vshll.u32 %v6147_v55, 16  ;;  %v1017_v61 = vshrl.u32 %v6148_v57, 16  ;;  %v1020_v62 = vshll.u32 %v6148_v57, 16  ;;  %v6139_v13 = vld [vmem:[%s7431_s3 + $0x120] sm:$0xff]   ;;  %v6142_v16 = vld [vmem:[%s7431_s3 + $0x168] sm:$0xff]   ;;  %v6144_v20 = vld [vmem:[%s7431_s3 + $0x170] sm:$0xff]  }
  0x1f   : > { %5516 = vmatpush3.bf16.msra.mxu0 %v6101_v10  ;;  %v868_v48 = vsel %vm865_vm2, %v866_v44, %v867_v45  ;;  %v1011_v0 = vrot.slane %v1009_v58, 3  ;;  %v6136_v10 = vld [vmem:[%s7431_s3 + $0x150] sm:$0xff]   ;;  %v6140_v14 = vld [vmem:[%s7431_s3 + $0x160] sm:$0xff]   ;;  %v6154_v41 = vld [vmem:[%s7431_s3 + $0x1c8] sm:$0xff]  }
  0x20   : > { %5536 = vmatpush3.bf16.msra.mxu1 %v6102_v11  ;;  %5517 = vmatprep.subr.bf16.mxu0 %v6103_v15  ;;  %v581_v25 = vsel %vm569_vm0, %v576_v23, %v580_v21  ;;  %v1014_v1 = vrot.slane %v1012_v59, 4  ;;  %v1019_v2 = vrot.slane %v1017_v61, 3  ;;  %v1022_v3 = vrot.slane %v1020_v62, 4  ;;  %v6137_v11 = vld [vmem:[%s7431_s3 + $0x118] sm:$0xff]   ;;  %v6170_v17 = vld [vmem:[%s6532_s8 + $0x4] sm:$0xfc]  }
  0x21   : > { %5537 = vmatprep.subr.bf16.mxu1 %v6104_v19  ;;  %5541 = vmatprep.mubr.bf16.mxu1 %v581_v25  ;;  %v6171_v18 = vld [vmem:[%s6532_s8 + $0xc] sm:$0x7f]   ;;  %v1442_v21 = vshrl.u32 %v6170_v17, 16  ;;  %v6145_v23 = vld [vmem:[%s7431_s3 + $0x138] sm:$0xff]   ;;  %v6169_v58 = vld [vmem:[%s7431_s3 + $0x200] sm:$0xff]  }
  0x22   : > { %v1015_v4 = vor.u32 %v1014_v1, %v1011_v0  ;;  %v6622_v6 = vor.u32 %v1022_v3, %v1019_v2  ;;  %v1450_v25 = vshrl.u32 %v6171_v18, 16  ;;  %v1453_v26 = vshll.u32 %v6171_v18, 16  ;;  %v6155_v44 = vld [vmem:[%s7431_s3 + $0x190] sm:$0xff]   ;;  %v6166_v55 = vld [vmem:[%s7431_s3 + $0x1f8] sm:$0xff]   ;;  %v6172_v59 = vld [vmem:[%s7431_s3 + $0x240] sm:$0xff]  }
  0x23   : > { %5518 = vmatpush3.bf16.msra.mxu0 %v6103_v15  ;;  %v6141_v15 = vld [vmem:[%s7431_s3 + $0x128] sm:$0xff]   ;;  %v6190_v1 = vld [vmem:[%s6707_s16] sm:$0xff]   ;;  %v6175_v2 = vld [vmem:[%s7431_s3 + $0x210] sm:$0xff]  }
  0x24   : > { %5538 = vmatpush3.bf16.msra.mxu1 %v6104_v19  ;;  %5519 = vmatprep.subr.bf16.mxu0 %v6105_v22  ;;  %v1024_v8 = vsel %vm1007_vm3, %v1015_v4, %v6622_v6  ;;  %v6143_v19 = vld [vmem:[%s7431_s3 + $0x130] sm:$0xff]   ;;  %v6173_v62 = vld [vmem:[%s7431_s3 + $0x208] sm:$0xff]   ;;  %v6177_v4 = vld [vmem:[%s7431_s3 + $0x218] sm:$0xff]  }
  0x25   : > { %5539 = vmatprep.subr.bf16.mxu1 %v6106_v24  ;;  %v6741_v57 = vld [vmem:[%s6532_s8 + $0xc] sm:$0x7f]  }
  0x26   : > { %v1597_v61 = vrot.slane %v6741_v57, 3  ;;  %v6176_v3 = vld [vmem:[%s7431_s3 + $0x250] sm:$0xff]  }
  0x27   : > { %5520 = vmatpush3.bf16.msra.mxu0 %v6105_v22  ;;  %v1445_v22 = vshll.u32 %v6170_v17, 16 }
  0x28   : > { %5540 = vmatpush3.bf16.msra.mxu1 %v6106_v24  ;;  %5545 = vmatprep.subr.bf16.mxu0 %v6111_v27  ;;  %v6146_v24 = vld [vmem:[%s7431_s3 + $0x178] sm:$0xff]  }
  0x29   : > { %5565 = vmatprep.subr.bf16.mxu1 %v6112_v28 }
  0x2a   : > { %5522 = vmatmul.mubr.bf16.vlgmr.msra.gmra.mrb[0].mxu0 %v6110_v29  ;;  %v6149_v29 = vld [vmem:[%s7431_s3 + $0x180] sm:$0xff]  }
  0x2b   : > { %5542 = vmatmul.mubr.bf16.vlgmr.msra.gmra.mrb[0].mxu1 %v584_v30  ;;  %5546 = vmatpush3.bf16.msra.mxu0 %v6111_v27  ;;  %v6167_v27 = vld [vmem:[%s6532_s8 + $0x4] sm:$0xfc]   ;;  %v1444_v30 = vrot.slane %v1442_v21, 2 }
  0x2c   : > { %5566 = vmatpush3.bf16.msra.mxu1 %v6112_v28  ;;  %5547 = vmatprep.subr.bf16.mxu0 %v6113_v31  ;;  %v6671_v28 = vld [vmem:[%s6532_s8 + $0xc] sm:$0x3f]   ;;  %v1299_v36 = vrot.slane %v6167_v27, 2 }
  0x2d   : > { %5567 = vmatprep.subr.bf16.mxu1 %v6114_v32  ;;  %5561 = vmatprep.mubr.bf16.mxu0 %v726_v43  ;;  %v1300_v37 = vrot.slane %v6671_v28, 2  ;;  %v6806_v21 = vld [vmem:[%s6707_s16 + $0x8] sm:$0x1f]  }
  0x2e   : > { %5581 = vmatprep.mubr.bf16.mxu1 %v868_v48  ;;  %v6159_v48 = vld [vmem:[%s7431_s3 + $0x1a0] sm:$0xff]   ;;  %v2026_v28 = vrot.slane %v6806_v21, 1  ;;  %v6233_v21 = vld [vmem:[%s7431_s3 + $0x388] sm:$0xff]  }
  0x2f   : > { %5548 = vmatpush3.bf16.msra.mxu0 %v6113_v31  ;;  %v1447_v31 = vrot.slane %v1445_v22, 3  ;;  %v1301_v42 = vsel %vm1298_vm4, %v1299_v36, %v1300_v37  ;;  %v6189_v22 = vld [vmem:[%s7431_s3 + $0x280] sm:$0xff]   ;;  %v6198_v36 = vld [vmem:[%s7431_s3 + $0x2d8] sm:$0xff]  }
  0x30   : > { %5568 = vmatpush3.bf16.msra.mxu1 %v6114_v32  ;;  %5549 = vmatprep.subr.bf16.mxu0 %v6115_v33  ;;  %v1452_v32 = vrot.slane %v1450_v25, 2 }
  0x31   : > { %5569 = vmatprep.subr.bf16.mxu1 %v6116_v34  ;;  %v1448_v39 = vor.u32 %v1447_v31, %v1444_v30  ;;  %v6194_v30 = vld [vmem:[%s7431_s3 + $0x2c8] sm:$0xff]  }
  0x33   : > { %5550 = vmatpush3.bf16.msra.mxu0 %v6115_v33  ;;  %v1455_v33 = vrot.slane %v1453_v26, 3 }
  0x34   : > { %5570 = vmatpush3.bf16.msra.mxu1 %v6116_v34  ;;  %5551 = vmatprep.subr.bf16.mxu0 %v6117_v35  ;;  %v6152_v34 = vld [vmem:[%s7431_s3 + $0x1c0] sm:$0xff]  }
  0x35   : > { %5571 = vmatprep.subr.bf16.mxu1 %v6118_v38 }
  0x37   : > { %5552 = vmatpush3.bf16.msra.mxu0 %v6117_v35  ;;  %v6151_v35 = vld [vmem:[%s6532_s8 + $0xc] ss:$0 sps:$4 sm:$0xff]  }
  0x38   : > { %5572 = vmatpush3.bf16.msra.mxu1 %v6118_v38  ;;  %5553 = vmatprep.subr.bf16.mxu0 %v6119_v46  ;;  %v6153_v38 = vld [vmem:[%s7431_s3 + $0x188] sm:$0xff]  }
  0x39   : > { %5573 = vmatprep.subr.bf16.mxu1 %v6120_v47 }
  0x3b   : > { %5554 = vmatpush3.bf16.msra.mxu0 %v6119_v46  ;;  %v6157_v46 = vld [vmem:[%s7431_s3 + $0x198] sm:$0xff]  }
  0x3c   : > { %5574 = vmatpush3.bf16.msra.mxu1 %v6120_v47  ;;  %5555 = vmatprep.subr.bf16.mxu0 %v6121_v49  ;;  %v6158_v47 = vld [vmem:[%s7431_s3 + $0x1d8] sm:$0xff]  }
  0x3d   : > { %5575 = vmatprep.subr.bf16.mxu1 %v6122_v50 }
  0x3f   : > { %5556 = vmatpush3.bf16.msra.mxu0 %v6121_v49  ;;  %v6160_v49 = vld [vmem:[%s7431_s3 + $0x1e0] sm:$0xff]  }
  0x40   : > { %5576 = vmatpush3.bf16.msra.mxu1 %v6122_v50  ;;  %5557 = vmatprep.subr.bf16.mxu0 %v6123_v51  ;;  %v6161_v50 = vld [vmem:[%s7431_s3 + $0x1a8] sm:$0xff]  }
  0x41   : > { %5577 = vmatprep.subr.bf16.mxu1 %v6124_v52 }
  0x43   : > { %5558 = vmatpush3.bf16.msra.mxu0 %v6123_v51  ;;  %v6162_v51 = vld [vmem:[%s7431_s3 + $0x1e8] sm:$0xff]  }
  0x44   : > { %5578 = vmatpush3.bf16.msra.mxu1 %v6124_v52  ;;  %5559 = vmatprep.subr.bf16.mxu0 %v6125_v53  ;;  %v6163_v52 = vld [vmem:[%s7431_s3 + $0x1b0] sm:$0xff]  }
  0x45   : > { %5579 = vmatprep.subr.bf16.mxu1 %v6126_v54 }
  0x47   : > { %5560 = vmatpush3.bf16.msra.mxu0 %v6125_v53  ;;  %v6164_v53 = vld [vmem:[%s7431_s3 + $0x1f0] sm:$0xff]  }
  0x48   : > { %5580 = vmatpush3.bf16.msra.mxu1 %v6126_v54  ;;  %5585 = vmatprep.subr.bf16.mxu0 %v6129_v56  ;;  %v6165_v54 = vld [vmem:[%s7431_s3 + $0x1b8] sm:$0xff]  }
  0x49   : > { %5605 = vmatprep.subr.bf16.mxu1 %v6132_v60 }
  0x4a   : > { %5562 = vmatmul.mubr.bf16.vlgmr.msra.gmra.mrb[4].mxu0 %v725_v40  ;;  %v6684_v40 = vor.u32 %v1455_v33, %v1452_v32  ;;  %v6195_v32 = vld [vmem:[%s7431_s3 + $0x290] sm:$0xff]  }
  0x4b   : > { %5586 = vmatpush3.bf16.msra.mxu0 %v6129_v56  ;;  %5582 = vmatmul.mubr.bf16.vlgmr.msra.gmra.mrb[4].mxu1 %v867_v45  ;;  %v6156_v45 = vld [vmem:[%s7431_s3 + $0x1d0] sm:$0xff]   ;;  %v6187_v56 = vld [vmem:[%s6532_s8 + $0x4] sm:$0xf8]   ;;  %s377_s8 = sadd.s32 2, %s6395_s24  ;;  %s7454_s24 = smov (!%p390_p9, %s6395_s24), 3 }
  0x4c   : > { %5606 = vmatpush3.bf16.msra.mxu1 %v6132_v60  ;;  %5587 = vmatprep.subr.bf16.mxu0 %v6133_v63  ;;  %v1457_v43 = vsel %vm1440_vm5, %v1448_v39, %v6684_v40  ;;  %v1596_v60 = vrot.slane %v6187_v56, 3  ;;  %v6201_v39 = vld [vmem:[%s7431_s3 + $0x2a8] sm:$0xff]   ;;  %p6864_p8 = scmp.lt.s32.totalorder %s377_s8, 5  ;;  %s6049_s17 = smul.u32 3, %s7454_s24 }
  0x4d   : > { %5607 = vmatprep.subr.bf16.mxu1 %v6134_v5  ;;  %5601 = vmatprep.mubr.bf16.mxu0 %v1024_v8  ;;  %v6181_v8 = vld [vmem:[%s7431_s3 + $0x228] sm:$0xff]  }
  0x4e   : > { %5621 = vmatprep.mubr.bf16.mxu1 %v6150_v7  ;;  %v1598_v0 = vsel %vm865_vm2, %v1596_v60, %v1597_v61  ;;  %v6180_v7 = vld [vmem:[%s7431_s3 + $0x260] sm:$0xff]   ;;  %s7452_s8 = smov (!%p6864_p8, %s377_s8), 5 }
  0x4f   : > { %5588 = vmatpush3.bf16.msra.mxu0 %v6133_v63  ;;  %v6174_v63 = vld [vmem:[%s7431_s3 + $0x248] sm:$0xff]   ;;  %s6048_s9 = smul.u32 5, %s7452_s8 }
  0x50   : > { %5608 = vmatpush3.bf16.msra.mxu1 %v6134_v5  ;;  %5589 = vmatprep.subr.bf16.mxu0 %v6135_v9  ;;  %v6178_v5 = vld [vmem:[%s7431_s3 + $0x258] sm:$0xff]  }
  0x51   : > { %5609 = vmatprep.subr.bf16.mxu1 %v6136_v10  ;;  %s384_s8 = sadd.s32 %s6048_s9, %s6505_s19 }
  0x52   : > { %s4542_s21 = sshll.u32 %s384_s8, 2 }
  0x53   : > { %5590 = vmatpush3.bf16.msra.mxu0 %v6135_v9  ;;  %v6182_v9 = vld [vmem:[%s7431_s3 + $0x268] sm:$0xff]   ;;  %s6920_s12 = scalar_lea.vmem %s7430_s2, %s4542_s21 }
  0x54   : > { %5610 = vmatpush3.bf16.msra.mxu1 %v6136_v10  ;;  %5591 = vmatprep.subr.bf16.mxu0 %v6137_v11  ;;  %v6207_v10 = vld [vmem:[%s6707_s16] sm:$0xff]  }
  0x55   : > { %5611 = vmatprep.subr.bf16.mxu1 %v6138_v12  ;;  %v1873_v17 = vshrl.u32 %v6207_v10, 16 }
  0x57   : > { %5592 = vmatpush3.bf16.msra.mxu0 %v6137_v11  ;;  %v6183_v11 = vld [vmem:[%s7431_s3 + $0x230] sm:$0xff]  }
  0x58   : > { %5612 = vmatpush3.bf16.msra.mxu1 %v6138_v12  ;;  %5593 = vmatprep.subr.bf16.mxu0 %v6139_v13  ;;  %v6792_v12 = vld [vmem:[%s6707_s16 + $0x8] sm:$0x1f]  }
  0x59   : > { %5613 = vmatprep.subr.bf16.mxu1 %v6140_v14 }
  0x5b   : > { %5594 = vmatpush3.bf16.msra.mxu0 %v6139_v13  ;;  %v6184_v13 = vld [vmem:[%s7431_s3 + $0x270] sm:$0xff]  }
  0x5c   : > { %5614 = vmatpush3.bf16.msra.mxu1 %v6140_v14  ;;  %5595 = vmatprep.subr.bf16.mxu0 %v6141_v15  ;;  %v1875_v14 = vshll.u32 %v6207_v10, 16  ;;  %v6220_v10 = vld [vmem:[%s7431_s3 + $0x360] sm:$0xff]  }
  0x5d   : > { %5615 = vmatprep.subr.bf16.mxu1 %v6142_v16 }
  0x5e   : > { %v1877_v18 = vrot.slane %v1875_v14, 1  ;;  %v6224_v14 = vld [vmem:[%s7431_s3 + $0x370] sm:$0xff]  }
  0x5f   : > { %5596 = vmatpush3.bf16.msra.mxu0 %v6141_v15  ;;  %v6185_v15 = vld [vmem:[%s7431_s3 + $0x238] sm:$0xff]  }
  0x60   : > { %5616 = vmatpush3.bf16.msra.mxu1 %v6142_v16  ;;  %5597 = vmatprep.subr.bf16.mxu0 %v6143_v19  ;;  %v6186_v16 = vld [vmem:[%s7431_s3 + $0x278] sm:$0xff]   ;;  %v1878_v25 = vor.u32 %v1877_v18, %v1873_v17  ;;  %v6250_v17 = vld [vmem:[%s6707_s16 + $0x4] sm:$0xfc]   ;;  %v6948_v18 = vld [vmem:[%s6707_s16 + $0xc] sm:$0x3f]  }
  0x61   : > { %5617 = vmatprep.subr.bf16.mxu1 %v6144_v20 }
  0x63   : > { %5598 = vmatpush3.bf16.msra.mxu0 %v6143_v19  ;;  %v1880_v19 = vshll.u32 %v6792_v12, 16 }
  0x64   : > { %5618 = vmatpush3.bf16.msra.mxu1 %v6144_v20  ;;  %5599 = vmatprep.subr.bf16.mxu0 %v6145_v23  ;;  %v6210_v20 = vld [vmem:[%s6707_s16] sm:$0xfe]  }
  0x65   : > { %5619 = vmatprep.subr.bf16.mxu1 %v6146_v24  ;;  %v6815_v26 = vrot.slane %v1880_v19, 1  ;;  %v2025_v27 = vrot.slane %v6210_v20, 1  ;;  %v6229_v19 = vld [vmem:[%s7431_s3 + $0x380] sm:$0xff]  }
  0x66   : > { %v6232_v20 = vld [vmem:[%s7431_s3 + $0x3c0] sm:$0xff]  }
  0x67   : > { %5600 = vmatpush3.bf16.msra.mxu0 %v6145_v23  ;;  %v6191_v23 = vld [vmem:[%s6707_s16 + $0x8] ss:$0 sps:$4 sm:$0xff]   ;;  %v1883_v31 = vsel %vm569_vm0, %v1878_v25, %v6815_v26  ;;  %v2027_v33 = vsel %vm723_vm1, %v2025_v27, %v2026_v28  ;;  %v6235_v27 = vld [vmem:[%s7431_s3 + $0x390] sm:$0xff]  }
  0x68   : > { %5620 = vmatpush3.bf16.msra.mxu1 %v6146_v24  ;;  %5625 = vmatprep.subr.bf16.mxu0 %v6149_v29  ;;  %v6192_v24 = vld [vmem:[%s7431_s3 + $0x2c0] sm:$0xff]  }
  0x69   : > { %5645 = vmatprep.subr.bf16.mxu1 %v6152_v34  ;;  %v6247_v25 = vld [vmem:[%s6707_s16 + $0x4] sm:$0xff]  }
  0x6a   : > { %5602 = vmatmul.mubr.bf16.vlgmr.msra.gmra.mrb[8].mxu0 %v6622_v6  ;;  %v6179_v6 = vld [vmem:[%s7431_s3 + $0x220] sm:$0xff]  }
  0x6b   : > { %5626 = vmatpush3.bf16.msra.mxu0 %v6149_v29  ;;  %5622 = vmatmul.mubr.bf16.vlgmr.msra.gmra.mrb[8].mxu1 %v6151_v35  ;;  %v6193_v29 = vld [vmem:[%s7431_s3 + $0x288] sm:$0xff]   ;;  %v6197_v35 = vld [vmem:[%s7431_s3 + $0x298] sm:$0xff]  }
  0x6c   : > { %5646 = vmatpush3.bf16.msra.mxu1 %v6152_v34  ;;  %5627 = vmatprep.subr.bf16.mxu0 %v6153_v38  ;;  %v6196_v34 = vld [vmem:[%s7431_s3 + $0x2d0] sm:$0xff]  }
  0x6d   : > { %5647 = vmatprep.subr.bf16.mxu1 %v6154_v41  ;;  %5641 = vmatprep.mubr.bf16.mxu0 %v1301_v42  ;;  %v6230_v42 = vld [vmem:[%s6707_s16] sm:$0xf8]  }
  0x6e   : > { %5661 = vmatprep.mubr.bf16.mxu1 %v1457_v43  ;;  %v6203_v43 = vld [vmem:[%s7431_s3 + $0x2b0] sm:$0xff]  }
  0x6f   : > { %5628 = vmatpush3.bf16.msra.mxu0 %v6153_v38  ;;  %v6200_v38 = vld [vmem:[%s7431_s3 + $0x2e0] sm:$0xff]  }
  0x70   : > { %5648 = vmatpush3.bf16.msra.mxu1 %v6154_v41  ;;  %5629 = vmatprep.subr.bf16.mxu0 %v6155_v44  ;;  %v6231_v41 = vld [vmem:[%s6707_s16 + $0x8] sm:$0xff]  }
  0x71   : > { %5649 = vmatprep.subr.bf16.mxu1 %v6156_v45 }
  0x73   : > { %5630 = vmatpush3.bf16.msra.mxu0 %v6155_v44  ;;  %v6204_v44 = vld [vmem:[%s7431_s3 + $0x2f0] sm:$0xff]  }
  0x74   : > { %5650 = vmatpush3.bf16.msra.mxu1 %v6156_v45  ;;  %5631 = vmatprep.subr.bf16.mxu0 %v6157_v46  ;;  %v2308_v45 = vshrl.u32 %v6230_v42, 16 }
  0x75   : > { %5651 = vmatprep.subr.bf16.mxu1 %v6158_v47 }
  0x77   : > { %5632 = vmatpush3.bf16.msra.mxu0 %v6157_v46  ;;  %v2316_v46 = vshrl.u32 %v6231_v41, 16 }
  0x78   : > { %5652 = vmatpush3.bf16.msra.mxu1 %v6158_v47  ;;  %5633 = vmatprep.subr.bf16.mxu0 %v6159_v48  ;;  %v2319_v47 = vshll.u32 %v6231_v41, 16 }
  0x79   : > { %5653 = vmatprep.subr.bf16.mxu1 %v6160_v49 }
  0x7a   : > { %v2321_v56 = vrot.slane %v2319_v47, 4 }
  0x7b   : > { %5634 = vmatpush3.bf16.msra.mxu0 %v6159_v48  ;;  %v2311_v48 = vshll.u32 %v6230_v42, 16 }
  0x7c   : > { %5654 = vmatpush3.bf16.msra.mxu1 %v6160_v49  ;;  %5635 = vmatprep.subr.bf16.mxu0 %v6161_v50  ;;  %v6205_v49 = vld [vmem:[%s7431_s3 + $0x2b8] sm:$0xff]  }
  0x7d   : > { %5655 = vmatprep.subr.bf16.mxu1 %v6162_v51  ;;  %v2313_v57 = vrot.slane %v2311_v48, 4 }
  0x7f   : > { %5636 = vmatpush3.bf16.msra.mxu0 %v6161_v50  ;;  %v6206_v50 = vld [vmem:[%s7431_s3 + $0x2f8] sm:$0xff]  }
  0x80   : > { %5656 = vmatpush3.bf16.msra.mxu1 %v6162_v51  ;;  %5637 = vmatprep.subr.bf16.mxu0 %v6163_v52  ;;  %v6227_v51 = vld [vmem:[%s6707_s16] sm:$0xf8]  }
  0x81   : > { %5657 = vmatprep.subr.bf16.mxu1 %v6164_v53 }
  0x83   : > { %5638 = vmatpush3.bf16.msra.mxu0 %v6163_v52  ;;  %v1884_v52 = vshrl.u32 %v6792_v12, 16  ;;  %v6222_v12 = vld [vmem:[%s7431_s3 + $0x368] sm:$0xff]  }
  0x84   : > { %5658 = vmatpush3.bf16.msra.mxu1 %v6164_v53  ;;  %5639 = vmatprep.subr.bf16.mxu0 %v6165_v54  ;;  %v6877_v53 = vld [vmem:[%s6707_s16 + $0x8] sm:$0x7f]  }
  0x85   : > { %5659 = vmatprep.subr.bf16.mxu1 %v6166_v55  ;;  %v1886_v60 = vor.u32 %v1884_v52, %v6815_v26 }
  0x87   : > { %5640 = vmatpush3.bf16.msra.mxu0 %v6165_v54  ;;  %v2310_v54 = vrot.slane %v2308_v45, 3 }
  0x88   : > { %5660 = vmatpush3.bf16.msra.mxu1 %v6166_v55  ;;  %5665 = vmatprep.subr.bf16.mxu0 %v6169_v58  ;;  %v2318_v55 = vrot.slane %v2316_v46, 3 }
  0x89   : > { %5685 = vmatprep.subr.bf16.mxu1 %v6172_v59 }
  0x8a   : > { %5642 = vmatmul.mubr.bf16.vlgmr.msra.gmra.mrb[12].mxu0 %v1300_v37  ;;  %v6199_v37 = vld [vmem:[%s7431_s3 + $0x2a0] sm:$0xff]  }
  0x8b   : > { %5666 = vmatpush3.bf16.msra.mxu0 %v6169_v58  ;;  %5662 = vmatmul.mubr.bf16.vlgmr.msra.gmra.mrb[12].mxu1 %v6684_v40  ;;  %v6202_v40 = vld [vmem:[%s7431_s3 + $0x2e8] sm:$0xff]   ;;  %v6209_v58 = vld [vmem:[%s7431_s3 + $0x300] sm:$0xff]  }
  0x8c   : > { %5686 = vmatpush3.bf16.msra.mxu1 %v6172_v59  ;;  %5667 = vmatprep.subr.bf16.mxu0 %v6173_v62  ;;  %v6212_v59 = vld [vmem:[%s7431_s3 + $0x340] sm:$0xff]  }
  0x8d   : > { %5687 = vmatprep.subr.bf16.mxu1 %v6174_v63  ;;  %5681 = vmatprep.mubr.bf16.mxu0 %v1598_v0  ;;  %v6889_v0 = vor.u32 %v2321_v56, %v2318_v55 }
  0x8e   : > { %5701 = vmatprep.mubr.bf16.mxu1 %v6190_v1  ;;  %v6213_v1 = vld [vmem:[%s7431_s3 + $0x308] sm:$0xff]  }
  0x8f   : > { %5668 = vmatpush3.bf16.msra.mxu0 %v6173_v62  ;;  %v2167_v62 = vrot.slane %v6877_v53, 3 }
  0x90   : > { %5688 = vmatpush3.bf16.msra.mxu1 %v6174_v63  ;;  %5669 = vmatprep.subr.bf16.mxu0 %v6175_v2  ;;  %v2314_v63 = vor.u32 %v2313_v57, %v2310_v54  ;;  %v6246_v54 = vld [vmem:[%s7431_s3 + $0x3f8] sm:$0xff]  }
  0x91   : > { %5689 = vmatprep.subr.bf16.mxu1 %v6176_v3 }
  0x93   : > { %5670 = vmatpush3.bf16.msra.mxu0 %v6175_v2  ;;  %v6214_v2 = vld [vmem:[%s7431_s3 + $0x348] sm:$0xff]  }
  0x94   : > { %5690 = vmatpush3.bf16.msra.mxu1 %v6176_v3  ;;  %5671 = vmatprep.subr.bf16.mxu0 %v6177_v4 }
  0x95   : > { %5691 = vmatprep.subr.bf16.mxu1 %v6178_v5 }
  0x97   : > { %5672 = vmatpush3.bf16.msra.mxu0 %v6177_v4  ;;  %v2323_v4 = vsel %vm1007_vm3, %v2314_v63, %v6889_v0  ;;  %v6248_v63 = vld [vmem:[%s6707_s16 + $0xc] ss:$0 sps:$4 sm:$0xff]  }
  0x98   : > { %5692 = vmatpush3.bf16.msra.mxu1 %v6178_v5  ;;  %5673 = vmatprep.subr.bf16.mxu0 %v6179_v6  ;;  %v6215_v5 = vld [vmem:[%s7431_s3 + $0x310] sm:$0xff]  }
  0x99   : > { %5693 = vmatprep.subr.bf16.mxu1 %v6180_v7 }
  0x9b   : > { %5674 = vmatpush3.bf16.msra.mxu0 %v6179_v6  ;;  %v6216_v6 = vld [vmem:[%s7431_s3 + $0x350] sm:$0xff]  }
  0x9c   : > { %5694 = vmatpush3.bf16.msra.mxu1 %v6180_v7  ;;  %5675 = vmatprep.subr.bf16.mxu0 %v6181_v8  ;;  %v6217_v7 = vld [vmem:[%s7431_s3 + $0x318] sm:$0xff]  }
  0x9d   : > { %5695 = vmatprep.subr.bf16.mxu1 %v6182_v9 }
  0x9f   : > { %5676 = vmatpush3.bf16.msra.mxu0 %v6181_v8  ;;  %v6218_v8 = vld [vmem:[%s7431_s3 + $0x358] sm:$0xff]  }
  0xa0   : > { %5696 = vmatpush3.bf16.msra.mxu1 %v6182_v9  ;;  %5677 = vmatprep.subr.bf16.mxu0 %v6183_v11  ;;  %v6219_v9 = vld [vmem:[%s7431_s3 + $0x320] sm:$0xff]  }
  0xa1   : > { %5697 = vmatprep.subr.bf16.mxu1 %v6184_v13 }
  0xa3   : > { %5678 = vmatpush3.bf16.msra.mxu0 %v6183_v11  ;;  %v6221_v11 = vld [vmem:[%s7431_s3 + $0x328] sm:$0xff]  }
  0xa4   : > { %5698 = vmatpush3.bf16.msra.mxu1 %v6184_v13  ;;  %5679 = vmatprep.subr.bf16.mxu0 %v6185_v15  ;;  %v6223_v13 = vld [vmem:[%s7431_s3 + $0x330] sm:$0xff]  }
  0xa5   : > { %5699 = vmatprep.subr.bf16.mxu1 %v6186_v16 }
  0xa7   : > { %5680 = vmatpush3.bf16.msra.mxu0 %v6185_v15  ;;  %v6225_v15 = vld [vmem:[%s7431_s3 + $0x338] sm:$0xff]  }
  0xa8   : > { %5700 = vmatpush3.bf16.msra.mxu1 %v6186_v16  ;;  %5705 = vmatprep.subr.bf16.mxu0 %v6189_v22  ;;  %v6226_v16 = vld [vmem:[%s7431_s3 + $0x378] sm:$0xff]  }
  0xa9   : > { %5725 = vmatprep.subr.bf16.mxu1 %v6192_v24 }
  0xaa   : > { %5682 = vmatmul.mubr.bf16.vlgmr.msra.gmra.mrb[16].mxu0 %v1597_v61  ;;  %v2166_v61 = vrot.slane %v6227_v51, 3 }
  0xab   : > { %5706 = vmatpush3.bf16.msra.mxu0 %v6189_v22  ;;  %5702 = vmatmul.mubr.bf16.vlgmr.msra.gmra.mrb[16].mxu1 %v6191_v23  ;;  %v2597_v22 = vrot.slane %v6250_v17, 2  ;;  %v2598_v23 = vrot.slane %v6948_v18, 2  ;;  %v6290_v17 = vld [vmem:[%s6920_s12] sm:$0xff]   ;;  %v6263_v18 = vld [vmem:[%s7431_s3 + $0x430] sm:$0xff]  }
  0xac   : > { %5726 = vmatpush3.bf16.msra.mxu1 %v6192_v24  ;;  %5707 = vmatprep.subr.bf16.mxu0 %v6193_v29  ;;  %v2168_v3 = vsel %vm865_vm2, %v2166_v61, %v2167_v62  ;;  %v6234_v24 = vld [vmem:[%s7431_s3 + $0x3c8] sm:$0xff]  }
  0xad   : > { %5727 = vmatprep.subr.bf16.mxu1 %v6194_v30  ;;  %5721 = vmatprep.mubr.bf16.mxu0 %v1883_v31  ;;  %v2599_v26 = vsel %vm1298_vm4, %v2597_v22, %v2598_v23  ;;  %v6239_v31 = vld [vmem:[%s7431_s3 + $0x3a0] sm:$0xff]   ;;  %v7016_v61 = vld [vmem:[%s6707_s16 + $0xc] sm:$0x7f]  }
  0xae   : > { %5741 = vmatprep.mubr.bf16.mxu1 %v2027_v33  ;;  %v6267_v33 = vld [vmem:[%s6707_s16 + $0x4] sm:$0xfc]  }
  0xaf   : > { %5708 = vmatpush3.bf16.msra.mxu0 %v6193_v29  ;;  %v6237_v29 = vld [vmem:[%s7431_s3 + $0x398] sm:$0xff]  }
  0xb0   : > { %5728 = vmatpush3.bf16.msra.mxu1 %v6194_v30  ;;  %5709 = vmatprep.subr.bf16.mxu0 %v6195_v32  ;;  %v6238_v30 = vld [vmem:[%s7431_s3 + $0x3d8] sm:$0xff]  }
  0xb1   : > { %5729 = vmatprep.subr.bf16.mxu1 %v6196_v34 }
  0xb3   : > { %5710 = vmatpush3.bf16.msra.mxu0 %v6195_v32  ;;  %v6240_v32 = vld [vmem:[%s7431_s3 + $0x3e0] sm:$0xff]  }
  0xb4   : > { %5730 = vmatpush3.bf16.msra.mxu1 %v6196_v34  ;;  %5711 = vmatprep.subr.bf16.mxu0 %v6197_v35  ;;  %v6241_v34 = vld [vmem:[%s7431_s3 + $0x3a8] sm:$0xff]  }
  0xb5   : > { %5731 = vmatprep.subr.bf16.mxu1 %v6198_v36 }
  0xb7   : > { %5712 = vmatpush3.bf16.msra.mxu0 %v6197_v35  ;;  %v6268_v35 = vld [vmem:[%s6707_s16 + $0xc] sm:$0x7f]  }
  0xb8   : > { %5732 = vmatpush3.bf16.msra.mxu1 %v6198_v36  ;;  %5713 = vmatprep.subr.bf16.mxu0 %v6199_v37  ;;  %v6242_v36 = vld [vmem:[%s7431_s3 + $0x3e8] sm:$0xff]   ;;  %v2747_v41 = vshrl.u32 %v6268_v35, 16 }
  0xb9   : > { %5733 = vmatprep.subr.bf16.mxu1 %v6200_v38 }
  0xba   : > { %v2749_v57 = vrot.slane %v2747_v41, 2  ;;  %v6269_v41 = vld [vmem:[%s7431_s3 + $0x480] sm:$0xff]  }
  0xbb   : > { %5714 = vmatpush3.bf16.msra.mxu0 %v6199_v37  ;;  %v2739_v37 = vshrl.u32 %v6267_v33, 16 }
  0xbc   : > { %5734 = vmatpush3.bf16.msra.mxu1 %v6200_v38  ;;  %5715 = vmatprep.subr.bf16.mxu0 %v6201_v39  ;;  %v6243_v38 = vld [vmem:[%s7431_s3 + $0x3b0] sm:$0xff]  }
  0xbd   : > { %5735 = vmatprep.subr.bf16.mxu1 %v6202_v40  ;;  %v2741_v55 = vrot.slane %v2739_v37, 2 }
  0xbf   : > { %5716 = vmatpush3.bf16.msra.mxu0 %v6201_v39  ;;  %v6244_v39 = vld [vmem:[%s7431_s3 + $0x3f0] sm:$0xff]  }
  0xc0   : > { %5736 = vmatpush3.bf16.msra.mxu1 %v6202_v40  ;;  %5717 = vmatprep.subr.bf16.mxu0 %v6203_v43  ;;  %v2742_v40 = vshll.u32 %v6267_v33, 16 }
  0xc1   : > { %5737 = vmatprep.subr.bf16.mxu1 %v6204_v44 }
  0xc2   : > { %v2744_v56 = vrot.slane %v2742_v40, 3 }
  0xc3   : > { %5718 = vmatpush3.bf16.msra.mxu0 %v6203_v43  ;;  %v2750_v43 = vshll.u32 %v6268_v35, 16 }
  0xc4   : > { %5738 = vmatpush3.bf16.msra.mxu1 %v6204_v44  ;;  %5719 = vmatprep.subr.bf16.mxu0 %v6205_v49 }
  0xc5   : > { %5739 = vmatprep.subr.bf16.mxu1 %v6206_v50 }
  0xc7   : > { %5720 = vmatpush3.bf16.msra.mxu0 %v6205_v49  ;;  %v6245_v49 = vld [vmem:[%s7431_s3 + $0x3b8] sm:$0xff]  }
  0xc8   : > { %5740 = vmatpush3.bf16.msra.mxu1 %v6206_v50  ;;  %5745 = vmatprep.subr.bf16.mxu0 %v6209_v58 }
  0xc9   : > { %5765 = vmatprep.subr.bf16.mxu1 %v6212_v59 }
  0xca   : > { %5722 = vmatmul.mubr.bf16.vlgmr.msra.gmra.mrb[20].mxu0 %v1886_v60  ;;  %v6270_v60 = vld [vmem:[%s6707_s16 + $0x4] sm:$0xf8]  }
  0xcb   : > { %5746 = vmatpush3.bf16.msra.mxu0 %v6209_v58  ;;  %5742 = vmatmul.mubr.bf16.vlgmr.msra.gmra.mrb[20].mxu1 %v2026_v28  ;;  %v6236_v28 = vld [vmem:[%s7431_s3 + $0x3d0] sm:$0xff]   ;;  %v2752_v58 = vrot.slane %v2750_v43, 3 }
  0xcc   : > { %5766 = vmatpush3.bf16.msra.mxu1 %v6212_v59  ;;  %5747 = vmatprep.subr.bf16.mxu0 %v6213_v1 }
  0xcd   : > { %5767 = vmatprep.subr.bf16.mxu1 %v6214_v2  ;;  %5761 = vmatprep.mubr.bf16.mxu0 %v2168_v3  ;;  %v7028_v3 = vor.u32 %v2752_v58, %v2749_v57  ;;  %v6283_v57 = vld [vmem:[%s7431_s3 + $0x4b0] sm:$0xff]  }
  0xce   : > { %5781 = vmatprep.mubr.bf16.mxu1 %v2323_v4  ;;  %v2893_v4 = vrot.slane %v6270_v60, 3 }
  0xcf   : > { %5748 = vmatpush3.bf16.msra.mxu0 %v6213_v1  ;;  %v6253_v1 = vld [vmem:[%s7431_s3 + $0x408] sm:$0xff]  }
  0xd0   : > { %5768 = vmatpush3.bf16.msra.mxu1 %v6214_v2  ;;  %5749 = vmatprep.subr.bf16.mxu0 %v6215_v5  ;;  %v2745_v2 = vor.u32 %v2744_v56, %v2741_v55  ;;  %v6281_v55 = vld [vmem:[%s7431_s3 + $0x4a8] sm:$0xff]  }
  0xd1   : > { %5769 = vmatprep.subr.bf16.mxu1 %v6216_v6  ;;  %v6282_v56 = vld [vmem:[%s7431_s3 + $0x4e8] sm:$0xff]  }
  0xd3   : > { %5750 = vmatpush3.bf16.msra.mxu0 %v6215_v5  ;;  %v2894_v5 = vrot.slane %v7016_v61, 3 }
  0xd4   : > { %5770 = vmatpush3.bf16.msra.mxu1 %v6216_v6  ;;  %5751 = vmatprep.subr.bf16.mxu0 %v6217_v7  ;;  %v6254_v6 = vld [vmem:[%s7431_s3 + $0x448] sm:$0xff]  }
  0xd5   : > { %5771 = vmatprep.subr.bf16.mxu1 %v6218_v8 }
  0xd7   : > { %5752 = vmatpush3.bf16.msra.mxu0 %v6217_v7  ;;  %v2754_v7 = vsel %vm1440_vm5, %v2745_v2, %v7028_v3 }
  0xd8   : > { %5772 = vmatpush3.bf16.msra.mxu1 %v6218_v8  ;;  %5753 = vmatprep.subr.bf16.mxu0 %v6219_v9  ;;  %v6255_v8 = vld [vmem:[%s7431_s3 + $0x410] sm:$0xff]  }
  0xd9   : > { %5773 = vmatprep.subr.bf16.mxu1 %v6220_v10 }
  0xdb   : > { %5754 = vmatpush3.bf16.msra.mxu0 %v6219_v9  ;;  %v2895_v9 = vsel %vm865_vm2, %v2893_v4, %v2894_v5 }
  0xdc   : > { %5774 = vmatpush3.bf16.msra.mxu1 %v6220_v10  ;;  %5755 = vmatprep.subr.bf16.mxu0 %v6221_v11  ;;  %v6256_v10 = vld [vmem:[%s7431_s3 + $0x450] sm:$0xff]  }
  0xdd   : > { %5775 = vmatprep.subr.bf16.mxu1 %v6222_v12 }
  0xdf   : > { %5756 = vmatpush3.bf16.msra.mxu0 %v6221_v11  ;;  %v6257_v11 = vld [vmem:[%s7431_s3 + $0x418] sm:$0xff]  }
  0xe0   : > { %5776 = vmatpush3.bf16.msra.mxu1 %v6222_v12  ;;  %5757 = vmatprep.subr.bf16.mxu0 %v6223_v13  ;;  %v6258_v12 = vld [vmem:[%s7431_s3 + $0x458] sm:$0xff]  }
  0xe1   : > { %5777 = vmatprep.subr.bf16.mxu1 %v6224_v14 }
  0xe3   : > { %5758 = vmatpush3.bf16.msra.mxu0 %v6223_v13  ;;  %v6259_v13 = vld [vmem:[%s7431_s3 + $0x420] sm:$0xff]  }
  0xe4   : > { %5778 = vmatpush3.bf16.msra.mxu1 %v6224_v14  ;;  %5759 = vmatprep.subr.bf16.mxu0 %v6225_v15  ;;  %v6260_v14 = vld [vmem:[%s7431_s3 + $0x460] sm:$0xff]  }
  0xe5   : > { %5779 = vmatprep.subr.bf16.mxu1 %v6226_v16 }
  0xe7   : > { %5760 = vmatpush3.bf16.msra.mxu0 %v6225_v15  ;;  %v6261_v15 = vld [vmem:[%s7431_s3 + $0x428] sm:$0xff]  }
  0xe8   : > { %5780 = vmatpush3.bf16.msra.mxu1 %v6226_v16  ;;  %5785 = vmatprep.subr.bf16.mxu0 %v6229_v19  ;;  %v6262_v16 = vld [vmem:[%s7431_s3 + $0x468] sm:$0xff]  }
  0xe9   : > { %5805 = vmatprep.subr.bf16.mxu1 %v6232_v20 }
  0xea   : > { %5762 = vmatmul.mubr.bf16.vlgmr.msra.gmra.mrb[24].mxu0 %v2167_v62  ;;  %v6249_v62 = vld [vmem:[%s7431_s3 + $0x400] sm:$0xff]  }
  0xeb   : > { %5786 = vmatpush3.bf16.msra.mxu0 %v6229_v19  ;;  %5782 = vmatmul.mubr.bf16.vlgmr.msra.gmra.mrb[24].mxu1 %v6889_v0  ;;  %v6252_v0 = vld [vmem:[%s7431_s3 + $0x440] sm:$0xff]  }
  0xec   : > { %5806 = vmatpush3.bf16.msra.mxu1 %v6232_v20  ;;  %5787 = vmatprep.subr.bf16.mxu0 %v6233_v21  ;;  %v6264_v20 = vld [vmem:[%s7431_s3 + $0x470] sm:$0xff]  }
  0xed   : > { %5807 = vmatprep.subr.bf16.mxu1 %v6234_v24  ;;  %5801 = vmatprep.mubr.bf16.mxu0 %v6247_v25 }
  0xee   : > { %5821 = vmatprep.mubr.bf16.mxu1 %v2599_v26 }
  0xef   : > { %5788 = vmatpush3.bf16.msra.mxu0 %v6233_v21 }
  0xf0   : > { %5808 = vmatpush3.bf16.msra.mxu1 %v6234_v24  ;;  %5789 = vmatprep.subr.bf16.mxu0 %v6235_v27 }
  0xf1   : > { %5809 = vmatprep.subr.bf16.mxu1 %v6236_v28 }
  0xf3   : > { %5790 = vmatpush3.bf16.msra.mxu0 %v6235_v27  ;;  %v7075_v27 = vld [vmem:[%s6920_s12 + $0x8] sm:$0x1f]  }
  0xf4   : > { %5810 = vmatpush3.bf16.msra.mxu1 %v6236_v28  ;;  %5791 = vmatprep.subr.bf16.mxu0 %v6237_v29  ;;  %v3172_v28 = vshll.u32 %v6290_v17, 16  ;;  %v3177_v40 = vshll.u32 %v7075_v27, 16 }
  0xf5   : > { %5811 = vmatprep.subr.bf16.mxu1 %v6238_v30 }
  0xf7   : > { %5792 = vmatpush3.bf16.msra.mxu0 %v6237_v29 }
  0xf8   : > { %5812 = vmatpush3.bf16.msra.mxu1 %v6238_v30  ;;  %5793 = vmatprep.subr.bf16.mxu0 %v6239_v31 }
  0xf9   : > { %5813 = vmatprep.subr.bf16.mxu1 %v6240_v32 }
  0xfb   : > { %5794 = vmatpush3.bf16.msra.mxu0 %v6239_v31 }
  0xfc   : > { %5814 = vmatpush3.bf16.msra.mxu1 %v6240_v32  ;;  %5795 = vmatprep.subr.bf16.mxu0 %v6241_v34  ;;  %v6265_v32 = vld [vmem:[%s7431_s3 + $0x438] sm:$0xff]  }
  0xfd   : > { %v5523_v42 = vpop.f32.mrb[0].mxu0  ;;  %5815 = vmatprep.subr.bf16.mxu1 %v6242_v36 }
  0xfe   : > { %v5543_v44 = vpop.f32.mrb[0].mxu1  ;;  %v515_v45 = vpop.f32.mrb[1].mxu0 }
  0xff   : > { %v7002_v46 = vadd.f32 %v5543_v44, %v5523_v42  ;;  %v669_v47 = vpop.f32.mrb[1].mxu1  ;;  %v5524_v48 = vpop.f32.mrb[2].mxu0  ;;  %5796 = vmatpush3.bf16.msra.mxu0 %v6241_v34  ;;  %v6272_v42 = vld [vmem:[%s7431_s3 + $0x4c0] sm:$0xff]   ;;  %v7095_v44 = vrot.slane %v3177_v40, 1  ;;  %v6304_v40 = vld [vmem:[%s7431_s3 + $0x570] sm:$0xff]  }
 0x100   : > { %v7007_v50 = vadd.f32 %v669_v47, %v515_v45  ;;  %v5544_v51 = vpop.f32.mrb[2].mxu1  ;;  %v518_v52 = vpop.f32.mrb[3].mxu0  ;;  %5816 = vmatpush3.bf16.msra.mxu1 %v6242_v36  ;;  %5797 = vmatprep.subr.bf16.mxu0 %v6243_v38  ;;  %v6266_v36 = vld [vmem:[%s7431_s3 + $0x478] sm:$0xff]   ;;  %v6273_v45 = vld [vmem:[%s7431_s3 + $0x488] sm:$0xff]   ;;  %v6287_v47 = vld [vmem:[%s6920_s12] sm:$0xff]  }
 0x101   : > { %v672_v53 = vpop.f32.mrb[3].mxu1  ;;  %5817 = vmatprep.subr.bf16.mxu1 %v6244_v39  ;;  %v6277_v51 = vld [vmem:[%s7431_s3 + $0x498] sm:$0xff]  }
 0x102   : > { %v7012_v59 = vadd.f32 %v672_v53, %v518_v52  ;;  %v6278_v52 = vld [vmem:[%s7431_s3 + $0x4d8] sm:$0xff]   ;;  %v6279_v53 = vld [vmem:[%s7431_s3 + $0x4a0] sm:$0xff]  }
 0x103   : > { %5798 = vmatpush3.bf16.msra.mxu0 %v6243_v38  ;;  %v3170_v38 = vshrl.u32 %v6290_v17, 16  ;;  %v6292_v17 = vld [vmem:[%s7431_s3 + $0x540] sm:$0xff]  }
 0x104   : > { %5818 = vmatpush3.bf16.msra.mxu1 %v6244_v39  ;;  %5799 = vmatprep.subr.bf16.mxu0 %v6245_v49  ;;  %v3174_v39 = vrot.slane %v3172_v28, 1  ;;  %v6295_v28 = vld [vmem:[%s7431_s3 + $0x510] sm:$0xff]  }
 0x105   : > { %5819 = vmatprep.subr.bf16.mxu1 %v6246_v54 }
 0x106   : > { %v3175_v43 = vor.u32 %v3174_v39, %v3170_v38  ;;  %v6303_v38 = vld [vmem:[%s7431_s3 + $0x530] sm:$0xff]  }
 0x107   : > { %5800 = vmatpush3.bf16.msra.mxu0 %v6245_v49  ;;  %v6275_v49 = vld [vmem:[%s7431_s3 + $0x490] sm:$0xff]  }
 0x108   : > { %5820 = vmatpush3.bf16.msra.mxu1 %v6246_v54  ;;  %5825 = vmatprep.subr.bf16.mxu0 %v6249_v62  ;;  %v3180_v48 = vsel %vm569_vm0, %v3175_v43, %v7095_v44  ;;  %v6280_v54 = vld [vmem:[%s7431_s3 + $0x4e0] sm:$0xff]  }
 0x109   : > { %5845 = vmatprep.subr.bf16.mxu1 %v6252_v0 }
 0x10a   : > { %5802 = vmatmul.mubr.bf16.vlgmr.msra.gmra.mrb[28].mxu0 %v6248_v63 }
 0x10b   : > { %5826 = vmatpush3.bf16.msra.mxu0 %v6249_v62  ;;  %5822 = vmatmul.mubr.bf16.vlgmr.msra.gmra.mrb[28].mxu1 %v2598_v23 }
 0x10c   : > { %5846 = vmatpush3.bf16.msra.mxu1 %v6252_v0  ;;  %5827 = vmatprep.subr.bf16.mxu0 %v6253_v1 }
 0x10d   : > { %5847 = vmatprep.subr.bf16.mxu1 %v6254_v6  ;;  %5841 = vmatprep.mubr.bf16.mxu0 %v2754_v7 }
 0x10e   : > { %5861 = vmatprep.mubr.bf16.mxu1 %v2895_v9  ;;  %v6286_v9 = vld [vmem:[%s7431_s3 + $0x4f8] sm:$0xff]  }
 0x10f   : > { %5828 = vmatpush3.bf16.msra.mxu0 %v6253_v1 }
 0x110   : > { %5848 = vmatpush3.bf16.msra.mxu1 %v6254_v6  ;;  %5829 = vmatprep.subr.bf16.mxu0 %v6255_v8 }
 0x111   : > { %5849 = vmatprep.subr.bf16.mxu1 %v6256_v10 }
 0x113   : > { %5830 = vmatpush3.bf16.msra.mxu0 %v6255_v8 }
 0x114   : > { %5850 = vmatpush3.bf16.msra.mxu1 %v6256_v10  ;;  %5831 = vmatprep.subr.bf16.mxu0 %v6257_v11  ;;  %v6307_v10 = vld [vmem:[%s6920_s12] sm:$0xfe]  }
 0x115   : > { %5851 = vmatprep.subr.bf16.mxu1 %v6258_v12 }
 0x117   : > { %5832 = vmatpush3.bf16.msra.mxu0 %v6257_v11  ;;  %v7153_v11 = vld [vmem:[%s6920_s12 + $0x8] sm:$0x1f]  }
 0x118   : > { %5852 = vmatpush3.bf16.msra.mxu1 %v6258_v12  ;;  %5833 = vmatprep.subr.bf16.mxu0 %v6259_v13 }
 0x119   : > { %5853 = vmatprep.subr.bf16.mxu1 %v6260_v14 }
 0x11b   : > { %5834 = vmatpush3.bf16.msra.mxu0 %v6259_v13  ;;  %v3181_v13 = vshrl.u32 %v7075_v27, 16 }
 0x11c   : > { %5854 = vmatpush3.bf16.msra.mxu1 %v6260_v14  ;;  %5835 = vmatprep.subr.bf16.mxu0 %v6261_v15  ;;  %v6310_v14 = vld [vmem:[%s6920_s12] sm:$0xf8]  }
 0x11d   : > { %v5563_v19 = vpop.f32.mrb[4].mxu0  ;;  %5855 = vmatprep.subr.bf16.mxu1 %v6262_v16 }
 0x11e   : > { %v827_v21 = vadd.f32 %v5563_v19, %v7002_v46  ;;  %v811_v22 = vpop.f32.mrb[5].mxu0  ;;  %v5583_v23 = vpop.f32.mrb[4].mxu1  ;;  %v6274_v46 = vld [vmem:[%s7431_s3 + $0x4c8] sm:$0xff]   ;;  %v3322_v19 = vrot.slane %v6307_v10, 1  ;;  %v6317_v10 = vld [vmem:[%s7431_s3 + $0x598] sm:$0xff]  }
 0x11f   : > { %v825_v24 = vadd.f32 %v811_v22, %v7007_v50  ;;  %v5564_v25 = vpop.f32.mrb[6].mxu0  ;;  %5836 = vmatpush3.bf16.msra.mxu0 %v6261_v15  ;;  %v953_v26 = vpop.f32.mrb[5].mxu1  ;;  %v6276_v50 = vld [vmem:[%s7431_s3 + $0x4d0] sm:$0xff]   ;;  %v7160_v15 = vld [vmem:[%s6920_s12 + $0x8] sm:$0x7f]   ;;  %v3463_v22 = vrot.slane %v6310_v14, 3 }
 0x120   : > { %v7077_v29 = vadd.f32 %v5583_v23, %v827_v21  ;;  %v814_v30 = vpop.f32.mrb[7].mxu0  ;;  %v5584_v31 = vpop.f32.mrb[6].mxu1  ;;  %5856 = vmatpush3.bf16.msra.mxu1 %v6262_v16  ;;  %5837 = vmatprep.subr.bf16.mxu0 %v6263_v18  ;;  %v6289_v16 = vld [vmem:[%s7431_s3 + $0x500] sm:$0xff]   ;;  %v3183_v21 = vor.u32 %v3181_v13, %v7095_v44  ;;  %v3464_v23 = vrot.slane %v7160_v15, 3  ;;  %v6294_v25 = vld [vmem:[%s7431_s3 + $0x548] sm:$0xff]  }
 0x121   : > { %v826_v33 = vadd.f32 %v814_v30, %v7012_v59  ;;  %v967_v34 = vadd.f32 %v953_v26, %v825_v24  ;;  %v956_v35 = vpop.f32.mrb[7].mxu1  ;;  %5857 = vmatprep.subr.bf16.mxu1 %v6264_v20  ;;  %v6284_v59 = vld [vmem:[%s7431_s3 + $0x4f0] sm:$0xff]   ;;  %v6293_v24 = vld [vmem:[%s7431_s3 + $0x508] sm:$0xff]   ;;  %v6297_v30 = vld [vmem:[%s7431_s3 + $0x518] sm:$0xff]  }
 0x122   : > { %v3465_v27 = vsel %vm865_vm2, %v3463_v22, %v3464_v23  ;;  %v6298_v31 = vld [vmem:[%s7431_s3 + $0x558] sm:$0xff]   ;;  %v6320_v13 = vld [vmem:[%s7431_s3 + $0x5e0] sm:$0xff]   ;;  %v6321_v14 = vld [vmem:[%s7431_s3 + $0x5a8] sm:$0xff]  }
 0x123   : > { %v7086_v37 = vadd.f32 %v956_v35, %v826_v33  ;;  %5838 = vmatpush3.bf16.msra.mxu0 %v6263_v18  ;;  %v6288_v18 = vld [vmem:[%s6920_s12 + $0x8] ss:$0 sps:$4 sm:$0xff]   ;;  %v6300_v33 = vld [vmem:[%s7431_s3 + $0x560] sm:$0xff]  }
 0x124   : > { %5858 = vmatpush3.bf16.msra.mxu1 %v6264_v20  ;;  %5839 = vmatprep.subr.bf16.mxu0 %v6265_v32  ;;  %v3323_v20 = vrot.slane %v7153_v11, 1  ;;  %v6302_v35 = vld [vmem:[%s7431_s3 + $0x568] sm:$0xff]   ;;  %v6318_v11 = vld [vmem:[%s7431_s3 + $0x5d8] sm:$0xff]  }
 0x125   : > { %5859 = vmatprep.subr.bf16.mxu1 %v6266_v36  ;;  %v6322_v15 = vld [vmem:[%s7431_s3 + $0x5e8] sm:$0xff]  }
 0x126   : > { %v3324_v26 = vsel %vm723_vm1, %v3322_v19, %v3323_v20 }
 0x127   : > { %5840 = vmatpush3.bf16.msra.mxu0 %v6265_v32  ;;  %v6299_v32 = vld [vmem:[%s7431_s3 + $0x520] sm:$0xff]  }
 0x128   : > { %5860 = vmatpush3.bf16.msra.mxu1 %v6266_v36  ;;  %5865 = vmatprep.subr.bf16.mxu0 %v6269_v41  ;;  %v6327_v36 = vld [vmem:[%s6920_s12] sm:$0xf8]  }
 0x129   : > { %5885 = vmatprep.subr.bf16.mxu1 %v6272_v42 }
 0x12a   : > { %5842 = vmatmul.mubr.bf16.vlgmr.msra.gmra.mrb[32].mxu0 %v7028_v3 }
 0x12b   : > { %5866 = vmatpush3.bf16.msra.mxu0 %v6269_v41  ;;  %5862 = vmatmul.mubr.bf16.vlgmr.msra.gmra.mrb[32].mxu1 %v2894_v5  ;;  %v6285_v5 = vld [vmem:[%s7431_s3 + $0x4b8] sm:$0xff]   ;;  %v3605_v41 = vshrl.u32 %v6327_v36, 16 }
 0x12c   : > { %5886 = vmatpush3.bf16.msra.mxu1 %v6272_v42  ;;  %5867 = vmatprep.subr.bf16.mxu0 %v6273_v45 }
 0x12d   : > { %5887 = vmatprep.subr.bf16.mxu1 %v6274_v46  ;;  %5881 = vmatprep.mubr.bf16.mxu0 %v6287_v47 }
 0x12e   : > { %5901 = vmatprep.mubr.bf16.mxu1 %v3180_v48 }
 0x12f   : > { %5868 = vmatpush3.bf16.msra.mxu0 %v6273_v45  ;;  %v3608_v45 = vshll.u32 %v6327_v36, 16 }
 0x130   : > { %5888 = vmatpush3.bf16.msra.mxu1 %v6274_v46  ;;  %5869 = vmatprep.subr.bf16.mxu0 %v6275_v49 }
 0x131   : > { %5889 = vmatprep.subr.bf16.mxu1 %v6276_v50 }
 0x133   : > { %5870 = vmatpush3.bf16.msra.mxu0 %v6275_v49 }
 0x134   : > { %5890 = vmatpush3.bf16.msra.mxu1 %v6276_v50  ;;  %5871 = vmatprep.subr.bf16.mxu0 %v6277_v51 }
 0x135   : > { %5891 = vmatprep.subr.bf16.mxu1 %v6278_v52 }
 0x137   : > { %5872 = vmatpush3.bf16.msra.mxu0 %v6277_v51 }
 0x138   : > { %5892 = vmatpush3.bf16.msra.mxu1 %v6278_v52  ;;  %5873 = vmatprep.subr.bf16.mxu0 %v6279_v53 }
 0x139   : > { %5893 = vmatprep.subr.bf16.mxu1 %v6280_v54 }
 0x13b   : > { %5874 = vmatpush3.bf16.msra.mxu0 %v6279_v53 }
 0x13c   : > { %5894 = vmatpush3.bf16.msra.mxu1 %v6280_v54  ;;  %5875 = vmatprep.subr.bf16.mxu0 %v6281_v55  ;;  %v6305_v54 = vld [vmem:[%s7431_s3 + $0x538] sm:$0xff]  }
 0x13d   : > { %v5603_v58 = vpop.f32.mrb[8].mxu0  ;;  %5895 = vmatprep.subr.bf16.mxu1 %v6282_v56 }
 0x13e   : > { %v1125_v60 = vadd.f32 %v5603_v58, %v7077_v29  ;;  %v1109_v61 = vpop.f32.mrb[9].mxu0  ;;  %v5623_v62 = vpop.f32.mrb[8].mxu1  ;;  %v6296_v29 = vld [vmem:[%s7431_s3 + $0x550] sm:$0xff]   ;;  %v6306_v58 = vld [vmem:[%s7431_s3 + $0x578] sm:$0xff]  }
 0x13f   : > { %v1123_v63 = vadd.f32 %v1109_v61, %v967_v34  ;;  %v5604_v0 = vpop.f32.mrb[10].mxu0  ;;  %5876 = vmatpush3.bf16.msra.mxu0 %v6281_v55  ;;  %v1244_v1 = vpop.f32.mrb[9].mxu1  ;;  %v6301_v34 = vld [vmem:[%s7431_s3 + $0x528] sm:$0xff]  }
 0x140   : > { %v7140_v2 = vadd.f32 %v5623_v62, %v1125_v60  ;;  %v1112_v3 = vpop.f32.mrb[11].mxu0  ;;  %v5624_v4 = vpop.f32.mrb[10].mxu1  ;;  %5896 = vmatpush3.bf16.msra.mxu1 %v6282_v56  ;;  %5877 = vmatprep.subr.bf16.mxu0 %v6283_v57  ;;  %v3610_v60 = vrot.slane %v3608_v45, 4  ;;  %v6309_v0 = vld [vmem:[%s7431_s3 + $0x580] sm:$0xff]  }
 0x141   : > { %v1124_v6 = vadd.f32 %v1112_v3, %v7086_v37  ;;  %v7146_v7 = vadd.f32 %v1244_v1, %v1123_v63  ;;  %v1247_v8 = vpop.f32.mrb[11].mxu1  ;;  %5897 = vmatprep.subr.bf16.mxu1 %v6284_v59  ;;  %v6328_v37 = vld [vmem:[%s6920_s12 + $0x8] sm:$0xff]   ;;  %v6312_v1 = vld [vmem:[%s7431_s3 + $0x5c0] sm:$0xff]  }
 0x142   : > { %v3613_v46 = vshrl.u32 %v6328_v37, 16  ;;  %v3616_v47 = vshll.u32 %v6328_v37, 16  ;;  %v6313_v4 = vld [vmem:[%s7431_s3 + $0x588] sm:$0xff]  }
 0x143   : > { %v7155_v12 = vadd.f32 %v1247_v8, %v1124_v6  ;;  %5878 = vmatpush3.bf16.msra.mxu0 %v6283_v57  ;;  %v6315_v8 = vld [vmem:[%s7431_s3 + $0x590] sm:$0xff]  }
 0x144   : > { %5898 = vmatpush3.bf16.msra.mxu1 %v6284_v59  ;;  %5879 = vmatprep.subr.bf16.mxu0 %v6285_v5  ;;  %v3607_v59 = vrot.slane %v3605_v41, 3  ;;  %v3615_v61 = vrot.slane %v3613_v46, 3  ;;  %v3618_v62 = vrot.slane %v3616_v47, 4  ;;  %v6329_v46 = vld [vmem:[%s7431_s3 + $0x600] sm:$0xff]  }
 0x145   : > { %5899 = vmatprep.subr.bf16.mxu1 %v6286_v9  ;;  %v6332_v47 = vld [vmem:[%s7431_s3 + $0x640] sm:$0xff]  }
 0x146   : > { %v7237_v3 = vor.u32 %v3618_v62, %v3615_v61  ;;  %v6339_v61 = vld [vmem:[%s7431_s3 + $0x620] sm:$0xff]  }
 0x147   : > { %5880 = vmatpush3.bf16.msra.mxu0 %v6285_v5  ;;  %v6314_v5 = vld [vmem:[%s7431_s3 + $0x5c8] sm:$0xff]   ;;  %v6340_v62 = vld [vmem:[%s7431_s3 + $0x660] sm:$0xff]  }
 0x148   : > { %5900 = vmatpush3.bf16.msra.mxu1 %v6286_v9  ;;  %5905 = vmatprep.subr.bf16.mxu0 %v6289_v16  ;;  %v6316_v9 = vld [vmem:[%s7431_s3 + $0x5d0] sm:$0xff]  }
 0x149   : > { %5925 = vmatprep.subr.bf16.mxu1 %v6292_v17 }
 0x14a   : > { %5882 = vmatmul.mubr.bf16.vlgmr.msra.gmra.mrb[36].mxu0 %v6288_v18  ;;  %v6323_v18 = vld [vmem:[%s7431_s3 + $0x5b0] sm:$0xff]  }
 0x14b   : > { %5906 = vmatpush3.bf16.msra.mxu0 %v6289_v16  ;;  %5902 = vmatmul.mubr.bf16.vlgmr.msra.gmra.mrb[36].mxu1 %v3183_v21  ;;  %v6350_v16 = vld [vmem:[%s6920_s12 + $0x4] sm:$0xfc]  }
 0x14c   : > { %5926 = vmatpush3.bf16.msra.mxu1 %v6292_v17  ;;  %5907 = vmatprep.subr.bf16.mxu0 %v6293_v24  ;;  %v6351_v17 = vld [vmem:[%s6920_s12 + $0xc] sm:$0x7f]  }
 0x14d   : > { %5927 = vmatprep.subr.bf16.mxu1 %v6294_v25  ;;  %5921 = vmatprep.mubr.bf16.mxu0 %v3324_v26 }
 0x14e   : > { %5941 = vmatprep.mubr.bf16.mxu1 %v3465_v27 }
 0x14f   : > { %5908 = vmatpush3.bf16.msra.mxu0 %v6293_v24  ;;  %v4036_v24 = vshrl.u32 %v6350_v16, 16 }
 0x150   : > { %5928 = vmatpush3.bf16.msra.mxu1 %v6294_v25  ;;  %5909 = vmatprep.subr.bf16.mxu0 %v6295_v28 }
 0x151   : > { %5929 = vmatprep.subr.bf16.mxu1 %v6296_v29  ;;  %v4038_v41 = vrot.slane %v4036_v24, 2  ;;  %v6352_v24 = vld [vmem:[%s7431_s3 + $0x688] sm:$0xff]  }
 0x153   : > { %5910 = vmatpush3.bf16.msra.mxu0 %v6295_v28  ;;  %v4039_v28 = vshll.u32 %v6350_v16, 16 }
 0x154   : > { %5930 = vmatpush3.bf16.msra.mxu1 %v6296_v29  ;;  %5911 = vmatprep.subr.bf16.mxu0 %v6297_v30  ;;  %v4044_v29 = vshrl.u32 %v6351_v17, 16 }
 0x155   : > { %5931 = vmatprep.subr.bf16.mxu1 %v6298_v31 }
 0x157   : > { %5912 = vmatpush3.bf16.msra.mxu0 %v6297_v30  ;;  %v4047_v30 = vshll.u32 %v6351_v17, 16  ;;  %v6346_v17 = vld [vmem:[%s7431_s3 + $0x678] sm:$0xff]  }
 0x158   : > { %5932 = vmatpush3.bf16.msra.mxu1 %v6298_v31  ;;  %5913 = vmatprep.subr.bf16.mxu0 %v6299_v32 }
 0x159   : > { %5933 = vmatprep.subr.bf16.mxu1 %v6300_v33  ;;  %v4049_v45 = vrot.slane %v4047_v30, 3  ;;  %v6357_v30 = vld [vmem:[%s7431_s3 + $0x6b0] sm:$0xff]  }
 0x15b   : > { %5914 = vmatpush3.bf16.msra.mxu0 %v6299_v32 }
 0x15c   : > { %5934 = vmatpush3.bf16.msra.mxu1 %v6300_v33  ;;  %5915 = vmatprep.subr.bf16.mxu0 %v6301_v34 }
 0x15d   : > { %v5643_v39 = vpop.f32.mrb[12].mxu0  ;;  %5935 = vmatprep.subr.bf16.mxu1 %v6302_v35 }
 0x15e   : > { %v1402_v42 = vadd.f32 %v5643_v39, %v7140_v2  ;;  %v1386_v43 = vpop.f32.mrb[13].mxu0  ;;  %v5663_v44 = vpop.f32.mrb[12].mxu1  ;;  %v3611_v2 = vor.u32 %v3610_v60, %v3607_v59  ;;  %v6347_v39 = vld [vmem:[%s6920_s12 + $0x4] sm:$0xfc]   ;;  %v6337_v59 = vld [vmem:[%s7431_s3 + $0x618] sm:$0xff]  }
 0x15f   : > { %v1400_v48 = vadd.f32 %v1386_v43, %v7146_v7  ;;  %v5644_v49 = vpop.f32.mrb[14].mxu0  ;;  %5916 = vmatpush3.bf16.msra.mxu0 %v6301_v34  ;;  %v1542_v50 = vpop.f32.mrb[13].mxu1  ;;  %v6330_v7 = vld [vmem:[%s6920_s12 + $0x4] sm:$0xff]   ;;  %v6325_v34 = vld [vmem:[%s7431_s3 + $0x5b8] sm:$0xff]   ;;  %v4041_v43 = vrot.slane %v4039_v28, 3 }
 0x160   : > { %v7218_v51 = vadd.f32 %v5663_v44, %v1402_v42  ;;  %v1389_v52 = vpop.f32.mrb[15].mxu0  ;;  %v5664_v53 = vpop.f32.mrb[14].mxu1  ;;  %5936 = vmatpush3.bf16.msra.mxu1 %v6302_v35  ;;  %5917 = vmatprep.subr.bf16.mxu0 %v6303_v38  ;;  %v3620_v6 = vsel %vm1007_vm3, %v3611_v2, %v7237_v3  ;;  %v4046_v44 = vrot.slane %v4044_v29, 2  ;;  %v6338_v60 = vld [vmem:[%s7431_s3 + $0x658] sm:$0xff]   ;;  %v6355_v28 = vld [vmem:[%s7431_s3 + $0x6a0] sm:$0xff]   ;;  %v6356_v29 = vld [vmem:[%s7431_s3 + $0x6a8] sm:$0xff]  }
 0x161   : > { %v1401_v55 = vadd.f32 %v1389_v52, %v7155_v12  ;;  %v7224_v56 = vadd.f32 %v1542_v50, %v1400_v48  ;;  %v1545_v57 = vpop.f32.mrb[15].mxu1  ;;  %5937 = vmatprep.subr.bf16.mxu1 %v6304_v40  ;;  %v6319_v12 = vld [vmem:[%s7431_s3 + $0x5a0] sm:$0xff]   ;;  %v3894_v48 = vrot.slane %v6347_v39, 2  ;;  %v6331_v50 = vld [vmem:[%s6920_s12 + $0xc] ss:$0 sps:$4 sm:$0xff]  }
 0x162   : > { %v7311_v52 = vor.u32 %v4049_v45, %v4046_v44  ;;  %v6333_v53 = vld [vmem:[%s7431_s3 + $0x608] sm:$0xff]  }
 0x163   : > { %v7229_v63 = vadd.f32 %v1545_v57, %v1401_v55  ;;  %5918 = vmatpush3.bf16.msra.mxu0 %v6303_v38  ;;  %v6326_v38 = vld [vmem:[%s7431_s3 + $0x5f8] sm:$0xff]   ;;  %v6335_v57 = vld [vmem:[%s7431_s3 + $0x610] sm:$0xff]  }
 0x164   : > { %5938 = vmatpush3.bf16.msra.mxu1 %v6304_v40  ;;  %5919 = vmatprep.subr.bf16.mxu0 %v6305_v54  ;;  %v7299_v40 = vld [vmem:[%s6920_s12 + $0xc] sm:$0x3f]  }
 0x165   : > { %5939 = vmatprep.subr.bf16.mxu1 %v6306_v58  ;;  %v3895_v49 = vrot.slane %v7299_v40, 2 }
 0x167   : > { %5920 = vmatpush3.bf16.msra.mxu0 %v6305_v54  ;;  %v6334_v54 = vld [vmem:[%s7431_s3 + $0x648] sm:$0xff]   ;;  %v3896_v55 = vsel %vm1298_vm4, %v3894_v48, %v3895_v49 }
 0x168   : > { %5940 = vmatpush3.bf16.msra.mxu1 %v6306_v58  ;;  %5945 = vmatprep.subr.bf16.mxu0 %v6309_v0  ;;  %v6336_v58 = vld [vmem:[%s7431_s3 + $0x650] sm:$0xff]  }
 0x169   : > { %5965 = vmatprep.subr.bf16.mxu1 %v6312_v1 }
 0x16a   : > { %5922 = vmatmul.mubr.bf16.vlgmr.msra.gmra.mrb[40].mxu0 %v3323_v20  ;;  %v6324_v20 = vld [vmem:[%s7431_s3 + $0x5f0] sm:$0xff]  }
 0x16b   : > { %5946 = vmatpush3.bf16.msra.mxu0 %v6309_v0  ;;  %5942 = vmatmul.mubr.bf16.vlgmr.msra.gmra.mrb[40].mxu1 %v3464_v23  ;;  %v6342_v0 = vld [vmem:[%s7431_s3 + $0x668] sm:$0xff]  }
 0x16c   : > { %5966 = vmatpush3.bf16.msra.mxu1 %v6312_v1  ;;  %5947 = vmatprep.subr.bf16.mxu0 %v6313_v4  ;;  %v6343_v1 = vld [vmem:[%s7431_s3 + $0x630] sm:$0xff]  }
 0x16d   : > { %5967 = vmatprep.subr.bf16.mxu1 %v6314_v5  ;;  %5961 = vmatprep.mubr.bf16.mxu0 %v3620_v6 }
 0x16e   : > { %5981 = vmatprep.mubr.bf16.mxu1 %v6330_v7 }
 0x16f   : > { %5948 = vmatpush3.bf16.msra.mxu0 %v6313_v4 }
 0x170   : > { %5968 = vmatpush3.bf16.msra.mxu1 %v6314_v5  ;;  %5949 = vmatprep.subr.bf16.mxu0 %v6315_v8 }
 0x171   : > { %5969 = vmatprep.subr.bf16.mxu1 %v6316_v9 }
 0x173   : > { %5950 = vmatpush3.bf16.msra.mxu0 %v6315_v8 }
 0x174   : > { %5970 = vmatpush3.bf16.msra.mxu1 %v6316_v9  ;;  %5951 = vmatprep.subr.bf16.mxu0 %v6317_v10 }
 0x175   : > { %5971 = vmatprep.subr.bf16.mxu1 %v6318_v11 }
 0x177   : > { %5952 = vmatpush3.bf16.msra.mxu0 %v6317_v10 }
 0x178   : > { %5972 = vmatpush3.bf16.msra.mxu1 %v6318_v11  ;;  %5953 = vmatprep.subr.bf16.mxu0 %v6319_v12 }
 0x179   : > { %5973 = vmatprep.subr.bf16.mxu1 %v6320_v13 }
 0x17b   : > { %5954 = vmatpush3.bf16.msra.mxu0 %v6319_v12 }
 0x17c   : > { %5974 = vmatpush3.bf16.msra.mxu1 %v6320_v13  ;;  %5955 = vmatprep.subr.bf16.mxu0 %v6321_v14  ;;  %v6345_v13 = vld [vmem:[%s7431_s3 + $0x638] sm:$0xff]  }
 0x17d   : > { %v5683_v19 = vpop.f32.mrb[16].mxu0  ;;  %5975 = vmatprep.subr.bf16.mxu1 %v6322_v15 }
 0x17e   : > { %v1699_v21 = vadd.f32 %v5683_v19, %v7218_v51  ;;  %v1683_v22 = vpop.f32.mrb[17].mxu0  ;;  %v5703_v23 = vpop.f32.mrb[16].mxu1  ;;  %v4042_v51 = vor.u32 %v4041_v43, %v4038_v41  ;;  %v6360_v19 = vld [vmem:[%s6920_s12 + $0xc] sm:$0x7f]   ;;  %v6358_v41 = vld [vmem:[%s7431_s3 + $0x6b8] sm:$0xff]  }
 0x17f   : > { %v1697_v25 = vadd.f32 %v1683_v22, %v7224_v56  ;;  %v5684_v26 = vpop.f32.mrb[18].mxu0  ;;  %5956 = vmatpush3.bf16.msra.mxu0 %v6321_v14  ;;  %v1818_v27 = vpop.f32.mrb[17].mxu1 }
 0x180   : > { %v7286_v31 = vadd.f32 %v5703_v23, %v1699_v21  ;;  %v1686_v32 = vpop.f32.mrb[19].mxu0  ;;  %v5704_v33 = vpop.f32.mrb[18].mxu1  ;;  %5976 = vmatpush3.bf16.msra.mxu1 %v6322_v15  ;;  %5957 = vmatprep.subr.bf16.mxu0 %v6323_v18  ;;  %v4051_v56 = vsel %vm1440_vm5, %v4042_v51, %v7311_v52  ;;  %v6349_v21 = vld [vmem:[%s7431_s3 + $0x680] sm:$0xff]   ;;  %v4191_v23 = vrot.slane %v6360_v19, 3  ;;  %v6353_v26 = vld [vmem:[%s7431_s3 + $0x690] sm:$0xff]  }
 0x181   : > { %v1698_v35 = vadd.f32 %v1686_v32, %v7229_v63  ;;  %v7292_v36 = vadd.f32 %v1818_v27, %v1697_v25  ;;  %v1821_v37 = vpop.f32.mrb[19].mxu1  ;;  %5977 = vmatprep.subr.bf16.mxu1 %v6324_v20  ;;  %v6341_v63 = vld [vmem:[%s7431_s3 + $0x628] sm:$0xff]   ;;  %v6354_v27 = vld [vmem:[%s7431_s3 + $0x698] sm:$0xff]  }
 0x183   : > { %v7301_v42 = vadd.f32 %v1821_v37, %v1698_v35  ;;  %5958 = vmatpush3.bf16.msra.mxu0 %v6323_v18  ;;  %v6359_v18 = vld [vmem:[%s6920_s12 + $0x4] sm:$0xf8]   ;;  %s394_s12 = sadd.s32 %s6050_s15, %s6049_s17 }
 0x184   : > { %5978 = vmatpush3.bf16.msra.mxu1 %v6324_v20  ;;  %5959 = vmatprep.subr.bf16.mxu0 %v6325_v34  ;;  %v4190_v22 = vrot.slane %v6359_v18, 3  ;;  %s4543_s21 = sshll.u32 %s394_s12, 3 }
 0x185   : > { %5979 = vmatprep.subr.bf16.mxu1 %v6326_v38  ;;  %s396_s19 = scalar_lea.vmem %s7435_s7, %s4543_s21 }
 0x186   : > { %v4192_v25 = vsel %vm865_vm2, %v4190_v22, %v4191_v23 }
 0x187   : > { %5960 = vmatpush3.bf16.msra.mxu0 %v6325_v34 }
 0x188   : > { %5980 = vmatpush3.bf16.msra.mxu1 %v6326_v38  ;;  %5985 = vmatprep.subr.bf16.mxu0 %v6329_v46 }
 0x189   : > { %6005 = vmatprep.subr.bf16.mxu1 %v6332_v47 }
 0x18a   : > { %5962 = vmatmul.mubr.bf16.vlgmr.msra.gmra.mrb[44].mxu0 %v7237_v3  ;;  %v6344_v3 = vld [vmem:[%s7431_s3 + $0x670] sm:$0xff]  }
 0x18b   : > { %5986 = vmatpush3.bf16.msra.mxu0 %v6329_v46  ;;  %5982 = vmatmul.mubr.bf16.vlgmr.msra.gmra.mrb[44].mxu1 %v6331_v50 }
 0x18c   : > { %6006 = vmatpush3.bf16.msra.mxu1 %v6332_v47  ;;  %5987 = vmatprep.subr.bf16.mxu0 %v6333_v53 }
 0x18d   : > { %6007 = vmatprep.subr.bf16.mxu1 %v6334_v54  ;;  %6001 = vmatprep.mubr.bf16.mxu0 %v3896_v55 }
 0x18e   : > { %6021 = vmatprep.mubr.bf16.mxu1 %v4051_v56 }
 0x18f   : > { %5988 = vmatpush3.bf16.msra.mxu0 %v6333_v53 }
 0x190   : > { %6008 = vmatpush3.bf16.msra.mxu1 %v6334_v54  ;;  %5989 = vmatprep.subr.bf16.mxu0 %v6335_v57 }
 0x191   : > { %6009 = vmatprep.subr.bf16.mxu1 %v6336_v58 }
 0x193   : > { %5990 = vmatpush3.bf16.msra.mxu0 %v6335_v57 }
 0x194   : > { %6010 = vmatpush3.bf16.msra.mxu1 %v6336_v58  ;;  %5991 = vmatprep.subr.bf16.mxu0 %v6337_v59 }
 0x195   : > { %6011 = vmatprep.subr.bf16.mxu1 %v6338_v60 }
 0x197   : > { %5992 = vmatpush3.bf16.msra.mxu0 %v6337_v59 }
 0x198   : > { %6012 = vmatpush3.bf16.msra.mxu1 %v6338_v60  ;;  %5993 = vmatprep.subr.bf16.mxu0 %v6339_v61 }
 0x199   : > { %6013 = vmatprep.subr.bf16.mxu1 %v6340_v62 }
 0x19b   : > { %5994 = vmatpush3.bf16.msra.mxu0 %v6339_v61 }
 0x19c   : > { %6014 = vmatpush3.bf16.msra.mxu1 %v6340_v62  ;;  %5995 = vmatprep.subr.bf16.mxu0 %v6341_v63 }
 0x19d   : > { %v5723_v2 = vpop.f32.mrb[20].mxu0  ;;  %6015 = vmatprep.subr.bf16.mxu1 %v6342_v0 }
 0x19e   : > { %v1987_v4 = vadd.f32 %v5723_v2, %v7286_v31  ;;  %v1971_v5 = vpop.f32.mrb[21].mxu0  ;;  %v5743_v6 = vpop.f32.mrb[20].mxu1 }
 0x19f   : > { %v1985_v7 = vadd.f32 %v1971_v5, %v7292_v36  ;;  %v5724_v8 = vpop.f32.mrb[22].mxu0  ;;  %5996 = vmatpush3.bf16.msra.mxu0 %v6341_v63  ;;  %v2112_v9 = vpop.f32.mrb[21].mxu1 }
 0x1a0   : > { %v2128_v10 = vadd.f32 %v5743_v6, %v1987_v4  ;;  %v1974_v11 = vpop.f32.mrb[23].mxu0  ;;  %v5744_v12 = vpop.f32.mrb[22].mxu1  ;;  %6016 = vmatpush3.bf16.msra.mxu1 %v6342_v0  ;;  %5997 = vmatprep.subr.bf16.mxu0 %v6343_v1 }
 0x1a1   : > { %v1986_v14 = vadd.f32 %v1974_v11, %v7301_v42  ;;  %v2126_v15 = vadd.f32 %v2112_v9, %v1985_v7  ;;  %v2115_v16 = vpop.f32.mrb[23].mxu1  ;;  %6017 = vmatprep.subr.bf16.mxu1 %v6344_v3 }
 0x1a3   : > { %v2127_v20 = vadd.f32 %v2115_v16, %v1986_v14  ;;  %5998 = vmatpush3.bf16.msra.mxu0 %v6343_v1 }
 0x1a4   : > { %6018 = vmatpush3.bf16.msra.mxu1 %v6344_v3  ;;  %5999 = vmatprep.subr.bf16.mxu0 %v6345_v13 }
 0x1a5   : > { %6019 = vmatprep.subr.bf16.mxu1 %v6346_v17 }
 0x1a7   : > { %6000 = vmatpush3.bf16.msra.mxu0 %v6345_v13 }
 0x1a8   : > { %6020 = vmatpush3.bf16.msra.mxu1 %v6346_v17  ;;  %6025 = vmatprep.subr.bf16.mxu0 %v6349_v21 }
 0x1aa   : > { %6002 = vmatmul.mubr.bf16.vlgmr.msra.gmra.mrb[48].mxu0 %v3895_v49 }
 0x1ab   : > { %6026 = vmatpush3.bf16.msra.mxu0 %v6349_v21  ;;  %6022 = vmatmul.mubr.bf16.vlgmr.msra.gmra.mrb[48].mxu1 %v7311_v52 }
 0x1ac   : > { %6027 = vmatprep.subr.bf16.mxu0 %v6352_v24  ;;  %6041 = vmatprep.mubr.bf16.mxu0 %v4192_v25 }
 0x1af   : > { %6028 = vmatpush3.bf16.msra.mxu0 %v6352_v24 }
 0x1b0   : > { %6029 = vmatprep.subr.bf16.mxu0 %v6353_v26 }
 0x1b3   : > { %6030 = vmatpush3.bf16.msra.mxu0 %v6353_v26 }
 0x1b4   : > { %6031 = vmatprep.subr.bf16.mxu0 %v6354_v27 }
 0x1b7   : > { %6032 = vmatpush3.bf16.msra.mxu0 %v6354_v27 }
 0x1b8   : > { %6033 = vmatprep.subr.bf16.mxu0 %v6355_v28 }
 0x1bb   : > { %6034 = vmatpush3.bf16.msra.mxu0 %v6355_v28 }
 0x1bc   : > { %6035 = vmatprep.subr.bf16.mxu0 %v6356_v29 }
 0x1bd   : > { %v5763_v31 = vpop.f32.mrb[24].mxu0 }
 0x1be   : > { %v2269_v32 = vadd.f32 %v5763_v31, %v2128_v10  ;;  %v2253_v33 = vpop.f32.mrb[25].mxu0  ;;  %v5783_v34 = vpop.f32.mrb[24].mxu1 }
 0x1bf   : > { %v2267_v35 = vadd.f32 %v2253_v33, %v2126_v15  ;;  %v5764_v36 = vpop.f32.mrb[26].mxu0  ;;  %6036 = vmatpush3.bf16.msra.mxu0 %v6356_v29  ;;  %v2408_v37 = vpop.f32.mrb[25].mxu1 }
 0x1c0   : > { %v2424_v38 = vadd.f32 %v5783_v34, %v2269_v32  ;;  %v2256_v39 = vpop.f32.mrb[27].mxu0  ;;  %v5784_v40 = vpop.f32.mrb[26].mxu1  ;;  %6037 = vmatprep.subr.bf16.mxu0 %v6357_v30 }
 0x1c1   : > { %v2268_v42 = vadd.f32 %v2256_v39, %v2127_v20  ;;  %v2422_v43 = vadd.f32 %v2408_v37, %v2267_v35  ;;  %v2411_v44 = vpop.f32.mrb[27].mxu1 }
 0x1c3   : > { %v2423_v45 = vadd.f32 %v2411_v44, %v2268_v42  ;;  %6038 = vmatpush3.bf16.msra.mxu0 %v6357_v30 }
 0x1c4   : > { %6039 = vmatprep.subr.bf16.mxu0 %v6358_v41 }
 0x1c7   : > { %6040 = vmatpush3.bf16.msra.mxu0 %v6358_v41 }
 0x1ca   : > { %6042 = vmatmul.mubr.bf16.vlgmr.msra.gmra.mrb[52].mxu0 %v4191_v23 }
 0x1dd   : > { %v5803_v46 = vpop.f32.mrb[28].mxu0 }
 0x1de   : > { %v2559_v47 = vadd.f32 %v5803_v46, %v2424_v38  ;;  %v2543_v48 = vpop.f32.mrb[29].mxu0  ;;  %v5823_v49 = vpop.f32.mrb[28].mxu1 }
 0x1df   : > { %v2557_v50 = vadd.f32 %v2543_v48, %v2422_v43  ;;  %v5804_v51 = vpop.f32.mrb[30].mxu0  ;;  %v2684_v52 = vpop.f32.mrb[29].mxu1 }
 0x1e0   : > { %v2700_v53 = vadd.f32 %v5823_v49, %v2559_v47  ;;  %v2546_v54 = vpop.f32.mrb[31].mxu0  ;;  %v5824_v55 = vpop.f32.mrb[30].mxu1 }
 0x1e1   : > { %v2558_v56 = vadd.f32 %v2546_v54, %v2423_v45  ;;  %v2698_v57 = vadd.f32 %v2684_v52, %v2557_v50  ;;  %v2687_v58 = vpop.f32.mrb[31].mxu1 }
 0x1e3   : > { %v2699_v59 = vadd.f32 %v2687_v58, %v2558_v56 }
 0x1fd   : > { %v5843_v60 = vpop.f32.mrb[32].mxu0 }
 0x1fe   : > { %v2855_v61 = vadd.f32 %v5843_v60, %v2700_v53  ;;  %v2839_v62 = vpop.f32.mrb[33].mxu0  ;;  %v5863_v63 = vpop.f32.mrb[32].mxu1 }
 0x1ff   : > { %v2853_v0 = vadd.f32 %v2839_v62, %v2698_v57  ;;  %v5844_v1 = vpop.f32.mrb[34].mxu0  ;;  %v2980_v2 = vpop.f32.mrb[33].mxu1 }
 0x200   : > { %v2996_v3 = vadd.f32 %v5863_v63, %v2855_v61  ;;  %v2842_v4 = vpop.f32.mrb[35].mxu0  ;;  %v5864_v5 = vpop.f32.mrb[34].mxu1 }
 0x201   : > { %v2854_v6 = vadd.f32 %v2842_v4, %v2699_v59  ;;  %v2994_v7 = vadd.f32 %v2980_v2, %v2853_v0  ;;  %v2983_v8 = vpop.f32.mrb[35].mxu1 }
 0x203   : > { %v2995_v9 = vadd.f32 %v2983_v8, %v2854_v6 }
 0x21d   : > { %v5883_v10 = vpop.f32.mrb[36].mxu0 }
 0x21e   : > { %v3131_v11 = vadd.f32 %v5883_v10, %v2996_v3  ;;  %v3115_v12 = vpop.f32.mrb[37].mxu0  ;;  %v5903_v13 = vpop.f32.mrb[36].mxu1  ;;  %v5230_v3 = vld [vmem:[%s7432_s4] ss:$0 sm:$0xff] }
 0x21f   : > { %v3129_v14 = vadd.f32 %v3115_v12, %v2994_v7  ;;  %v5884_v15 = vpop.f32.mrb[38].mxu0  ;;  %v3268_v16 = vpop.f32.mrb[37].mxu1 }
 0x220   : > { %v3284_v17 = vadd.f32 %v5903_v13, %v3131_v11  ;;  %v3118_v18 = vpop.f32.mrb[39].mxu0  ;;  %v5904_v19 = vpop.f32.mrb[38].mxu1 }
 0x221   : > { %v3130_v20 = vadd.f32 %v3118_v18, %v2995_v9  ;;  %v3282_v21 = vadd.f32 %v3268_v16, %v3129_v14  ;;  %v3271_v22 = vpop.f32.mrb[39].mxu1  ;;  %v4327_v16 = vlaneseq }
 0x223   : > { %v3283_v23 = vadd.f32 %v3271_v22, %v3130_v20 }
 0x23d   : > { %v5923_v24 = vpop.f32.mrb[40].mxu0 }
 0x23e   : > { %v3425_v25 = vadd.f32 %v5923_v24, %v3284_v17  ;;  %v3409_v26 = vpop.f32.mrb[41].mxu0  ;;  %v5943_v27 = vpop.f32.mrb[40].mxu1  ;;  %v4328_v17 = vand.u32 127, %v4327_v16 }
 0x23f   : > { %v3423_v28 = vadd.f32 %v3409_v26, %v3282_v21  ;;  %v5924_v29 = vpop.f32.mrb[42].mxu0  ;;  %v3550_v30 = vpop.f32.mrb[41].mxu1 }
 0x240   : > { %v3566_v31 = vadd.f32 %v5943_v27, %v3425_v25  ;;  %v3412_v32 = vpop.f32.mrb[43].mxu0  ;;  %v5944_v33 = vpop.f32.mrb[42].mxu1  ;;  %vm4329_vm6 = vcmp.lt.s32.totalorder %v4328_v17, 8 }
 0x241   : > { %v3424_v34 = vadd.f32 %v3412_v32, %v3283_v23  ;;  %v3564_v35 = vadd.f32 %v3550_v30, %v3423_v28  ;;  %v3553_v36 = vpop.f32.mrb[43].mxu1 }
 0x243   : > { %v3565_v37 = vadd.f32 %v3553_v36, %v3424_v34 }
 0x25d   : > { %v5963_v38 = vpop.f32.mrb[44].mxu0 }
 0x25e   : > { %v3721_v39 = vadd.f32 %v5963_v38, %v3566_v31  ;;  %v3705_v40 = vpop.f32.mrb[45].mxu0  ;;  %v5983_v41 = vpop.f32.mrb[44].mxu1 }
 0x25f   : > { %v3719_v42 = vadd.f32 %v3705_v40, %v3564_v35  ;;  %v5964_v43 = vpop.f32.mrb[46].mxu0  ;;  %v3840_v44 = vpop.f32.mrb[45].mxu1 }
 0x260   : > { %v3856_v45 = vadd.f32 %v5983_v41, %v3721_v39  ;;  %v3708_v46 = vpop.f32.mrb[47].mxu0  ;;  %v5984_v47 = vpop.f32.mrb[46].mxu1 }
 0x261   : > { %v3720_v48 = vadd.f32 %v3708_v46, %v3565_v37  ;;  %v3854_v49 = vadd.f32 %v3840_v44, %v3719_v42  ;;  %v3843_v50 = vpop.f32.mrb[47].mxu1 }
 0x263   : > { %v3855_v51 = vadd.f32 %v3843_v50, %v3720_v48 }
 0x27d   : > { %v6003_v52 = vpop.f32.mrb[48].mxu0 }
 0x27e   : > { %v3997_v53 = vadd.f32 %v6003_v52, %v3856_v45  ;;  %v3981_v54 = vpop.f32.mrb[49].mxu0  ;;  %v6023_v55 = vpop.f32.mrb[48].mxu1 }
 0x27f   : > { %v3995_v56 = vadd.f32 %v3981_v54, %v3854_v49  ;;  %v6004_v57 = vpop.f32.mrb[50].mxu0  ;;  %v4136_v58 = vpop.f32.mrb[49].mxu1 }
 0x280   : > { %v4152_v59 = vadd.f32 %v6023_v55, %v3997_v53  ;;  %v3984_v60 = vpop.f32.mrb[51].mxu0  ;;  %v6024_v61 = vpop.f32.mrb[50].mxu1 }
 0x281   : > { %v3996_v62 = vadd.f32 %v3984_v60, %v3855_v51  ;;  %v4150_v63 = vadd.f32 %v4136_v58, %v3995_v56  ;;  %v4139_v0 = vpop.f32.mrb[51].mxu1 }
 0x283   : > { %v4151_v1 = vadd.f32 %v4139_v0, %v3996_v62  ;;  %v5231_v62 = vld [vmem:[%s7433_s5] ss:$0 sm:$0xff] }
 0x284   : > { %v5232_v0 = vld [vmem:[%s7434_s6] ss:$0 sm:$0xff] }
 0x29d   : > { %v6043_v2 = vpop.f32.mrb[52].mxu0 }
 0x29e   : > { %v4293_v4 = vadd.f32 %v6043_v2, %v4152_v59  ;;  %v4277_v5 = vpop.f32.mrb[53].mxu0 }
 0x29f   : > { %v4291_v6 = vadd.f32 %v4277_v5, %v4150_v63  ;;  %v6044_v7 = vpop.f32.mrb[54].mxu0 }
 0x2a0   : > { %v4311_v8 = vadd.f32 %v5230_v3, %v4293_v4  ;;  %v4280_v9 = vpop.f32.mrb[55].mxu0 }
 0x2a1   : > { %v4309_v10 = vadd.f32 %v5230_v3, %v4291_v6  ;;  %v4292_v11 = vadd.f32 %v4280_v9, %v4151_v1 }
 0x2a2   : > { %v4317_v12 = vmul.f32 0.70710677, %v4311_v8  ;;  %v4314_v20 = vmul.f32 0.5, %v4311_v8 }
 0x2a3   : > { %v4315_v13 = vmul.f32 0.70710677, %v4309_v10  ;;  %v4310_v14 = vadd.f32 %v5230_v3, %v4292_v11  ;;  %v4312_v22 = vmul.f32 0.5, %v4309_v10 }
 0x2a4   : > { %6361 = verf.f32 %v4317_v12 }
 0x2a5   : > { %6363 = verf.f32 %v4315_v13  ;;  %v4316_v15 = vmul.f32 0.70710677, %v4310_v14  ;;  %v4313_v27 = vmul.f32 0.5, %v4310_v14 }
 0x2a7   : > { %6365 = verf.f32 %v4316_v15 }
 0x2ae   : > { %v6362_v18 = vpop.eup %6361 }
 0x2af   : > { %v6364_v19 = vpop.eup %6363  ;;  %v4323_v21 = vadd.f32 1.0, %v6362_v18 }
 0x2b0   : > { %v4321_v23 = vadd.f32 1.0, %v6364_v19 }
 0x2b1   : > { %v6366_v24 = vpop.eup %6365  ;;  %v7397_v25 = vmul.f32 %v4323_v21, %v4314_v20 }
 0x2b2   : > { %v4324_v26 = vmul.f32 %v4321_v23, %v4312_v22  ;;  %v4322_v28 = vadd.f32 1.0, %v6366_v24 }
 0x2b3   : > { %v4334_v29 = vsel %vm4329_vm6, %v7397_v25, 0.0 }
 0x2b4   : > { %4339 = vadd.xlane.f32.xlu1 %v4334_v29  ;;  %v4332_v30 = vsel %vm4329_vm6, %v4324_v26, 0.0  ;;  %v4325_v31 = vmul.f32 %v4322_v28, %v4313_v27  ;;  %v4343_v34 = vmul.f32 %v4334_v29, %v4334_v29 }
 0x2b5   : > { %4335 = vadd.xlane.f32.xlu0 %v4332_v30  ;;  %v4341_v32 = vmul.f32 %v4332_v30, %v4332_v30 }
 0x2b6   : > { %v4333_v33 = vsel %vm4329_vm6, %v4325_v31, 0.0 }
 0x2b7   : > { %v4342_v35 = vmul.f32 %v4333_v33, %v4333_v33 }
 0x2b8   : > { %4344 = vadd.xlane.f32.xlu1 %v4341_v32 }
 0x2b9   : > { %4337 = vadd.xlane.f32.xlu0 %v4333_v33 }
 0x2bc   : > { %4348 = vadd.xlane.f32.xlu1 %v4343_v34 }
 0x2bd   : > { %4346 = vadd.xlane.f32.xlu0 %v4342_v35 }
 0x341   : > { %v4340_v36 = vpop.xlane.xlu1 %4339 }
 0x342   : > { %v4336_v37 = vpop.xlane.xlu0 %4335  ;;  %v4352_v41 = vmul.f32 0.125, %v4340_v36 }
 0x343   : > { %v4350_v38 = vmul.f32 0.125, %v4336_v37 }
 0x344   : > { %v4358_v47 = vmul.f32 %v4352_v41, %v4352_v41  ;;  %v4367_v1 = vsub.f32 %v7397_v25, %v4352_v41 }
 0x345   : > { %v4356_v39 = vmul.f32 %v4350_v38, %v4350_v38  ;;  %v4345_v40 = vpop.xlane.xlu1 %4344  ;;  %v4365_v60 = vsub.f32 %v4324_v26, %v4350_v38 }
 0x346   : > { %v4353_v42 = vmul.f32 0.125, %v4345_v40  ;;  %v4338_v43 = vpop.xlane.xlu0 %4337 }
 0x347   : > { %v4351_v44 = vmul.f32 0.125, %v4338_v43 }
 0x348   : > { %v4359_v45 = vsub.f32 %v4353_v42, %v4356_v39 }
 0x349   : > { %v4349_v46 = vpop.xlane.xlu1 %4348  ;;  %v4357_v51 = vmul.f32 %v4351_v44, %v4351_v44  ;;  %v4366_v4 = vsub.f32 %v4325_v31, %v4351_v44 }
 0x34a   : > { %v4362_v48 = vmax.f32 %v4359_v45, 0.0  ;;  %v4355_v49 = vmul.f32 0.125, %v4349_v46  ;;  %v4347_v50 = vpop.xlane.xlu0 %4346 }
 0x34b   : > { %v4354_v52 = vmul.f32 0.125, %v4347_v50 }
 0x34c   : > { %v4368_v53 = vadd.f32 1e-05, %v4362_v48  ;;  %v4361_v54 = vsub.f32 %v4355_v49, %v4358_v47 }
 0x34d   : > { %v4360_v55 = vsub.f32 %v4354_v52, %v4357_v51 }
 0x34e   : > { %6367 = vrsqrt.f32 %v4368_v53  ;;  %v4364_v56 = vmax.f32 %v4361_v54, 0.0 }
 0x34f   : > { %v4363_v57 = vmax.f32 %v4360_v55, 0.0 }
 0x350   : > { %v4370_v58 = vadd.f32 1e-05, %v4364_v56 }
 0x351   : > { %v4369_v59 = vadd.f32 1e-05, %v4363_v57 }
 0x352   : > { %6369 = vrsqrt.f32 %v4370_v58 }
 0x353   : > { %6371 = vrsqrt.f32 %v4369_v59 }
 0x358   : > { %v6368_v61 = vpop.eup %6367 }
 0x359   : > { %v4374_v63 = vmul.f32 %v6368_v61, %v4365_v60 }
 0x35b   : > { %v4383_v2 = vmul.f32 %v5231_v62, %v4374_v63 }
 0x35c   : > { %v6370_v3 = vpop.eup %6369 }
 0x35d   : > { %v6372_v5 = vpop.eup %6371  ;;  %v4392_v6 = vadd.f32 %v5232_v0, %v4383_v2  ;;  %v4376_v7 = vmul.f32 %v6370_v3, %v4367_v1 }
 0x35e   : > { %v4375_v8 = vmul.f32 %v6372_v5, %v4366_v4 }
 0x35f   : > { %4395 = vst [vmem:[%s396_s19] sm:$0xff] %v4392_v6  ;;  %v4385_v9 = vmul.f32 %v5231_v62, %v4376_v7 }
 0x360   : > { %v4384_v10 = vmul.f32 %v5231_v62, %v4375_v8 }
 0x361   : > { %v4394_v11 = vadd.f32 %v5232_v0, %v4385_v9 }
 0x362   : > { %v4393_v12 = vadd.f32 %v5232_v0, %v4384_v10 }
 0x363   : > { %4397 = vst [vmem:[%s396_s19 + $0x10] sm:$0xff] %v4394_v11 }
 0x364   : > { %4396 = vst [vmem:[%s396_s19 + $0x8] sm:$0xff] %v4393_v12 }
 0x365 PF: > { %s17_s28 = sadd.s32 1, %s6411_s28   ;;  %s7437_s24 = smov %s6403_s26 }
 0x366   : > { %p14_p10 = scmp.ge.s32.totalorder %s17_s28, 10   ;;  %s7438_s25 = smov %s6407_s27 }
 0x367   : > { %s7439_s26 = smov %s7442_s29  ;;  %s7440_s27 = smov %s7446_s30 }
 0x368   :  { %16 = sbr.rel (!%p14_p10) target bundleno = 3 (0x3), region = 110 }

</bundles_post_ra>
